<compile_context>
chip_gen: v6e
topology: v6e:2x2x1
jax: 0.10.0
libtpu: 0.0.40
codegen_flags: <defaults>
</compile_context>

<pallas_src>
import functools
import numpy as np
import jax
import jax.numpy as jnp
from jax.experimental import pallas as pl
from jax.experimental.pallas import tpu as pltpu

_VMEM_LIMIT = 48 * 1024 * 1024  # fits v7x's 64 MiB VMEM with headroom


def _cparams(n_grid_axes):
    return pltpu.CompilerParams(
        dimension_semantics=("parallel",) * n_grid_axes,
        vmem_limit_bytes=_VMEM_LIMIT)


def _pick_tm(m, block_m):
    tm = min(block_m, m)
    if tm < m:
        tm = max(8, (tm // 8) * 8)
    return tm


# ------------------------- linear (1x1 conv) kernel -------------------------

def _linear_kernel(act, has_norm, has_bias, has_res, *refs):
    it = iter(refs)
    x_ref = next(it)
    s_ref = next(it) if has_norm else None
    t_ref = next(it) if has_norm else None
    w_ref = next(it)
    b_ref = next(it) if has_bias else None
    r_ref = next(it) if has_res else None
    o_ref = next(it)

    x = x_ref[...]
    if has_norm:
        x = x * s_ref[...] + t_ref[...]                    # folded BN (f32)
    y = jnp.dot(x.astype(jnp.bfloat16), w_ref[...],        # bf16 MXU, f32 acc
                preferred_element_type=jnp.float32)
    if has_bias:
        y = y + b_ref[...]
    if act:
        y = jnp.clip(y, 0.0, 6.0)                          # ReLU6
    if has_res:
        y = y + r_ref[...]
    o_ref[...] = y


def linear(x, w, *, scale=None, shift=None, bias=None, residual=None,
           act=False, block_m=512):
    M, C = x.shape
    N = w.shape[1]
    TM = _pick_tm(M, block_m)
    grid = (pl.cdiv(M, TM),)

    def row_spec(ncols):
        return pl.BlockSpec((TM, ncols), lambda i: (i, 0))

    def full_spec(shape):
        return pl.BlockSpec(shape, lambda i: (0,) * len(shape))

    operands = [x]
    in_specs = [row_spec(C)]
    if scale is not None:
        operands += [scale.reshape(1, C).astype(jnp.float32),
                     shift.reshape(1, C).astype(jnp.float32)]
        in_specs += [full_spec((1, C)), full_spec((1, C))]
    operands.append(w)
    in_specs.append(full_spec(tuple(w.shape)))
    if bias is not None:
        operands.append(bias.reshape(1, N).astype(jnp.float32))
        in_specs.append(full_spec((1, N)))
    if residual is not None:
        operands.append(residual)
        in_specs.append(row_spec(N))

    return pl.pallas_call(
        functools.partial(_linear_kernel, act, scale is not None,
                          bias is not None, residual is not None),
        grid=grid,
        out_shape=jax.ShapeDtypeStruct((M, N), jnp.float32),
        in_specs=in_specs,
        out_specs=pl.BlockSpec((TM, N), lambda i: (i, 0)),
        compiler_params=_cparams(1),
    )(*operands)


# ------------------------- fused MLP (fc1+ReLU6+fc2+residual) -------------------------

def _mlp_kernel(x_ref, s_ref, t_ref, w1_ref, b1_ref, w2_ref, b2_ref, o_ref):
    xn = x_ref[...] * s_ref[...] + t_ref[...]              # norm3 folded
    h = jnp.dot(xn.astype(jnp.bfloat16), w1_ref[...],
                preferred_element_type=jnp.float32) + b1_ref[...]
    h = jnp.clip(h, 0.0, 6.0)                              # ReLU6
    y = jnp.dot(h.astype(jnp.bfloat16), w2_ref[...],
                preferred_element_type=jnp.float32) + b2_ref[...]
    o_ref[...] = y + x_ref[...]                            # residual = raw x


def mlp_residual(x, scale, shift, w1, b1, w2, b2, block_m=512):
    M, C = x.shape
    hidden = w1.shape[1]
    out_c = w2.shape[1]
    TM = _pick_tm(M, block_m)
    grid = (pl.cdiv(M, TM),)
    row = lambda n: pl.BlockSpec((TM, n), lambda i: (i, 0))
    full = lambda s: pl.BlockSpec(s, lambda i: (0,) * len(s))
    return pl.pallas_call(
        _mlp_kernel,
        grid=grid,
        out_shape=jax.ShapeDtypeStruct((M, out_c), jnp.float32),
        in_specs=[row(C), full((1, C)), full((1, C)),
                  full(tuple(w1.shape)), full((1, hidden)),
                  full(tuple(w2.shape)), full((1, out_c))],
        out_specs=row(out_c),
        compiler_params=_cparams(1),
    )(x, scale.reshape(1, C), shift.reshape(1, C),
      w1, b1.reshape(1, hidden), w2, b2.reshape(1, out_c))


# ------------------------- fused norm2 + pad + depthwise conv + residual -------------------------

def _dwconv_kernel(ws, pad_l, col_base, x_ref, s_ref, t_ref, w_ref, o_ref,
                   pad_ref):
    _, H, W, C = x_ref.shape
    x = x_ref[...]
    # Zero-padded, normalized input lives only in VMEM scratch (pad-after-norm).
    pad_ref[...] = jnp.zeros_like(pad_ref)
    pad_ref[:, pad_l:pad_l + H, col_base:col_base + W, :] = (
        x * s_ref[...] + t_ref[...])
    xp = pad_ref[...]
    col0 = col_base - pad_l
    acc = x                                                # residual = raw x
    for ki in range(ws):
        for kj in range(ws):
            idx = ki * ws + kj
            wk = w_ref[idx:idx + 1, :].reshape(1, 1, 1, C)
            acc = acc + xp[:, ki:ki + H, col0 + kj:col0 + kj + W, :] * wk
    o_ref[...] = acc


def dwconv_bn_residual(x, scale, shift, w_dw, ws):
    B, H, W, C = x.shape
    pad_total = ws - 1
    pad_l = pad_total // 2
    pad_r = pad_total - pad_l
    col_base = ((pad_l + 7) // 8) * 8          # sublane-aligned interior offset
    Hp = H + pad_total
    Wp = col_base + W + pad_r
    return pl.pallas_call(
        functools.partial(_dwconv_kernel, ws, pad_l, col_base),
        grid=(B,),
        out_shape=jax.ShapeDtypeStruct((B, H, W, C), jnp.float32),
        in_specs=[pl.BlockSpec((1, H, W, C), lambda b: (b, 0, 0, 0)),
                  pl.BlockSpec((1, 1, 1, C), lambda b: (0, 0, 0, 0)),
                  pl.BlockSpec((1, 1, 1, C), lambda b: (0, 0, 0, 0)),
                  pl.BlockSpec((ws * ws, C), lambda b: (0, 0))],
        out_specs=pl.BlockSpec((1, H, W, C), lambda b: (b, 0, 0, 0)),
        scratch_shapes=[pltpu.VMEM((1, Hp, Wp, C), jnp.float32)],
        compiler_params=_cparams(1),
    )(x, scale.reshape(1, 1, 1, C), shift.reshape(1, 1, 1, C), w_dw)


# ------------------------- window attention -------------------------

def _attn_kernel(scale, q_ref, k_ref, v_ref, b_ref, o_ref):
    WB, NH, S, D = q_ref.shape
    q = q_ref[...].reshape(WB * NH, S, D)
    k = k_ref[...].reshape(WB * NH, S, D)
    v = v_ref[...].reshape(WB * NH, S, D)
    # TODO(synk): head_dim is tiny; a block-diagonal packing of heads/windows
    # onto the 128-lane axis would use the MXU better than this padded einsum.
    dots = jnp.einsum('gsd,gtd->gst', q, k,
                      preferred_element_type=jnp.float32) * scale
    dots = dots.reshape(WB, NH, S, S) + b_ref[...][None]   # shared rel-pos bias
    m = jnp.max(dots, axis=-1, keepdims=True)
    e = jnp.exp(dots - m)
    p = e * pl.reciprocal(jnp.sum(e, axis=-1, keepdims=True), approx=True)
    out = jnp.einsum('gst,gtd->gsd', p.reshape(WB * NH, S, S), v,
                     preferred_element_type=jnp.float32)
    o_ref[...] = out.reshape(WB, NH, S, D)


def window_attention(q, k, v, bias, scale, block_w=16):
    NW, NH, S, D = q.shape
    WB = min(block_w, NW)
    grid = (pl.cdiv(NW, WB),)
    qspec = pl.BlockSpec((WB, NH, S, D), lambda i: (i, 0, 0, 0))
    return pl.pallas_call(
        functools.partial(_attn_kernel, scale),
        grid=grid,
        out_shape=jax.ShapeDtypeStruct((NW, NH, S, D), jnp.float32),
        in_specs=[qspec, qspec, qspec,
                  pl.BlockSpec((NH, S, S), lambda i: (0, 0, 0))],
        out_specs=qspec,
        compiler_params=_cparams(1),
    )(q, k, v, bias)


# ------------------------- glue: forward passes -------------------------

def relative_position_bias(table, ws, num_heads):
    coords = np.stack(np.meshgrid(np.arange(ws), np.arange(ws), indexing='ij'))
    cf = coords.reshape(2, -1)
    rel = cf[:, :, None] - cf[:, None, :]
    rel = rel.transpose(1, 2, 0).astype(np.int64)
    rel[:, :, 0] += ws - 1
    rel[:, :, 1] += ws - 1
    rel[:, :, 0] *= 2 * ws - 1
    idx = rel.sum(-1).reshape(-1)
    bias = table[jnp.asarray(idx)].reshape(ws * ws, ws * ws, num_heads)
    return jnp.transpose(bias, (2, 0, 1))  # (heads, S, S)


def block_forward(x, p, num_heads, ws, shuffle):
    B, H, W, C = x.shape
    M = B * H * W
    hd = C // num_heads
    scale = hd ** (-0.5)
    hh, ww = H // ws, W // ws
    S = ws * ws
    NW = B * hh * ww

    xf = x.reshape(M, C)

    # ---- attention branch (norm1 folded into the qkv matmul; no bias/residual) ----
    qkv = linear(xf, p['w_qkv'], scale=p['n1_s'], shift=p['n1_t'])
    qkv = qkv.reshape(B, H, W, 3, num_heads, hd)
    # TODO(synk): window (un)shuffle is done as XLA transposes between kernels;
    # folding it into BlockSpec index maps would save two HBM passes per block.
    if shuffle:
        # row = ws1 * hh + hh_idx ; col = ws2 * ww + ww_idx
        qkv = qkv.reshape(B, ws, hh, ws, ww, 3, num_heads, hd)
        qkv = qkv.transpose(5, 0, 2, 4, 6, 1, 3, 7)
    else:
        # row = hh_idx * ws + ws1 ; col = ww_idx * ws + ws2
        qkv = qkv.reshape(B, hh, ws, ww, ws, 3, num_heads, hd)
        qkv = qkv.transpose(5, 0, 1, 3, 6, 2, 4, 7)
    qkv = qkv.reshape(3, NW, num_heads, S, hd)
    q, k, v = qkv[0], qkv[1], qkv[2]

    out = window_attention(q, k, v, p['rel_bias'], scale)   # (NW, heads, S, hd)
    out = out.reshape(B, hh, ww, num_heads, ws, ws, hd)
    if shuffle:
        out = out.transpose(0, 4, 1, 5, 2, 3, 6)
    else:
        out = out.transpose(0, 1, 4, 2, 5, 3, 6)
    out = out.reshape(M, C)
    # x + proj(attn(norm1(x)))
    x1 = linear(out, p['w_proj'], bias=p['b_proj'], residual=xf)

    # ---- local depthwise conv branch: x + conv(pad(norm2(x))) (bn+pad fused) ----
    x2 = dwconv_bn_residual(x1.reshape(B, H, W, C), p['n2_s'], p['n2_t'],
                            p['w_dw'], ws)

    # ---- MLP branch: x + fc2(relu6(fc1(norm3(x)))) fused in one kernel ----
    x3 = mlp_residual(x2.reshape(M, C), p['n3_s'], p['n3_t'],
                      p['w1'], p['b1'], p['w2'], p['b2'])
    return x3.reshape(B, H, W, C)


def patch_merging_forward(x, p):
    B, H, W, C = x.shape
    out_dim = p['w_red'].shape[1]
    # extract 2x2 stride-2 patches; column order = c*4 + kh*2 + kw
    xp = x.reshape(B, H // 2, 2, W // 2, 2, C).transpose(0, 1, 3, 5, 2, 4)
    xp = xp.reshape(B * (H // 2) * (W // 2), C * 4)
    s = jnp.repeat(p['pm_s'], 4)
    t = jnp.repeat(p['pm_t'], 4)
    out = linear(xp, p['w_red'], scale=s, shift=t)     # norm folded, no bias
    return out.reshape(B, H // 2, W // 2, out_dim)


def stage_forward(x_nchw, params, num_heads, ws, shuffle):
    x = jnp.transpose(x_nchw, (0, 2, 3, 1)).astype(jnp.float32)   # NCHW -> NHWC
    if params['patch_merging'] is not None:
        x = patch_merging_forward(x, params['patch_merging'])
    for reg, shf in params['blocks']:
        x = block_forward(x, reg, num_heads, ws, shuffle=False)
        x = block_forward(x, shf, num_heads, ws, shuffle=shuffle)
    return jnp.transpose(x, (0, 3, 1, 2))                         # back to NCHW


# ------------------------- deterministic parameter init -------------------------

def init_bn(key, c):
    k1, k2, k3, k4 = jax.random.split(key, 4)
    gamma = 1.0 + 0.1 * jax.random.normal(k1, (c,), jnp.float32)
    beta = 0.1 * jax.random.normal(k2, (c,), jnp.float32)
    mean = 0.1 * jax.random.normal(k3, (c,), jnp.float32)
    var = 1.0 + 0.1 * jax.random.uniform(k4, (c,), jnp.float32)
    scale = gamma / jnp.sqrt(var + 1e-5)
    shift = beta - mean * scale
    return scale, shift


def init_block(key, dim, num_heads, ws, mlp_ratio, rel_pos):
    keys = jax.random.split(key, 12)
    hidden = int(dim * mlp_ratio)
    p = {}
    p['n1_s'], p['n1_t'] = init_bn(keys[0], dim)
    p['w_qkv'] = (0.05 * jax.random.normal(keys[1], (dim, 3 * dim),
                                           jnp.float32)).astype(jnp.bfloat16)
    p['w_proj'] = (0.05 * jax.random.normal(keys[2], (dim, dim),
                                            jnp.float32)).astype(jnp.bfloat16)
    p['b_proj'] = 0.02 * jax.random.normal(keys[3], (dim,), jnp.float32)
    p['n2_s'], p['n2_t'] = init_bn(keys[4], dim)
    p['w_dw'] = 0.1 * jax.random.normal(keys[5], (ws * ws, dim), jnp.float32)
    p['n3_s'], p['n3_t'] = init_bn(keys[6], dim)
    p['w1'] = (0.05 * jax.random.normal(keys[7], (dim, hidden),
                                        jnp.float32)).astype(jnp.bfloat16)
    p['b1'] = 0.02 * jax.random.normal(keys[8], (hidden,), jnp.float32)
    p['w2'] = (0.05 * jax.random.normal(keys[9], (hidden, dim),
                                        jnp.float32)).astype(jnp.bfloat16)
    p['b2'] = 0.02 * jax.random.normal(keys[10], (dim,), jnp.float32)
    if rel_pos:
        table = 0.02 * jax.random.normal(
            keys[11], ((2 * ws - 1) ** 2, num_heads), jnp.float32)
        p['rel_bias'] = relative_position_bias(table, ws, num_heads)
    else:
        p['rel_bias'] = jnp.zeros((num_heads, ws * ws, ws * ws), jnp.float32)
    return p


def init_stage(key, layers, dim, out_dim, num_heads, ws, mlp_ratio, rel_pos):
    assert layers % 2 == 0
    params = {}
    keys = jax.random.split(key, layers + 1)
    if dim != out_dim:
        kpm = jax.random.split(keys[0], 2)
        s, t = init_bn(kpm[0], dim)
        params['patch_merging'] = {
            'pm_s': s, 'pm_t': t,
            'w_red': (0.05 * jax.random.normal(kpm[1], (dim * 4, out_dim),
                                               jnp.float32)).astype(jnp.bfloat16),
        }
    else:
        params['patch_merging'] = None
    blocks = []
    for i in range(layers // 2):
        k1, k2 = jax.random.split(keys[i + 1])
        blocks.append((init_block(k1, out_dim, num_heads, ws, mlp_ratio, rel_pos),
                       init_block(k2, out_dim, num_heads, ws, mlp_ratio, rel_pos)))
    params['blocks'] = blocks
    return params


# ------------------------- main -------------------------

if __name__ == "__main__":
    # StageModule(layers=2, dim=8, out_dim=16, num_heads=2, window_size=4,
    #             shuffle=True, mlp_ratio=4.0, relative_pos_embedding=True)
    B, dim, out_dim, H, W = 2, 8, 16, 16, 16
    layers, num_heads, ws, shuffle = 2, 2, 4, True

    key = jax.random.PRNGKey(0)
    kx, kp = jax.random.split(key)
    x = jax.random.normal(kx, (B, dim, H, W), jnp.float32)   # NCHW like PyTorch
    params = init_stage(kp, layers, dim, out_dim, num_heads, ws,
                        mlp_ratio=4.0, rel_pos=True)

    fwd = jax.jit(functools.partial(stage_forward, num_heads=num_heads,
                                    ws=ws, shuffle=shuffle))
    y = fwd(x, params)
    y = jax.block_until_ready(y)

    assert y.shape == (B, out_dim, H // 2, W // 2), y.shape
    assert bool(jnp.all(jnp.isfinite(y)))
    # TODO(synk): Dropout/DropPath omitted (prob=0 -> identity); BN uses folded
    # inference-mode running statistics.
    print("KERNEL_OK")
</pallas_src>

<mosaic_0001>
module attributes {stable_mosaic.version = 11 : i64} {
  func.func @_linear_kernel(%arg0: i32, %arg1: memref<128x16xf32, #tpu.memory_space<vmem>>, %arg2: memref<1x16xf32, #tpu.memory_space<vmem>>, %arg3: memref<1x16xf32, #tpu.memory_space<vmem>>, %arg4: memref<16x48xbf16, #tpu.memory_space<vmem>>, %arg5: memref<128x48xf32, #tpu.memory_space<vmem>>) attributes {dimension_semantics = [#tpu.dimension_semantics<parallel>], iteration_bounds = array<i64: 1>, scalar_prefetch = 0 : i64, scratch_operands = 0 : i64, tpu.core_type = #tpu.core_type<tc>, window_params = [{transform_indices = @transform_0, window_bounds = array<i64: 128, 16>}, {pipeline_mode = #tpu.pipeline_mode<synchronous>, transform_indices = @transform_1, window_bounds = array<i64: 1, 16>}, {pipeline_mode = #tpu.pipeline_mode<synchronous>, transform_indices = @transform_2, window_bounds = array<i64: 1, 16>}, {pipeline_mode = #tpu.pipeline_mode<synchronous>, transform_indices = @transform_3, window_bounds = array<i64: 16, 48>}, {transform_indices = @transform_4, window_bounds = array<i64: 128, 48>}]} {
    %c0 = arith.constant 0 : index
    %c0_0 = arith.constant 0 : index
    %0 = vector.load %arg1[%c0, %c0_0] : memref<128x16xf32, #tpu.memory_space<vmem>>, vector<128x16xf32>
    %c0_1 = arith.constant 0 : index
    %c0_2 = arith.constant 0 : index
    %1 = vector.load %arg2[%c0_1, %c0_2] : memref<1x16xf32, #tpu.memory_space<vmem>>, vector<1x16xf32>
    %2 = vector.broadcast %1 : vector<1x16xf32> to vector<128x16xf32>
    %3 = arith.mulf %0, %2 : vector<128x16xf32>
    %c0_3 = arith.constant 0 : index
    %c0_4 = arith.constant 0 : index
    %4 = vector.load %arg3[%c0_3, %c0_4] : memref<1x16xf32, #tpu.memory_space<vmem>>, vector<1x16xf32>
    %5 = vector.broadcast %4 : vector<1x16xf32> to vector<128x16xf32>
    %6 = arith.addf %3, %5 : vector<128x16xf32>
    %7 = arith.truncf %6 : vector<128x16xf32> to vector<128x16xbf16>
    %c0_5 = arith.constant 0 : index
    %c0_6 = arith.constant 0 : index
    %8 = vector.load %arg4[%c0_5, %c0_6] : memref<16x48xbf16, #tpu.memory_space<vmem>>, vector<16x48xbf16>
    %cst = arith.constant dense<0.000000e+00> : vector<128x48xf32>
    %9 = tpu.matmul %7, %8, %cst {dimension_numbers = #tpu.dot_dimension_numbers<[1], [0], [0], [1], [0, 0, 1, 1], [], []>} : vector<128x16xbf16>, vector<16x48xbf16>, vector<128x48xf32> -> vector<128x48xf32>
    %c0_7 = arith.constant 0 : index
    %c0_8 = arith.constant 0 : index
    %10 = vector.load %arg5[%c0_7, %c0_8] : memref<128x48xf32, #tpu.memory_space<vmem>>, vector<128x48xf32>
    tpu.vector_store %arg5[%c0_7, %c0_8], %9 {strides = array<i32>} : memref<128x48xf32, #tpu.memory_space<vmem>>, vector<128x48xf32>,
    return
  }
  func.func @transform_0(%arg0: i32) -> (i32, i32) {
    %c0_i32 = arith.constant 0 : i32
    %c0_i32_0 = arith.constant 0 : i32
    return %arg0, %c0_i32 : i32, i32
  }
  func.func @transform_1(%arg0: i32) -> (i32, i32) {
    %c0_i32 = arith.constant 0 : i32
    %c0_i32_0 = arith.constant 0 : i32
    %c0_i32_1 = arith.constant 0 : i32
    return %c0_i32, %c0_i32_0 : i32, i32
  }
  func.func @transform_2(%arg0: i32) -> (i32, i32) {
    %c0_i32 = arith.constant 0 : i32
    %c0_i32_0 = arith.constant 0 : i32
    %c0_i32_1 = arith.constant 0 : i32
    return %c0_i32, %c0_i32_0 : i32, i32
  }
  func.func @transform_3(%arg0: i32) -> (i32, i32) {
    %c0_i32 = arith.constant 0 : i32
    %c0_i32_0 = arith.constant 0 : i32
    %c0_i32_1 = arith.constant 0 : i32
    return %c0_i32, %c0_i32_0 : i32, i32
  }
  func.func @transform_4(%arg0: i32) -> (i32, i32) {
    %c0_i32 = arith.constant 0 : i32
    %c0_i32_0 = arith.constant 0 : i32
    return %arg0, %c0_i32 : i32, i32
  }
}

module attributes {stable_mosaic.version = 11 : i64} {
  func.func @_linear_kernel(%arg0: i32, %arg1: memref<128x32xf32, #tpu.memory_space<vmem>>, %arg2: memref<1x32xf32, #tpu.memory_space<vmem>>, %arg3: memref<1x32xf32, #tpu.memory_space<vmem>>, %arg4: memref<32x16xbf16, #tpu.memory_space<vmem>>, %arg5: memref<128x16xf32, #tpu.memory_space<vmem>>) attributes {dimension_semantics = [#tpu.dimension_semantics<parallel>], iteration_bounds = array<i64: 1>, scalar_prefetch = 0 : i64, scratch_operands = 0 : i64, tpu.core_type = #tpu.core_type<tc>, window_params = [{transform_indices = @transform_0, window_bounds = array<i64: 128, 32>}, {pipeline_mode = #tpu.pipeline_mode<synchronous>, transform_indices = @transform_1, window_bounds = array<i64: 1, 32>}, {pipeline_mode = #tpu.pipeline_mode<synchronous>, transform_indices = @transform_2, window_bounds = array<i64: 1, 32>}, {pipeline_mode = #tpu.pipeline_mode<synchronous>, transform_indices = @transform_3, window_bounds = array<i64: 32, 16>}, {transform_indices = @transform_4, window_bounds = array<i64: 128, 16>}]} {
    %c0 = arith.constant 0 : index
    %c0_0 = arith.constant 0 : index
    %0 = vector.load %arg1[%c0, %c0_0] : memref<128x32xf32, #tpu.memory_space<vmem>>, vector<128x32xf32>
    %c0_1 = arith.constant 0 : index
    %c0_2 = arith.constant 0 : index
    %1 = vector.load %arg2[%c0_1, %c0_2] : memref<1x32xf32, #tpu.memory_space<vmem>>, vector<1x32xf32>
    %2 = vector.broadcast %1 : vector<1x32xf32> to vector<128x32xf32>
    %3 = arith.mulf %0, %2 : vector<128x32xf32>
    %c0_3 = arith.constant 0 : index
    %c0_4 = arith.constant 0 : index
    %4 = vector.load %arg3[%c0_3, %c0_4] : memref<1x32xf32, #tpu.memory_space<vmem>>, vector<1x32xf32>
    %5 = vector.broadcast %4 : vector<1x32xf32> to vector<128x32xf32>
    %6 = arith.addf %3, %5 : vector<128x32xf32>
    %7 = arith.truncf %6 : vector<128x32xf32> to vector<128x32xbf16>
    %c0_5 = arith.constant 0 : index
    %c0_6 = arith.constant 0 : index
    %8 = vector.load %arg4[%c0_5, %c0_6] : memref<32x16xbf16, #tpu.memory_space<vmem>>, vector<32x16xbf16>
    %cst = arith.constant dense<0.000000e+00> : vector<128x16xf32>
    %9 = tpu.matmul %7, %8, %cst {dimension_numbers = #tpu.dot_dimension_numbers<[1], [0], [0], [1], [0, 0, 1, 1], [], []>} : vector<128x32xbf16>, vector<32x16xbf16>, vector<128x16xf32> -> vector<128x16xf32>
    %c0_7 = arith.constant 0 : index
    %c0_8 = arith.constant 0 : index
    %10 = vector.load %arg5[%c0_7, %c0_8] : memref<128x16xf32, #tpu.memory_space<vmem>>, vector<128x16xf32>
    tpu.vector_store %arg5[%c0_7, %c0_8], %9 {strides = array<i32>} : memref<128x16xf32, #tpu.memory_space<vmem>>, vector<128x16xf32>,
    return
  }
  func.func @transform_0(%arg0: i32) -> (i32, i32) {
    %c0_i32 = arith.constant 0 : i32
    %c0_i32_0 = arith.constant 0 : i32
    return %arg0, %c0_i32 : i32, i32
  }
  func.func @transform_1(%arg0: i32) -> (i32, i32) {
    %c0_i32 = arith.constant 0 : i32
    %c0_i32_0 = arith.constant 0 : i32
    %c0_i32_1 = arith.constant 0 : i32
    return %c0_i32, %c0_i32_0 : i32, i32
  }
  func.func @transform_2(%arg0: i32) -> (i32, i32) {
    %c0_i32 = arith.constant 0 : i32
    %c0_i32_0 = arith.constant 0 : i32
    %c0_i32_1 = arith.constant 0 : i32
    return %c0_i32, %c0_i32_0 : i32, i32
  }
  func.func @transform_3(%arg0: i32) -> (i32, i32) {
    %c0_i32 = arith.constant 0 : i32
    %c0_i32_0 = arith.constant 0 : i32
    %c0_i32_1 = arith.constant 0 : i32
    return %c0_i32, %c0_i32_0 : i32, i32
  }
  func.func @transform_4(%arg0: i32) -> (i32, i32) {
    %c0_i32 = arith.constant 0 : i32
    %c0_i32_0 = arith.constant 0 : i32
    return %arg0, %c0_i32 : i32, i32
  }
}

module attributes {stable_mosaic.version = 11 : i64} {
  func.func @_attn_kernel(%arg0: i32, %arg1: memref<8x2x16x8xf32, #tpu.memory_space<vmem>>, %arg2: memref<8x2x16x8xf32, #tpu.memory_space<vmem>>, %arg3: memref<8x2x16x8xf32, #tpu.memory_space<vmem>>, %arg4: memref<2x16x16xf32, #tpu.memory_space<vmem>>, %arg5: memref<8x2x16x8xf32, #tpu.memory_space<vmem>>) attributes {dimension_semantics = [#tpu.dimension_semantics<parallel>], iteration_bounds = array<i64: 1>, scalar_prefetch = 0 : i64, scratch_operands = 0 : i64, tpu.core_type = #tpu.core_type<tc>, window_params = [{transform_indices = @transform_0, window_bounds = array<i64: 8, 2, 16, 8>}, {transform_indices = @transform_1, window_bounds = array<i64: 8, 2, 16, 8>}, {transform_indices = @transform_2, window_bounds = array<i64: 8, 2, 16, 8>}, {pipeline_mode = #tpu.pipeline_mode<synchronous>, transform_indices = @transform_3, window_bounds = array<i64: 2, 16, 16>}, {transform_indices = @transform_4, window_bounds = array<i64: 8, 2, 16, 8>}]} {
    %c0 = arith.constant 0 : index
    %c0_0 = arith.constant 0 : index
    %c0_1 = arith.constant 0 : index
    %c0_2 = arith.constant 0 : index
    %0 = vector.load %arg1[%c0, %c0_0, %c0_1, %c0_2] : memref<8x2x16x8xf32, #tpu.memory_space<vmem>>, vector<8x2x16x8xf32>
    %1 = vector.shape_cast %0 : vector<8x2x16x8xf32> to vector<16x16x8xf32>
    %c0_3 = arith.constant 0 : index
    %c0_4 = arith.constant 0 : index
    %c0_5 = arith.constant 0 : index
    %c0_6 = arith.constant 0 : index
    %2 = vector.load %arg2[%c0_3, %c0_4, %c0_5, %c0_6] : memref<8x2x16x8xf32, #tpu.memory_space<vmem>>, vector<8x2x16x8xf32>
    %3 = vector.shape_cast %2 : vector<8x2x16x8xf32> to vector<16x16x8xf32>
    %c0_7 = arith.constant 0 : index
    %c0_8 = arith.constant 0 : index
    %c0_9 = arith.constant 0 : index
    %c0_10 = arith.constant 0 : index
    %4 = vector.load %arg3[%c0_7, %c0_8, %c0_9, %c0_10] : memref<8x2x16x8xf32, #tpu.memory_space<vmem>>, vector<8x2x16x8xf32>
    %5 = vector.shape_cast %4 : vector<8x2x16x8xf32> to vector<16x16x8xf32>
    "tpu.trace_start"() <{level = 10 : i32, message = "gsd,gtd->gst"}> : () -> ()
    %cst = arith.constant dense<0.000000e+00> : vector<16x16x16xf32>
    %6 = tpu.matmul %1, %3, %cst {dimension_numbers = #tpu.dot_dimension_numbers<[2], [2], [1], [1], [0, 0, 0, 1, 1, 1], [0], [0]>} : vector<16x16x8xf32>, vector<16x16x8xf32>, vector<16x16x16xf32> -> vector<16x16x16xf32>
    "tpu.trace_stop"() : () -> ()
    %cst_11 = arith.constant 0.353553385 : f32
    %7 = vector.broadcast %cst_11 : f32 to vector<16x16x16xf32>
    %8 = arith.mulf %6, %7 : vector<16x16x16xf32>
    %9 = vector.shape_cast %8 : vector<16x16x16xf32> to vector<8x2x16x16xf32>
    %c0_12 = arith.constant 0 : index
    %c0_13 = arith.constant 0 : index
    %c0_14 = arith.constant 0 : index
    %10 = vector.load %arg4[%c0_12, %c0_13, %c0_14] : memref<2x16x16xf32, #tpu.memory_space<vmem>>, vector<2x16x16xf32>
    %11 = vector.shape_cast %10 : vector<2x16x16xf32> to vector<1x2x16x16xf32>
    %12 = vector.broadcast %11 : vector<1x2x16x16xf32> to vector<8x2x16x16xf32>
    %13 = arith.addf %9, %12 : vector<8x2x16x16xf32>
    %cst_15 = arith.constant dense<0xFF800000> : vector<8x2x16xf32>
    %14 = vector.multi_reduction <maximumf>, %13, %cst_15 [3] : vector<8x2x16x16xf32> to vector<8x2x16xf32>
    %15 = vector.shape_cast %14 : vector<8x2x16xf32> to vector<8x2x16x1xf32>
    %16 = vector.broadcast %15 : vector<8x2x16x1xf32> to vector<8x2x16x16xf32>
    %17 = arith.subf %13, %16 : vector<8x2x16x16xf32>
    %18 = math.exp %17 : vector<8x2x16x16xf32>
    %cst_16 = arith.constant dense<0.000000e+00> : vector<8x2x16xf32>
    %19 = vector.multi_reduction <add>, %18, %cst_16 [3] : vector<8x2x16x16xf32> to vector<8x2x16xf32>
    %20 = vector.shape_cast %19 : vector<8x2x16xf32> to vector<8x2x16x1xf32>
    %21 = tpu.reciprocal %20 {approx = true} : vector<8x2x16x1xf32> -> vector<8x2x16x1xf32>
    %22 = vector.broadcast %21 : vector<8x2x16x1xf32> to vector<8x2x16x16xf32>
    %23 = arith.mulf %18, %22 : vector<8x2x16x16xf32>
    %24 = vector.shape_cast %23 : vector<8x2x16x16xf32> to vector<16x16x16xf32>
    "tpu.trace_start"() <{level = 10 : i32, message = "gst,gtd->gsd"}> : () -> ()
    %cst_17 = arith.constant dense<0.000000e+00> : vector<16x16x8xf32>
    %25 = tpu.matmul %24, %5, %cst_17 {dimension_numbers = #tpu.dot_dimension_numbers<[2], [1], [1], [2], [0, 0, 0, 1, 1, 2], [0], [0]>} : vector<16x16x16xf32>, vector<16x16x8xf32>, vector<16x16x8xf32> -> vector<16x16x8xf32>
    "tpu.trace_stop"() : () -> ()
    %26 = vector.shape_cast %25 : vector<16x16x8xf32> to vector<8x2x16x8xf32>
    %c0_18 = arith.constant 0 : index
    %c0_19 = arith.constant 0 : index
    %c0_20 = arith.constant 0 : index
    %c0_21 = arith.constant 0 : index
    %27 = vector.load %arg5[%c0_18, %c0_19, %c0_20, %c0_21] : memref<8x2x16x8xf32, #tpu.memory_space<vmem>>, vector<8x2x16x8xf32>
    tpu.vector_store %arg5[%c0_18, %c0_19, %c0_20, %c0_21], %26 {strides = array<i32>} : memref<8x2x16x8xf32, #tpu.memory_space<vmem>>, vector<8x2x16x8xf32>,
    return
  }
  func.func @transform_0(%arg0: i32) -> (i32, i32, i32, i32) {
    %c0_i32 = arith.constant 0 : i32
    %c0_i32_0 = arith.constant 0 : i32
    %c0_i32_1 = arith.constant 0 : i32
    %c0_i32_2 = arith.constant 0 : i32
    return %arg0, %c0_i32, %c0_i32_0, %c0_i32_1 : i32, i32, i32, i32
  }
  func.func @transform_1(%arg0: i32) -> (i32, i32, i32, i32) {
    %c0_i32 = arith.constant 0 : i32
    %c0_i32_0 = arith.constant 0 : i32
    %c0_i32_1 = arith.constant 0 : i32
    %c0_i32_2 = arith.constant 0 : i32
    return %arg0, %c0_i32, %c0_i32_0, %c0_i32_1 : i32, i32, i32, i32
  }
  func.func @transform_2(%arg0: i32) -> (i32, i32, i32, i32) {
    %c0_i32 = arith.constant 0 : i32
    %c0_i32_0 = arith.constant 0 : i32
    %c0_i32_1 = arith.constant 0 : i32
    %c0_i32_2 = arith.constant 0 : i32
    return %arg0, %c0_i32, %c0_i32_0, %c0_i32_1 : i32, i32, i32, i32
  }
  func.func @transform_3(%arg0: i32) -> (i32, i32, i32) {
    %c0_i32 = arith.constant 0 : i32
    %c0_i32_0 = arith.constant 0 : i32
    %c0_i32_1 = arith.constant 0 : i32
    %c0_i32_2 = arith.constant 0 : i32
    return %c0_i32, %c0_i32_0, %c0_i32_1 : i32, i32, i32
  }
  func.func @transform_4(%arg0: i32) -> (i32, i32, i32, i32) {
    %c0_i32 = arith.constant 0 : i32
    %c0_i32_0 = arith.constant 0 : i32
    %c0_i32_1 = arith.constant 0 : i32
    %c0_i32_2 = arith.constant 0 : i32
    return %arg0, %c0_i32, %c0_i32_0, %c0_i32_1 : i32, i32, i32, i32
  }
}

module attributes {stable_mosaic.version = 11 : i64} {
  func.func @_linear_kernel(%arg0: i32, %arg1: memref<128x16xf32, #tpu.memory_space<vmem>>, %arg2: memref<16x16xbf16, #tpu.memory_space<vmem>>, %arg3: memref<1x16xf32, #tpu.memory_space<vmem>>, %arg4: memref<128x16xf32, #tpu.memory_space<vmem>>, %arg5: memref<128x16xf32, #tpu.memory_space<vmem>>) attributes {dimension_semantics = [#tpu.dimension_semantics<parallel>], iteration_bounds = array<i64: 1>, scalar_prefetch = 0 : i64, scratch_operands = 0 : i64, tpu.core_type = #tpu.core_type<tc>, window_params = [{transform_indices = @transform_0, window_bounds = array<i64: 128, 16>}, {pipeline_mode = #tpu.pipeline_mode<synchronous>, transform_indices = @transform_1, window_bounds = array<i64: 16, 16>}, {pipeline_mode = #tpu.pipeline_mode<synchronous>, transform_indices = @transform_2, window_bounds = array<i64: 1, 16>}, {transform_indices = @transform_3, window_bounds = array<i64: 128, 16>}, {transform_indices = @transform_4, window_bounds = array<i64: 128, 16>}]} {
    %c0 = arith.constant 0 : index
    %c0_0 = arith.constant 0 : index
    %0 = vector.load %arg1[%c0, %c0_0] : memref<128x16xf32, #tpu.memory_space<vmem>>, vector<128x16xf32>
    %1 = arith.truncf %0 : vector<128x16xf32> to vector<128x16xbf16>
    %c0_1 = arith.constant 0 : index
    %c0_2 = arith.constant 0 : index
    %2 = vector.load %arg2[%c0_1, %c0_2] : memref<16x16xbf16, #tpu.memory_space<vmem>>, vector<16x16xbf16>
    %cst = arith.constant dense<0.000000e+00> : vector<128x16xf32>
    %3 = tpu.matmul %1, %2, %cst {dimension_numbers = #tpu.dot_dimension_numbers<[1], [0], [0], [1], [0, 0, 1, 1], [], []>} : vector<128x16xbf16>, vector<16x16xbf16>, vector<128x16xf32> -> vector<128x16xf32>
    %c0_3 = arith.constant 0 : index
    %c0_4 = arith.constant 0 : index
    %4 = vector.load %arg3[%c0_3, %c0_4] : memref<1x16xf32, #tpu.memory_space<vmem>>, vector<1x16xf32>
    %5 = vector.broadcast %4 : vector<1x16xf32> to vector<128x16xf32>
    %6 = arith.addf %3, %5 : vector<128x16xf32>
    %c0_5 = arith.constant 0 : index
    %c0_6 = arith.constant 0 : index
    %7 = vector.load %arg4[%c0_5, %c0_6] : memref<128x16xf32, #tpu.memory_space<vmem>>, vector<128x16xf32>
    %8 = arith.addf %6, %7 : vector<128x16xf32>
    %c0_7 = arith.constant 0 : index
    %c0_8 = arith.constant 0 : index
    %9 = vector.load %arg5[%c0_7, %c0_8] : memref<128x16xf32, #tpu.memory_space<vmem>>, vector<128x16xf32>
    tpu.vector_store %arg5[%c0_7, %c0_8], %8 {strides = array<i32>} : memref<128x16xf32, #tpu.memory_space<vmem>>, vector<128x16xf32>,
    return
  }
  func.func @transform_0(%arg0: i32) -> (i32, i32) {
    %c0_i32 = arith.constant 0 : i32
    %c0_i32_0 = arith.constant 0 : i32
    return %arg0, %c0_i32 : i32, i32
  }
  func.func @transform_1(%arg0: i32) -> (i32, i32) {
    %c0_i32 = arith.constant 0 : i32
    %c0_i32_0 = arith.constant 0 : i32
    %c0_i32_1 = arith.constant 0 : i32
    return %c0_i32, %c0_i32_0 : i32, i32
  }
  func.func @transform_2(%arg0: i32) -> (i32, i32) {
    %c0_i32 = arith.constant 0 : i32
    %c0_i32_0 = arith.constant 0 : i32
    %c0_i32_1 = arith.constant 0 : i32
    return %c0_i32, %c0_i32_0 : i32, i32
  }
  func.func @transform_3(%arg0: i32) -> (i32, i32) {
    %c0_i32 = arith.constant 0 : i32
    %c0_i32_0 = arith.constant 0 : i32
    return %arg0, %c0_i32 : i32, i32
  }
  func.func @transform_4(%arg0: i32) -> (i32, i32) {
    %c0_i32 = arith.constant 0 : i32
    %c0_i32_0 = arith.constant 0 : i32
    return %arg0, %c0_i32 : i32, i32
  }
}

module attributes {stable_mosaic.version = 11 : i64} {
  func.func @_dwconv_kernel(%arg0: i32, %arg1: memref<1x8x8x16xf32, #tpu.memory_space<vmem>>, %arg2: memref<1x1x1x16xf32, #tpu.memory_space<vmem>>, %arg3: memref<1x1x1x16xf32, #tpu.memory_space<vmem>>, %arg4: memref<16x16xf32, #tpu.memory_space<vmem>>, %arg5: memref<1x8x8x16xf32, #tpu.memory_space<vmem>>, %arg6: memref<1x11x18x16xf32, #tpu.memory_space<vmem>>) attributes {dimension_semantics = [#tpu.dimension_semantics<parallel>], iteration_bounds = array<i64: 2>, scalar_prefetch = 0 : i64, scratch_operands = 1 : i64, tpu.core_type = #tpu.core_type<tc>, window_params = [{transform_indices = @transform_0, window_bounds = array<i64: 1, 8, 8, 16>}, {pipeline_mode = #tpu.pipeline_mode<synchronous>, transform_indices = @transform_1, window_bounds = array<i64: 1, 1, 1, 16>}, {pipeline_mode = #tpu.pipeline_mode<synchronous>, transform_indices = @transform_2, window_bounds = array<i64: 1, 1, 1, 16>}, {pipeline_mode = #tpu.pipeline_mode<synchronous>, transform_indices = @transform_3, window_bounds = array<i64: 16, 16>}, {transform_indices = @transform_4, window_bounds = array<i64: 1, 8, 8, 16>}]} {
    %c0 = arith.constant 0 : index
    %c0_0 = arith.constant 0 : index
    %c0_1 = arith.constant 0 : index
    %c0_2 = arith.constant 0 : index
    %0 = vector.load %arg1[%c0, %c0_0, %c0_1, %c0_2] : memref<1x8x8x16xf32, #tpu.memory_space<vmem>>, vector<1x8x8x16xf32>
    %cst = arith.constant 0.000000e+00 : f32
    %1 = vector.broadcast %cst : f32 to vector<1x11x18x16xf32>
    %c0_3 = arith.constant 0 : index
    %c0_4 = arith.constant 0 : index
    %c0_5 = arith.constant 0 : index
    %c0_6 = arith.constant 0 : index
    %2 = vector.load %arg6[%c0_3, %c0_4, %c0_5, %c0_6] : memref<1x11x18x16xf32, #tpu.memory_space<vmem>>, vector<1x11x18x16xf32>
    tpu.vector_store %arg6[%c0_3, %c0_4, %c0_5, %c0_6], %1 {strides = array<i32>} : memref<1x11x18x16xf32, #tpu.memory_space<vmem>>, vector<1x11x18x16xf32>,
    %c0_7 = arith.constant 0 : index
    %c0_8 = arith.constant 0 : index
    %c0_9 = arith.constant 0 : index
    %c0_10 = arith.constant 0 : index
    %3 = vector.load %arg2[%c0_7, %c0_8, %c0_9, %c0_10] : memref<1x1x1x16xf32, #tpu.memory_space<vmem>>, vector<1x1x1x16xf32>
    %4 = vector.broadcast %3 : vector<1x1x1x16xf32> to vector<1x8x8x16xf32>
    %5 = arith.mulf %0, %4 : vector<1x8x8x16xf32>
    %c0_11 = arith.constant 0 : index
    %c0_12 = arith.constant 0 : index
    %c0_13 = arith.constant 0 : index
    %c0_14 = arith.constant 0 : index
    %6 = vector.load %arg3[%c0_11, %c0_12, %c0_13, %c0_14] : memref<1x1x1x16xf32, #tpu.memory_space<vmem>>, vector<1x1x1x16xf32>
    %7 = vector.broadcast %6 : vector<1x1x1x16xf32> to vector<1x8x8x16xf32>
    %8 = arith.addf %5, %7 : vector<1x8x8x16xf32>
    %c0_15 = arith.constant 0 : index
    %c1 = arith.constant 1 : index
    %c8 = arith.constant 8 : index
    %c0_16 = arith.constant 0 : index
    %9 = vector.load %arg6[%c0_15, %c1, %c8, %c0_16] : memref<1x11x18x16xf32, #tpu.memory_space<vmem>>, vector<1x8x8x16xf32>
    tpu.vector_store %arg6[%c0_15, %c1, %c8, %c0_16], %8 {strides = array<i32>} : memref<1x11x18x16xf32, #tpu.memory_space<vmem>>, vector<1x8x8x16xf32>,
    %c0_17 = arith.constant 0 : index
    %c0_18 = arith.constant 0 : index
    %c0_19 = arith.constant 0 : index
    %c0_20 = arith.constant 0 : index
    %10 = vector.load %arg6[%c0_17, %c0_18, %c0_19, %c0_20] : memref<1x11x18x16xf32, #tpu.memory_space<vmem>>, vector<1x11x18x16xf32>
    %c0_21 = arith.constant 0 : index
    %c0_22 = arith.constant 0 : index
    %11 = vector.load %arg4[%c0_21, %c0_22] : memref<16x16xf32, #tpu.memory_space<vmem>>, vector<1x16xf32>
    %12 = vector.shape_cast %11 : vector<1x16xf32> to vector<1x1x1x16xf32>
    %13 = vector.extract_strided_slice %10 {offsets = [0, 0, 7, 0], sizes = [1, 8, 8, 16], strides = [1, 1, 1, 1]} : vector<1x11x18x16xf32> to vector<1x8x8x16xf32>
    %14 = vector.broadcast %12 : vector<1x1x1x16xf32> to vector<1x8x8x16xf32>
    %15 = arith.mulf %13, %14 : vector<1x8x8x16xf32>
    %16 = arith.addf %0, %15 : vector<1x8x8x16xf32>
    %c1_23 = arith.constant 1 : index
    %c0_24 = arith.constant 0 : index
    %17 = vector.load %arg4[%c1_23, %c0_24] : memref<16x16xf32, #tpu.memory_space<vmem>>, vector<1x16xf32>
    %18 = vector.shape_cast %17 : vector<1x16xf32> to vector<1x1x1x16xf32>
    %19 = vector.extract_strided_slice %10 {offsets = [0, 0, 8, 0], sizes = [1, 8, 8, 16], strides = [1, 1, 1, 1]} : vector<1x11x18x16xf32> to vector<1x8x8x16xf32>
    %20 = vector.broadcast %18 : vector<1x1x1x16xf32> to vector<1x8x8x16xf32>
    %21 = arith.mulf %19, %20 : vector<1x8x8x16xf32>
    %22 = arith.addf %16, %21 : vector<1x8x8x16xf32>
    %c2 = arith.constant 2 : index
    %c0_25 = arith.constant 0 : index
    %23 = vector.load %arg4[%c2, %c0_25] : memref<16x16xf32, #tpu.memory_space<vmem>>, vector<1x16xf32>
    %24 = vector.shape_cast %23 : vector<1x16xf32> to vector<1x1x1x16xf32>
    %25 = vector.extract_strided_slice %10 {offsets = [0, 0, 9, 0], sizes = [1, 8, 8, 16], strides = [1, 1, 1, 1]} : vector<1x11x18x16xf32> to vector<1x8x8x16xf32>
    %26 = vector.broadcast %24 : vector<1x1x1x16xf32> to vector<1x8x8x16xf32>
    %27 = arith.mulf %25, %26 : vector<1x8x8x16xf32>
    %28 = arith.addf %22, %27 : vector<1x8x8x16xf32>
    %c3 = arith.constant 3 : index
    %c0_26 = arith.constant 0 : index
    %29 = vector.load %arg4[%c3, %c0_26] : memref<16x16xf32, #tpu.memory_space<vmem>>, vector<1x16xf32>
    %30 = vector.shape_cast %29 : vector<1x16xf32> to vector<1x1x1x16xf32>
    %31 = vector.extract_strided_slice %10 {offsets = [0, 0, 10, 0], sizes = [1, 8, 8, 16], strides = [1, 1, 1, 1]} : vector<1x11x18x16xf32> to vector<1x8x8x16xf32>
    %32 = vector.broadcast %30 : vector<1x1x1x16xf32> to vector<1x8x8x16xf32>
    %33 = arith.mulf %31, %32 : vector<1x8x8x16xf32>
    %34 = arith.addf %28, %33 : vector<1x8x8x16xf32>
    %c4 = arith.constant 4 : index
    %c0_27 = arith.constant 0 : index
    %35 = vector.load %arg4[%c4, %c0_27] : memref<16x16xf32, #tpu.memory_space<vmem>>, vector<1x16xf32>
    %36 = vector.shape_cast %35 : vector<1x16xf32> to vector<1x1x1x16xf32>
    %37 = vector.extract_strided_slice %10 {offsets = [0, 1, 7, 0], sizes = [1, 8, 8, 16], strides = [1, 1, 1, 1]} : vector<1x11x18x16xf32> to vector<1x8x8x16xf32>
    %38 = vector.broadcast %36 : vector<1x1x1x16xf32> to vector<1x8x8x16xf32>
    %39 = arith.mulf %37, %38 : vector<1x8x8x16xf32>
    %40 = arith.addf %34, %39 : vector<1x8x8x16xf32>
    %c5 = arith.constant 5 : index
    %c0_28 = arith.constant 0 : index
    %41 = vector.load %arg4[%c5, %c0_28] : memref<16x16xf32, #tpu.memory_space<vmem>>, vector<1x16xf32>
    %42 = vector.shape_cast %41 : vector<1x16xf32> to vector<1x1x1x16xf32>
    %43 = vector.extract_strided_slice %10 {offsets = [0, 1, 8, 0], sizes = [1, 8, 8, 16], strides = [1, 1, 1, 1]} : vector<1x11x18x16xf32> to vector<1x8x8x16xf32>
    %44 = vector.broadcast %42 : vector<1x1x1x16xf32> to vector<1x8x8x16xf32>
    %45 = arith.mulf %43, %44 : vector<1x8x8x16xf32>
    %46 = arith.addf %40, %45 : vector<1x8x8x16xf32>
    %c6 = arith.constant 6 : index
    %c0_29 = arith.constant 0 : index
    %47 = vector.load %arg4[%c6, %c0_29] : memref<16x16xf32, #tpu.memory_space<vmem>>, vector<1x16xf32>
    %48 = vector.shape_cast %47 : vector<1x16xf32> to vector<1x1x1x16xf32>
    %49 = vector.extract_strided_slice %10 {offsets = [0, 1, 9, 0], sizes = [1, 8, 8, 16], strides = [1, 1, 1, 1]} : vector<1x11x18x16xf32> to vector<1x8x8x16xf32>
    %50 = vector.broadcast %48 : vector<1x1x1x16xf32> to vector<1x8x8x16xf32>
    %51 = arith.mulf %49, %50 : vector<1x8x8x16xf32>
    %52 = arith.addf %46, %51 : vector<1x8x8x16xf32>
    %c7 = arith.constant 7 : index
    %c0_30 = arith.constant 0 : index
    %53 = vector.load %arg4[%c7, %c0_30] : memref<16x16xf32, #tpu.memory_space<vmem>>, vector<1x16xf32>
    %54 = vector.shape_cast %53 : vector<1x16xf32> to vector<1x1x1x16xf32>
    %55 = vector.extract_strided_slice %10 {offsets = [0, 1, 10, 0], sizes = [1, 8, 8, 16], strides = [1, 1, 1, 1]} : vector<1x11x18x16xf32> to vector<1x8x8x16xf32>
    %56 = vector.broadcast %54 : vector<1x1x1x16xf32> to vector<1x8x8x16xf32>
    %57 = arith.mulf %55, %56 : vector<1x8x8x16xf32>
    %58 = arith.addf %52, %57 : vector<1x8x8x16xf32>
    %c8_31 = arith.constant 8 : index
    %c0_32 = arith.constant 0 : index
    %59 = vector.load %arg4[%c8_31, %c0_32] : memref<16x16xf32, #tpu.memory_space<vmem>>, vector<1x16xf32>
    %60 = vector.shape_cast %59 : vector<1x16xf32> to vector<1x1x1x16xf32>
    %61 = vector.extract_strided_slice %10 {offsets = [0, 2, 7, 0], sizes = [1, 8, 8, 16], strides = [1, 1, 1, 1]} : vector<1x11x18x16xf32> to vector<1x8x8x16xf32>
    %62 = vector.broadcast %60 : vector<1x1x1x16xf32> to vector<1x8x8x16xf32>
    %63 = arith.mulf %61, %62 : vector<1x8x8x16xf32>
    %64 = arith.addf %58, %63 : vector<1x8x8x16xf32>
    %c9 = arith.constant 9 : index
    %c0_33 = arith.constant 0 : index
    %65 = vector.load %arg4[%c9, %c0_33] : memref<16x16xf32, #tpu.memory_space<vmem>>, vector<1x16xf32>
    %66 = vector.shape_cast %65 : vector<1x16xf32> to vector<1x1x1x16xf32>
    %67 = vector.extract_strided_slice %10 {offsets = [0, 2, 8, 0], sizes = [1, 8, 8, 16], strides = [1, 1, 1, 1]} : vector<1x11x18x16xf32> to vector<1x8x8x16xf32>
    %68 = vector.broadcast %66 : vector<1x1x1x16xf32> to vector<1x8x8x16xf32>
    %69 = arith.mulf %67, %68 : vector<1x8x8x16xf32>
    %70 = arith.addf %64, %69 : vector<1x8x8x16xf32>
    %c10 = arith.constant 10 : index
    %c0_34 = arith.constant 0 : index
    %71 = vector.load %arg4[%c10, %c0_34] : memref<16x16xf32, #tpu.memory_space<vmem>>, vector<1x16xf32>
    %72 = vector.shape_cast %71 : vector<1x16xf32> to vector<1x1x1x16xf32>
    %73 = vector.extract_strided_slice %10 {offsets = [0, 2, 9, 0], sizes = [1, 8, 8, 16], strides = [1, 1, 1, 1]} : vector<1x11x18x16xf32> to vector<1x8x8x16xf32>
    %74 = vector.broadcast %72 : vector<1x1x1x16xf32> to vector<1x8x8x16xf32>
    %75 = arith.mulf %73, %74 : vector<1x8x8x16xf32>
    %76 = arith.addf %70, %75 : vector<1x8x8x16xf32>
    %c11 = arith.constant 11 : index
    %c0_35 = arith.constant 0 : index
    %77 = vector.load %arg4[%c11, %c0_35] : memref<16x16xf32, #tpu.memory_space<vmem>>, vector<1x16xf32>
    %78 = vector.shape_cast %77 : vector<1x16xf32> to vector<1x1x1x16xf32>
    %79 = vector.extract_strided_slice %10 {offsets = [0, 2, 10, 0], sizes = [1, 8, 8, 16], strides = [1, 1, 1, 1]} : vector<1x11x18x16xf32> to vector<1x8x8x16xf32>
    %80 = vector.broadcast %78 : vector<1x1x1x16xf32> to vector<1x8x8x16xf32>
    %81 = arith.mulf %79, %80 : vector<1x8x8x16xf32>
    %82 = arith.addf %76, %81 : vector<1x8x8x16xf32>
    %c12 = arith.constant 12 : index
    %c0_36 = arith.constant 0 : index
    %83 = vector.load %arg4[%c12, %c0_36] : memref<16x16xf32, #tpu.memory_space<vmem>>, vector<1x16xf32>
    %84 = vector.shape_cast %83 : vector<1x16xf32> to vector<1x1x1x16xf32>
    %85 = vector.extract_strided_slice %10 {offsets = [0, 3, 7, 0], sizes = [1, 8, 8, 16], strides = [1, 1, 1, 1]} : vector<1x11x18x16xf32> to vector<1x8x8x16xf32>
    %86 = vector.broadcast %84 : vector<1x1x1x16xf32> to vector<1x8x8x16xf32>
    %87 = arith.mulf %85, %86 : vector<1x8x8x16xf32>
    %88 = arith.addf %82, %87 : vector<1x8x8x16xf32>
    %c13 = arith.constant 13 : index
    %c0_37 = arith.constant 0 : index
    %89 = vector.load %arg4[%c13, %c0_37] : memref<16x16xf32, #tpu.memory_space<vmem>>, vector<1x16xf32>
    %90 = vector.shape_cast %89 : vector<1x16xf32> to vector<1x1x1x16xf32>
    %91 = vector.extract_strided_slice %10 {offsets = [0, 3, 8, 0], sizes = [1, 8, 8, 16], strides = [1, 1, 1, 1]} : vector<1x11x18x16xf32> to vector<1x8x8x16xf32>
    %92 = vector.broadcast %90 : vector<1x1x1x16xf32> to vector<1x8x8x16xf32>
    %93 = arith.mulf %91, %92 : vector<1x8x8x16xf32>
    %94 = arith.addf %88, %93 : vector<1x8x8x16xf32>
    %c14 = arith.constant 14 : index
    %c0_38 = arith.constant 0 : index
    %95 = vector.load %arg4[%c14, %c0_38] : memref<16x16xf32, #tpu.memory_space<vmem>>, vector<1x16xf32>
    %96 = vector.shape_cast %95 : vector<1x16xf32> to vector<1x1x1x16xf32>
    %97 = vector.extract_strided_slice %10 {offsets = [0, 3, 9, 0], sizes = [1, 8, 8, 16], strides = [1, 1, 1, 1]} : vector<1x11x18x16xf32> to vector<1x8x8x16xf32>
    %98 = vector.broadcast %96 : vector<1x1x1x16xf32> to vector<1x8x8x16xf32>
    %99 = arith.mulf %97, %98 : vector<1x8x8x16xf32>
    %100 = arith.addf %94, %99 : vector<1x8x8x16xf32>
    %c15 = arith.constant 15 : index
    %c0_39 = arith.constant 0 : index
    %101 = vector.load %arg4[%c15, %c0_39] : memref<16x16xf32, #tpu.memory_space<vmem>>, vector<1x16xf32>
    %102 = vector.shape_cast %101 : vector<1x16xf32> to vector<1x1x1x16xf32>
    %103 = vector.extract_strided_slice %10 {offsets = [0, 3, 10, 0], sizes = [1, 8, 8, 16], strides = [1, 1, 1, 1]} : vector<1x11x18x16xf32> to vector<1x8x8x16xf32>
    %104 = vector.broadcast %102 : vector<1x1x1x16xf32> to vector<1x8x8x16xf32>
    %105 = arith.mulf %103, %104 : vector<1x8x8x16xf32>
    %106 = arith.addf %100, %105 : vector<1x8x8x16xf32>
    %c0_40 = arith.constant 0 : index
    %c0_41 = arith.constant 0 : index
    %c0_42 = arith.constant 0 : index
    %c0_43 = arith.constant 0 : index
    %107 = vector.load %arg5[%c0_40, %c0_41, %c0_42, %c0_43] : memref<1x8x8x16xf32, #tpu.memory_space<vmem>>, vector<1x8x8x16xf32>
    tpu.vector_store %arg5[%c0_40, %c0_41, %c0_42, %c0_43], %106 {strides = array<i32>} : memref<1x8x8x16xf32, #tpu.memory_space<vmem>>, vector<1x8x8x16xf32>,
    return
  }
  func.func @transform_0(%arg0: i32) -> (i32, i32, i32, i32) {
    %c0_i32 = arith.constant 0 : i32
    %c0_i32_0 = arith.constant 0 : i32
    %c0_i32_1 = arith.constant 0 : i32
    %c0_i32_2 = arith.constant 0 : i32
    return %arg0, %c0_i32, %c0_i32_0, %c0_i32_1 : i32, i32, i32, i32
  }
  func.func @transform_1(%arg0: i32) -> (i32, i32, i32, i32) {
    %c0_i32 = arith.constant 0 : i32
    %c0_i32_0 = arith.constant 0 : i32
    %c0_i32_1 = arith.constant 0 : i32
    %c0_i32_2 = arith.constant 0 : i32
    %c0_i32_3 = arith.constant 0 : i32
    return %c0_i32, %c0_i32_0, %c0_i32_1, %c0_i32_2 : i32, i32, i32, i32
  }
  func.func @transform_2(%arg0: i32) -> (i32, i32, i32, i32) {
    %c0_i32 = arith.constant 0 : i32
    %c0_i32_0 = arith.constant 0 : i32
    %c0_i32_1 = arith.constant 0 : i32
    %c0_i32_2 = arith.constant 0 : i32
    %c0_i32_3 = arith.constant 0 : i32
    return %c0_i32, %c0_i32_0, %c0_i32_1, %c0_i32_2 : i32, i32, i32, i32
  }
  func.func @transform_3(%arg0: i32) -> (i32, i32) {
    %c0_i32 = arith.constant 0 : i32
    %c0_i32_0 = arith.constant 0 : i32
    %c0_i32_1 = arith.constant 0 : i32
    return %c0_i32, %c0_i32_0 : i32, i32
  }
  func.func @transform_4(%arg0: i32) -> (i32, i32, i32, i32) {
    %c0_i32 = arith.constant 0 : i32
    %c0_i32_0 = arith.constant 0 : i32
    %c0_i32_1 = arith.constant 0 : i32
    %c0_i32_2 = arith.constant 0 : i32
    return %arg0, %c0_i32, %c0_i32_0, %c0_i32_1 : i32, i32, i32, i32
  }
}

module attributes {stable_mosaic.version = 11 : i64} {
  func.func @_mlp_kernel(%arg0: i32, %arg1: memref<128x16xf32, #tpu.memory_space<vmem>>, %arg2: memref<1x16xf32, #tpu.memory_space<vmem>>, %arg3: memref<1x16xf32, #tpu.memory_space<vmem>>, %arg4: memref<16x64xbf16, #tpu.memory_space<vmem>>, %arg5: memref<1x64xf32, #tpu.memory_space<vmem>>, %arg6: memref<64x16xbf16, #tpu.memory_space<vmem>>, %arg7: memref<1x16xf32, #tpu.memory_space<vmem>>, %arg8: memref<128x16xf32, #tpu.memory_space<vmem>>) attributes {dimension_semantics = [#tpu.dimension_semantics<parallel>], iteration_bounds = array<i64: 1>, scalar_prefetch = 0 : i64, scratch_operands = 0 : i64, tpu.core_type = #tpu.core_type<tc>, window_params = [{transform_indices = @transform_0, window_bounds = array<i64: 128, 16>}, {pipeline_mode = #tpu.pipeline_mode<synchronous>, transform_indices = @transform_1, window_bounds = array<i64: 1, 16>}, {pipeline_mode = #tpu.pipeline_mode<synchronous>, transform_indices = @transform_2, window_bounds = array<i64: 1, 16>}, {pipeline_mode = #tpu.pipeline_mode<synchronous>, transform_indices = @transform_3, window_bounds = array<i64: 16, 64>}, {pipeline_mode = #tpu.pipeline_mode<synchronous>, transform_indices = @transform_4, window_bounds = array<i64: 1, 64>}, {pipeline_mode = #tpu.pipeline_mode<synchronous>, transform_indices = @transform_5, window_bounds = array<i64: 64, 16>}, {pipeline_mode = #tpu.pipeline_mode<synchronous>, transform_indices = @transform_6, window_bounds = array<i64: 1, 16>}, {transform_indices = @transform_7, window_bounds = array<i64: 128, 16>}]} {
    %c0 = arith.constant 0 : index
    %c0_0 = arith.constant 0 : index
    %0 = vector.load %arg1[%c0, %c0_0] : memref<128x16xf32, #tpu.memory_space<vmem>>, vector<128x16xf32>
    %c0_1 = arith.constant 0 : index
    %c0_2 = arith.constant 0 : index
    %1 = vector.load %arg2[%c0_1, %c0_2] : memref<1x16xf32, #tpu.memory_space<vmem>>, vector<1x16xf32>
    %2 = vector.broadcast %1 : vector<1x16xf32> to vector<128x16xf32>
    %3 = arith.mulf %0, %2 : vector<128x16xf32>
    %c0_3 = arith.constant 0 : index
    %c0_4 = arith.constant 0 : index
    %4 = vector.load %arg3[%c0_3, %c0_4] : memref<1x16xf32, #tpu.memory_space<vmem>>, vector<1x16xf32>
    %5 = vector.broadcast %4 : vector<1x16xf32> to vector<128x16xf32>
    %6 = arith.addf %3, %5 : vector<128x16xf32>
    %7 = arith.truncf %6 : vector<128x16xf32> to vector<128x16xbf16>
    %c0_5 = arith.constant 0 : index
    %c0_6 = arith.constant 0 : index
    %8 = vector.load %arg4[%c0_5, %c0_6] : memref<16x64xbf16, #tpu.memory_space<vmem>>, vector<16x64xbf16>
    %cst = arith.constant dense<0.000000e+00> : vector<128x64xf32>
    %9 = tpu.matmul %7, %8, %cst {dimension_numbers = #tpu.dot_dimension_numbers<[1], [0], [0], [1], [0, 0, 1, 1], [], []>} : vector<128x16xbf16>, vector<16x64xbf16>, vector<128x64xf32> -> vector<128x64xf32>
    %c0_7 = arith.constant 0 : index
    %c0_8 = arith.constant 0 : index
    %10 = vector.load %arg5[%c0_7, %c0_8] : memref<1x64xf32, #tpu.memory_space<vmem>>, vector<1x64xf32>
    %11 = vector.broadcast %10 : vector<1x64xf32> to vector<128x64xf32>
    %12 = arith.addf %9, %11 : vector<128x64xf32>
    %cst_9 = arith.constant 0.000000e+00 : f32
    %cst_10 = arith.constant 6.000000e+00 : f32
    %13 = vector.broadcast %cst_9 : f32 to vector<128x64xf32>
    %14 = arith.maximumf %13, %12 : vector<128x64xf32>
    %15 = vector.broadcast %cst_10 : f32 to vector<128x64xf32>
    %16 = arith.minimumf %15, %14 : vector<128x64xf32>
    %17 = arith.truncf %16 : vector<128x64xf32> to vector<128x64xbf16>
    %c0_11 = arith.constant 0 : index
    %c0_12 = arith.constant 0 : index
    %18 = vector.load %arg6[%c0_11, %c0_12] : memref<64x16xbf16, #tpu.memory_space<vmem>>, vector<64x16xbf16>
    %cst_13 = arith.constant dense<0.000000e+00> : vector<128x16xf32>
    %19 = tpu.matmul %17, %18, %cst_13 {dimension_numbers = #tpu.dot_dimension_numbers<[1], [0], [0], [1], [0, 0, 1, 1], [], []>} : vector<128x64xbf16>, vector<64x16xbf16>, vector<128x16xf32> -> vector<128x16xf32>
    %c0_14 = arith.constant 0 : index
    %c0_15 = arith.constant 0 : index
    %20 = vector.load %arg7[%c0_14, %c0_15] : memref<1x16xf32, #tpu.memory_space<vmem>>, vector<1x16xf32>
    %21 = vector.broadcast %20 : vector<1x16xf32> to vector<128x16xf32>
    %22 = arith.addf %19, %21 : vector<128x16xf32>
    %c0_16 = arith.constant 0 : index
    %c0_17 = arith.constant 0 : index
    %23 = vector.load %arg1[%c0_16, %c0_17] : memref<128x16xf32, #tpu.memory_space<vmem>>, vector<128x16xf32>
    %24 = arith.addf %22, %23 : vector<128x16xf32>
    %c0_18 = arith.constant 0 : index
    %c0_19 = arith.constant 0 : index
    %25 = vector.load %arg8[%c0_18, %c0_19] : memref<128x16xf32, #tpu.memory_space<vmem>>, vector<128x16xf32>
    tpu.vector_store %arg8[%c0_18, %c0_19], %24 {strides = array<i32>} : memref<128x16xf32, #tpu.memory_space<vmem>>, vector<128x16xf32>,
    return
  }
  func.func @transform_0(%arg0: i32) -> (i32, i32) {
    %c0_i32 = arith.constant 0 : i32
    %c0_i32_0 = arith.constant 0 : i32
    return %arg0, %c0_i32 : i32, i32
  }
  func.func @transform_1(%arg0: i32) -> (i32, i32) {
    %c0_i32 = arith.constant 0 : i32
    %c0_i32_0 = arith.constant 0 : i32
    %c0_i32_1 = arith.constant 0 : i32
    return %c0_i32, %c0_i32_0 : i32, i32
  }
  func.func @transform_2(%arg0: i32) -> (i32, i32) {
    %c0_i32 = arith.constant 0 : i32
    %c0_i32_0 = arith.constant 0 : i32
    %c0_i32_1 = arith.constant 0 : i32
    return %c0_i32, %c0_i32_0 : i32, i32
  }
  func.func @transform_3(%arg0: i32) -> (i32, i32) {
    %c0_i32 = arith.constant 0 : i32
    %c0_i32_0 = arith.constant 0 : i32
    %c0_i32_1 = arith.constant 0 : i32
    return %c0_i32, %c0_i32_0 : i32, i32
  }
  func.func @transform_4(%arg0: i32) -> (i32, i32) {
    %c0_i32 = arith.constant 0 : i32
    %c0_i32_0 = arith.constant 0 : i32
    %c0_i32_1 = arith.constant 0 : i32
    return %c0_i32, %c0_i32_0 : i32, i32
  }
  func.func @transform_5(%arg0: i32) -> (i32, i32) {
    %c0_i32 = arith.constant 0 : i32
    %c0_i32_0 = arith.constant 0 : i32
    %c0_i32_1 = arith.constant 0 : i32
    return %c0_i32, %c0_i32_0 : i32, i32
  }
  func.func @transform_6(%arg0: i32) -> (i32, i32) {
    %c0_i32 = arith.constant 0 : i32
    %c0_i32_0 = arith.constant 0 : i32
    %c0_i32_1 = arith.constant 0 : i32
    return %c0_i32, %c0_i32_0 : i32, i32
  }
  func.func @transform_7(%arg0: i32) -> (i32, i32) {
    %c0_i32 = arith.constant 0 : i32
    %c0_i32_0 = arith.constant 0 : i32
    return %arg0, %c0_i32 : i32, i32
  }
}

module attributes {stable_mosaic.version = 11 : i64} {
  func.func @_mlp_kernel(%arg0: i32, %arg1: memref<128x16xf32, #tpu.memory_space<vmem>>, %arg2: memref<1x16xf32, #tpu.memory_space<vmem>>, %arg3: memref<1x16xf32, #tpu.memory_space<vmem>>, %arg4: memref<16x64xbf16, #tpu.memory_space<vmem>>, %arg5: memref<1x64xf32, #tpu.memory_space<vmem>>, %arg6: memref<64x16xbf16, #tpu.memory_space<vmem>>, %arg7: memref<1x16xf32, #tpu.memory_space<vmem>>, %arg8: memref<128x16xf32, #tpu.memory_space<vmem>>) attributes {dimension_semantics = [#tpu.dimension_semantics<parallel>], iteration_bounds = array<i64: 1>, scalar_prefetch = 0 : i64, scratch_operands = 0 : i64, tpu.core_type = #tpu.core_type<tc>, window_params = [{transform_indices = @transform_0, window_bounds = array<i64: 128, 16>}, {pipeline_mode = #tpu.pipeline_mode<synchronous>, transform_indices = @transform_1, window_bounds = array<i64: 1, 16>}, {pipeline_mode = #tpu.pipeline_mode<synchronous>, transform_indices = @transform_2, window_bounds = array<i64: 1, 16>}, {pipeline_mode = #tpu.pipeline_mode<synchronous>, transform_indices = @transform_3, window_bounds = array<i64: 16, 64>}, {pipeline_mode = #tpu.pipeline_mode<synchronous>, transform_indices = @transform_4, window_bounds = array<i64: 1, 64>}, {pipeline_mode = #tpu.pipeline_mode<synchronous>, transform_indices = @transform_5, window_bounds = array<i64: 64, 16>}, {pipeline_mode = #tpu.pipeline_mode<synchronous>, transform_indices = @transform_6, window_bounds = array<i64: 1, 16>}, {transform_indices = @transform_7, window_bounds = array<i64: 128, 16>}]} {
    %c0 = arith.constant 0 : index
    %c0_0 = arith.constant 0 : index
    %0 = vector.load %arg1[%c0, %c0_0] : memref<128x16xf32, #tpu.memory_space<vmem>>, vector<128x16xf32>
    %c0_1 = arith.constant 0 : index
    %c0_2 = arith.constant 0 : index
    %1 = vector.load %arg2[%c0_1, %c0_2] : memref<1x16xf32, #tpu.memory_space<vmem>>, vector<1x16xf32>
    %2 = vector.broadcast %1 : vector<1x16xf32> to vector<128x16xf32>
    %3 = arith.mulf %0, %2 : vector<128x16xf32>
    %c0_3 = arith.constant 0 : index
    %c0_4 = arith.constant 0 : index
    %4 = vector.load %arg3[%c0_3, %c0_4] : memref<1x16xf32, #tpu.memory_space<vmem>>, vector<1x16xf32>
    %5 = vector.broadcast %4 : vector<1x16xf32> to vector<128x16xf32>
    %6 = arith.addf %3, %5 : vector<128x16xf32>
    %7 = arith.truncf %6 : vector<128x16xf32> to vector<128x16xbf16>
    %c0_5 = arith.constant 0 : index
    %c0_6 = arith.constant 0 : index
    %8 = vector.load %arg4[%c0_5, %c0_6] : memref<16x64xbf16, #tpu.memory_space<vmem>>, vector<16x64xbf16>
    %cst = arith.constant dense<0.000000e+00> : vector<128x64xf32>
    %9 = tpu.matmul %7, %8, %cst {dimension_numbers = #tpu.dot_dimension_numbers<[1], [0], [0], [1], [0, 0, 1, 1], [], []>} : vector<128x16xbf16>, vector<16x64xbf16>, vector<128x64xf32> -> vector<128x64xf32>
    %c0_7 = arith.constant 0 : index
    %c0_8 = arith.constant 0 : index
    %10 = vector.load %arg5[%c0_7, %c0_8] : memref<1x64xf32, #tpu.memory_space<vmem>>, vector<1x64xf32>
    %11 = vector.broadcast %10 : vector<1x64xf32> to vector<128x64xf32>
    %12 = arith.addf %9, %11 : vector<128x64xf32>
    %cst_9 = arith.constant 0.000000e+00 : f32
    %cst_10 = arith.constant 6.000000e+00 : f32
    %13 = vector.broadcast %cst_9 : f32 to vector<128x64xf32>
    %14 = arith.maximumf %13, %12 : vector<128x64xf32>
    %15 = vector.broadcast %cst_10 : f32 to vector<128x64xf32>
    %16 = arith.minimumf %15, %14 : vector<128x64xf32>
    %17 = arith.truncf %16 : vector<128x64xf32> to vector<128x64xbf16>
    %c0_11 = arith.constant 0 : index
    %c0_12 = arith.constant 0 : index
    %18 = vector.load %arg6[%c0_11, %c0_12] : memref<64x16xbf16, #tpu.memory_space<vmem>>, vector<64x16xbf16>
    %cst_13 = arith.constant dense<0.000000e+00> : vector<128x16xf32>
    %19 = tpu.matmul %17, %18, %cst_13 {dimension_numbers = #tpu.dot_dimension_numbers<[1], [0], [0], [1], [0, 0, 1, 1], [], []>} : vector<128x64xbf16>, vector<64x16xbf16>, vector<128x16xf32> -> vector<128x16xf32>
    %c0_14 = arith.constant 0 : index
    %c0_15 = arith.constant 0 : index
    %20 = vector.load %arg7[%c0_14, %c0_15] : memref<1x16xf32, #tpu.memory_space<vmem>>, vector<1x16xf32>
    %21 = vector.broadcast %20 : vector<1x16xf32> to vector<128x16xf32>
    %22 = arith.addf %19, %21 : vector<128x16xf32>
    %c0_16 = arith.constant 0 : index
    %c0_17 = arith.constant 0 : index
    %23 = vector.load %arg1[%c0_16, %c0_17] : memref<128x16xf32, #tpu.memory_space<vmem>>, vector<128x16xf32>
    %24 = arith.addf %22, %23 : vector<128x16xf32>
    %c0_18 = arith.constant 0 : index
    %c0_19 = arith.constant 0 : index
    %25 = vector.load %arg8[%c0_18, %c0_19] : memref<128x16xf32, #tpu.memory_space<vmem>>, vector<128x16xf32>
    tpu.vector_store %arg8[%c0_18, %c0_19], %24 {strides = array<i32>} : memref<128x16xf32, #tpu.memory_space<vmem>>, vector<128x16xf32>,
    return
  }
  func.func @transform_0(%arg0: i32) -> (i32, i32) {
    %c0_i32 = arith.constant 0 : i32
    %c0_i32_0 = arith.constant 0 : i32
    return %arg0, %c0_i32 : i32, i32
  }
  func.func @transform_1(%arg0: i32) -> (i32, i32) {
    %c0_i32 = arith.constant 0 : i32
    %c0_i32_0 = arith.constant 0 : i32
    %c0_i32_1 = arith.constant 0 : i32
    return %c0_i32, %c0_i32_0 : i32, i32
  }
  func.func @transform_2(%arg0: i32) -> (i32, i32) {
    %c0_i32 = arith.constant 0 : i32
    %c0_i32_0 = arith.constant 0 : i32
    %c0_i32_1 = arith.constant 0 : i32
    return %c0_i32, %c0_i32_0 : i32, i32
  }
  func.func @transform_3(%arg0: i32) -> (i32, i32) {
    %c0_i32 = arith.constant 0 : i32
    %c0_i32_0 = arith.constant 0 : i32
    %c0_i32_1 = arith.constant 0 : i32
    return %c0_i32, %c0_i32_0 : i32, i32
  }
  func.func @transform_4(%arg0: i32) -> (i32, i32) {
    %c0_i32 = arith.constant 0 : i32
    %c0_i32_0 = arith.constant 0 : i32
    %c0_i32_1 = arith.constant 0 : i32
    return %c0_i32, %c0_i32_0 : i32, i32
  }
  func.func @transform_5(%arg0: i32) -> (i32, i32) {
    %c0_i32 = arith.constant 0 : i32
    %c0_i32_0 = arith.constant 0 : i32
    %c0_i32_1 = arith.constant 0 : i32
    return %c0_i32, %c0_i32_0 : i32, i32
  }
  func.func @transform_6(%arg0: i32) -> (i32, i32) {
    %c0_i32 = arith.constant 0 : i32
    %c0_i32_0 = arith.constant 0 : i32
    %c0_i32_1 = arith.constant 0 : i32
    return %c0_i32, %c0_i32_0 : i32, i32
  }
  func.func @transform_7(%arg0: i32) -> (i32, i32) {
    %c0_i32 = arith.constant 0 : i32
    %c0_i32_0 = arith.constant 0 : i32
    return %arg0, %c0_i32 : i32, i32
  }
}

</mosaic_0001>

<bundles_post_ra>
// kernel: stage_forward.12
= control target key start
LH: loop header
LB: loop body
LE: loop exit
PB: predicated region body
PF: predicated region fallthrough
CT: control target
= control target key end

     0   :  { %vm96_vm0 = vcmask 130048   ;;  %vm218_vm1 = vcmask 392192   ;;  %s434_s3 = inlined_call_operand.vmem [shape: bf16[16,48], index: 3, kind: input, shape index: {}]   ;;  %s435_s0 = inlined_call_operand.vmem [shape: f32[128,16], index: 0, kind: input, shape index: {}]   ;;  %s436_s1 = inlined_call_operand.vmem [shape: f32[1,16], index: 1, kind: input, shape index: {}]   ;;  %s437_s2 = inlined_call_operand.vmem [shape: f32[1,16], index: 2, kind: input, shape index: {}]   ;;  %s438_s4 = inlined_call_operand.vmem [shape: f32[128,48], index: 4, kind: output, shape index: {}]  }
   0x1   :  { %v279_v0 = vld [vmem:[%s434_s3] sm:$0xff]   ;;  %v19_v2 = vld [vmem:[%s435_s0 + $0x8] sm:$0xff]  ;;  %v20_v11 = vld [vmem:[%s435_s0 + $0x10] sm:$0xff] }
   0x2   :  { %v18_v1 = vld [vmem:[%s435_s0] sm:$0xff]  ;;  %259 = vmatprep.subr.bf16.mxu0 %v279_v0  ;;  %277 = vmatprep.subr.bf16.mxu1 %v279_v0  ;;  %v27_v8 = vld [vmem:[%s435_s0 + $0x48] sm:$0xff]  ;;  %v21_v12 = vld [vmem:[%s435_s0 + $0x18] sm:$0xff] }
   0x3   :  { %v239_v3 = vld [vmem:[%s436_s1] ss:$0 sm:$0xff]  ;;  %260 = vmatpush3.bf16.msra.mxu0 %v279_v0  ;;  %278 = vmatpush3.bf16.msra.mxu1 %v279_v0  ;;  %v28_v13 = vld [vmem:[%s435_s0 + $0x50] sm:$0xff]  ;;  %v29_v18 = vld [vmem:[%s435_s0 + $0x58] sm:$0xff] }
   0x4   :  { %v41_v4 = vmul.f32 %v239_v3, %v18_v1  ;;  %v42_v5 = vmul.f32 %v239_v3, %v19_v2  ;;  %v240_v6 = vld [vmem:[%s437_s2] ss:$0 sm:$0xff]  ;;  %v50_v10 = vmul.f32 %v239_v3, %v27_v8  ;;  %v43_v16 = vmul.f32 %v239_v3, %v20_v11  ;;  %v23_v20 = vld [vmem:[%s435_s0 + $0x28] sm:$0xff]  ;;  %v24_v31 = vld [vmem:[%s435_s0 + $0x30] sm:$0xff] }
   0x5   :  { %v26_v7 = vld [vmem:[%s435_s0 + $0x40] sm:$0xff]  ;;  %v44_v17 = vmul.f32 %v239_v3, %v21_v12  ;;  %v51_v23 = vmul.f32 %v239_v3, %v28_v13  ;;  %v52_v24 = vmul.f32 %v239_v3, %v29_v18  ;;  %v31_v26 = vld [vmem:[%s435_s0 + $0x68] sm:$0xff]  ;;  %v25_v32 = vld [vmem:[%s435_s0 + $0x38] sm:$0xff]  ;;  %v46_v36 = vmul.f32 %v239_v3, %v23_v20 }
   0x6   :  { %v49_v9 = vmul.f32 %v239_v3, %v26_v7  ;;  %v64_v14 = vadd.f32 %v240_v6, %v41_v4  ;;  %v65_v15 = vadd.f32 %v240_v6, %v42_v5  ;;  %v22_v19 = vld [vmem:[%s435_s0 + $0x20] sm:$0xff]  ;;  %v73_v22 = vadd.f32 %v240_v6, %v50_v10  ;;  %v32_v37 = vld [vmem:[%s435_s0 + $0x70] sm:$0xff]  ;;  %v33_v38 = vld [vmem:[%s435_s0 + $0x78] sm:$0xff] }
   0x7   :  { %v30_v25 = vld [vmem:[%s435_s0 + $0x60] sm:$0xff]  ;;  %v66_v28 = vadd.f32 %v240_v6, %v43_v16  ;;  %v67_v29 = vadd.f32 %v240_v6, %v44_v17  ;;  %v45_v30 = vmul.f32 %v239_v3, %v22_v19  ;;  %v74_v34 = vadd.f32 %v240_v6, %v51_v23 }
   0x8   :  { %v72_v21 = vadd.f32 %v240_v6, %v49_v9  ;;  %v80_v27 = vpack.c.bf16 %v65_v15, %v64_v14  ;;  %v75_v35 = vadd.f32 %v240_v6, %v52_v24  ;;  %v53_v41 = vmul.f32 %v239_v3, %v30_v25 }
   0x9   :  { %v81_v39 = vpack.c.bf16 %v67_v29, %v66_v28  ;;  %v68_v40 = vadd.f32 %v240_v6, %v45_v30  ;;  %v54_v42 = vmul.f32 %v239_v3, %v31_v26  ;;  %v69_v44 = vadd.f32 %v240_v6, %v46_v36 }
   0xa   :  { %v84_v33 = vpack.c.bf16 %v73_v22, %v72_v21  ;;  %261 = vmatprep.mubr.msk.bf16.mxu0 %vm96_vm0, %v80_v27  ;;  %v85_v43 = vpack.c.bf16 %v75_v35, %v74_v34  ;;  %v47_v45 = vmul.f32 %v239_v3, %v24_v31  ;;  %v48_v46 = vmul.f32 %v239_v3, %v25_v32 }
   0xb   :  { %262 = vmatmul.mubr.msk.bf16.vlgmr.msra.gmra.mxu0 %vm96_vm0, %v81_v39  ;;  %v76_v47 = vadd.f32 %v240_v6, %v53_v41  ;;  %v77_v48 = vadd.f32 %v240_v6, %v54_v42  ;;  %v55_v49 = vmul.f32 %v239_v3, %v32_v37  ;;  %v56_v50 = vmul.f32 %v239_v3, %v33_v38 }
   0xc   :  { %269 = vmatprep.mubr.msk.bf16.mxu1 %vm96_vm0, %v84_v33  ;;  %v82_v51 = vpack.c.bf16 %v69_v44, %v68_v40  ;;  %v70_v52 = vadd.f32 %v240_v6, %v47_v45  ;;  %v71_v53 = vadd.f32 %v240_v6, %v48_v46 }
   0xd   :  { %270 = vmatmul.mubr.msk.bf16.vlgmr.msra.gmra.mxu1 %vm96_vm0, %v85_v43  ;;  %v86_v54 = vpack.c.bf16 %v77_v48, %v76_v47  ;;  %v78_v55 = vadd.f32 %v240_v6, %v55_v49  ;;  %v79_v56 = vadd.f32 %v240_v6, %v56_v50 }
   0xe   :  { %265 = vmatprep.mubr.msk.bf16.mxu0 %vm96_vm0, %v82_v51  ;;  %v83_v57 = vpack.c.bf16 %v71_v53, %v70_v52 }
   0xf   :  { %273 = vmatprep.mubr.msk.bf16.mxu1 %vm96_vm0, %v86_v54  ;;  %v87_v58 = vpack.c.bf16 %v79_v56, %v78_v55 }
  0x13   :  { %266 = vmatmul.mubr.msk.bf16.gmra.mxu0 %vm96_vm0, %v83_v57 }
  0x15   :  { %274 = vmatmul.mubr.msk.bf16.gmra.mxu1 %vm96_vm0, %v87_v58 }
  0xcb   :  { %v263_v59 = vpop.f32.mrf.mxu0 }
  0xcc   :  { %221 = vst.msk [vmem:[%s438_s4 + $0x10] sm:$0xff] %vm218_vm1, %v263_v59 }
  0xcd   :  { %v271_v60 = vpop.f32.mrf.mxu1  ;;  %v155_v61 = vpop.f32.mrf.mxu0 }
  0xce   :  { %229 = vst.msk [vmem:[%s438_s4 + $0x50] sm:$0xff] %vm218_vm1, %v271_v60  ;;  %219 = vst.msk [vmem:[%s438_s4] sm:$0xff] %vm218_vm1, %v155_v61 }
  0xcf   :  { %v187_v62 = vpop.f32.mrf.mxu1  ;;  %v264_v63 = vpop.f32.mrf.mxu0 }
  0xd0   :  { %227 = vst.msk [vmem:[%s438_s4 + $0x40] sm:$0xff] %vm218_vm1, %v187_v62  ;;  %222 = vst.msk [vmem:[%s438_s4 + $0x18] sm:$0xff] %vm218_vm1, %v264_v63 }
  0xd1   :  { %v272_v0 = vpop.f32.mrf.mxu1  ;;  %v158_v1 = vpop.f32.mrf.mxu0 }
  0xd2   :  { %230 = vst.msk [vmem:[%s438_s4 + $0x58] sm:$0xff] %vm218_vm1, %v272_v0  ;;  %220 = vst.msk [vmem:[%s438_s4 + $0x8] sm:$0xff] %vm218_vm1, %v158_v1 }
  0xd3   :  { %v190_v2 = vpop.f32.mrf.mxu1  ;;  %v267_v3 = vpop.f32.mrf.mxu0 }
  0xd4   :  { %228 = vst.msk [vmem:[%s438_s4 + $0x48] sm:$0xff] %vm218_vm1, %v190_v2  ;;  %225 = vst.msk [vmem:[%s438_s4 + $0x30] sm:$0xff] %vm218_vm1, %v267_v3 }
  0xd5   :  { %v275_v4 = vpop.f32.mrf.mxu1  ;;  %v171_v5 = vpop.f32.mrf.mxu0 }
  0xd6   :  { %233 = vst.msk [vmem:[%s438_s4 + $0x70] sm:$0xff] %vm218_vm1, %v275_v4  ;;  %223 = vst.msk [vmem:[%s438_s4 + $0x20] sm:$0xff] %vm218_vm1, %v171_v5 }
  0xd7   :  { %v203_v6 = vpop.f32.mrf.mxu1  ;;  %v268_v7 = vpop.f32.mrf.mxu0 }
  0xd8   :  { %231 = vst.msk [vmem:[%s438_s4 + $0x60] sm:$0xff] %vm218_vm1, %v203_v6  ;;  %226 = vst.msk [vmem:[%s438_s4 + $0x38] sm:$0xff] %vm218_vm1, %v268_v7 }
  0xd9   :  { %v276_v8 = vpop.f32.mrf.mxu1  ;;  %v174_v9 = vpop.f32.mrf.mxu0 }
  0xda   :  { %234 = vst.msk [vmem:[%s438_s4 + $0x78] sm:$0xff] %vm218_vm1, %v276_v8  ;;  %224 = vst.msk [vmem:[%s438_s4 + $0x28] sm:$0xff] %vm218_vm1, %v174_v9 }
  0xdb   :  { %v206_v10 = vpop.f32.mrf.mxu1 }
  0xdc   :  { %232 = vst.msk [vmem:[%s438_s4 + $0x68] sm:$0xff] %vm218_vm1, %v206_v10 }

// kernel: stage_forward.11
= control target key start
LH: loop header
LB: loop body
LE: loop exit
PB: predicated region body
PF: predicated region fallthrough
CT: control target
= control target key end

     0   :  { %vm104_vm0 = vcmask 261120   ;;  %vm226_vm1 = vcmask 130048   ;;  %s452_s3 = inlined_call_operand.vmem [shape: bf16[32,16], index: 3, kind: input, shape index: {}]   ;;  %s453_s0 = inlined_call_operand.vmem [shape: f32[128,32], index: 0, kind: input, shape index: {}]   ;;  %s454_s1 = inlined_call_operand.vmem [shape: f32[1,32], index: 1, kind: input, shape index: {}]   ;;  %s455_s2 = inlined_call_operand.vmem [shape: f32[1,32], index: 2, kind: input, shape index: {}]   ;;  %s456_s4 = inlined_call_operand.vmem [shape: f32[128,16], index: 4, kind: output, shape index: {}]  }
   0x1   :  { %v293_v0 = vld [vmem:[%s452_s3 + $0x8] sm:$0xff]   ;;  %v294_v1 = vld [vmem:[%s452_s3] sm:$0xff]   ;;  %v20_v12 = vld [vmem:[%s453_s0 + $0x10] sm:$0xff] }
   0x2   :  { %269 = vmatprep.subr.bf16.mxu0 %v293_v0  ;;  %289 = vmatprep.subr.bf16.mxu1 %v293_v0  ;;  %v18_v2 = vld [vmem:[%s453_s0] sm:$0xff]  ;;  %v19_v3 = vld [vmem:[%s453_s0 + $0x8] sm:$0xff]  ;;  %v21_v13 = vld [vmem:[%s453_s0 + $0x18] sm:$0xff] }
   0x3   :  { %v247_v4 = vld [vmem:[%s454_s1] ss:$0 sm:$0xff]  ;;  %270 = vmatpush3.bf16.msra.mxu0 %v293_v0  ;;  %291 = vmatpush3.bf16.msra.mxu1 %v293_v0  ;;  %v27_v9 = vld [vmem:[%s453_s0 + $0x48] sm:$0xff]  ;;  %v28_v14 = vld [vmem:[%s453_s0 + $0x50] sm:$0xff] }
   0x4   :  { %v41_v5 = vmul.f32 %v247_v4, %v18_v2  ;;  %v42_v6 = vmul.f32 %v247_v4, %v19_v3  ;;  %v248_v7 = vld [vmem:[%s455_s2] ss:$0 sm:$0xff]  ;;  %271 = vmatprep.subr.bf16.mxu0 %v294_v1  ;;  %290 = vmatprep.subr.bf16.mxu1 %v294_v1  ;;  %v50_v11 = vmul.f32 %v247_v4, %v27_v9  ;;  %v29_v19 = vld [vmem:[%s453_s0 + $0x58] sm:$0xff]  ;;  %v23_v25 = vld [vmem:[%s453_s0 + $0x28] sm:$0xff] }
   0x5   :  { %v26_v8 = vld [vmem:[%s453_s0 + $0x40] sm:$0xff]  ;;  %v43_v17 = vmul.f32 %v247_v4, %v20_v12  ;;  %v44_v18 = vmul.f32 %v247_v4, %v21_v13  ;;  %v51_v23 = vmul.f32 %v247_v4, %v28_v14  ;;  %v52_v24 = vmul.f32 %v247_v4, %v29_v19  ;;  %v31_v27 = vld [vmem:[%s453_s0 + $0x68] sm:$0xff]  ;;  %v24_v31 = vld [vmem:[%s453_s0 + $0x30] sm:$0xff] }
   0x6   :  { %v49_v10 = vmul.f32 %v247_v4, %v26_v8  ;;  %v64_v15 = vadd.f32 %v248_v7, %v41_v5  ;;  %v65_v16 = vadd.f32 %v248_v7, %v42_v6  ;;  %v22_v20 = vld [vmem:[%s453_s0 + $0x20] sm:$0xff]  ;;  %v73_v22 = vadd.f32 %v248_v7, %v50_v11  ;;  %v25_v32 = vld [vmem:[%s453_s0 + $0x38] sm:$0xff]  ;;  %v32_v37 = vld [vmem:[%s453_s0 + $0x70] sm:$0xff] }
   0x7   :  { %v30_v26 = vld [vmem:[%s453_s0 + $0x60] sm:$0xff]  ;;  %272 = vmatpush3.bf16.msra.mxu0 %v294_v1  ;;  %292 = vmatpush3.bf16.msra.mxu1 %v294_v1  ;;  %v66_v29 = vadd.f32 %v248_v7, %v43_v17  ;;  %v67_v30 = vadd.f32 %v248_v7, %v44_v18  ;;  %v74_v34 = vadd.f32 %v248_v7, %v51_v23  ;;  %v33_v42 = vld [vmem:[%s453_s0 + $0x78] sm:$0xff] }
   0x8   :  { %v72_v21 = vadd.f32 %v248_v7, %v49_v10  ;;  %v80_v28 = vpack.c.bf16 %v65_v16, %v64_v15  ;;  %v75_v35 = vadd.f32 %v248_v7, %v52_v24  ;;  %v45_v36 = vmul.f32 %v247_v4, %v22_v20 }
   0x9   :  { %v81_v38 = vpack.c.bf16 %v67_v30, %v66_v29  ;;  %v46_v39 = vmul.f32 %v247_v4, %v23_v25  ;;  %v53_v40 = vmul.f32 %v247_v4, %v30_v26  ;;  %v54_v41 = vmul.f32 %v247_v4, %v31_v27 }
   0xa   :  { %v84_v33 = vpack.c.bf16 %v73_v22, %v72_v21  ;;  %273 = vmatprep.mubr.msk.bf16.mxu0 %vm104_vm0, %v80_v28  ;;  %v85_v43 = vpack.c.bf16 %v75_v35, %v74_v34  ;;  %v68_v44 = vadd.f32 %v248_v7, %v45_v36  ;;  %v47_v45 = vmul.f32 %v247_v4, %v24_v31 }
   0xb   :  { %v48_v46 = vmul.f32 %v247_v4, %v25_v32  ;;  %274 = vmatmul.mubr.msk.bf16.vlgmr.msra.gmra.mxu0 %vm104_vm0, %v81_v38  ;;  %v69_v47 = vadd.f32 %v248_v7, %v46_v39  ;;  %v76_v48 = vadd.f32 %v248_v7, %v53_v40  ;;  %v77_v49 = vadd.f32 %v248_v7, %v54_v41 }
   0xc   :  { %281 = vmatprep.mubr.msk.bf16.mxu1 %vm104_vm0, %v84_v33  ;;  %v55_v50 = vmul.f32 %v247_v4, %v32_v37  ;;  %v70_v51 = vadd.f32 %v248_v7, %v47_v45  ;;  %v56_v53 = vmul.f32 %v247_v4, %v33_v42 }
   0xd   :  { %282 = vmatmul.mubr.msk.bf16.vlgmr.msra.gmra.mxu1 %vm104_vm0, %v85_v43  ;;  %v71_v52 = vadd.f32 %v248_v7, %v48_v46  ;;  %v82_v54 = vpack.c.bf16 %v69_v47, %v68_v44  ;;  %v86_v55 = vpack.c.bf16 %v77_v49, %v76_v48 }
   0xe   :  { %v78_v56 = vadd.f32 %v248_v7, %v55_v50  ;;  %v79_v57 = vadd.f32 %v248_v7, %v56_v53 }
   0xf   :  { %277 = vmatprep.mubr.msk.bf16.mxu0 %vm104_vm0, %v82_v54  ;;  %285 = vmatprep.mubr.msk.bf16.mxu1 %vm104_vm0, %v86_v55  ;;  %v83_v58 = vpack.c.bf16 %v71_v52, %v70_v51 }
  0x10   :  { %v87_v59 = vpack.c.bf16 %v79_v57, %v78_v56 }
  0x13   :  { %278 = vmatmul.mubr.msk.bf16.gmra.mxu0 %vm104_vm0, %v83_v58 }
  0x15   :  { %286 = vmatmul.mubr.msk.bf16.gmra.mxu1 %vm104_vm0, %v87_v59 }
  0xcb   :  { %v275_v60 = vpop.f32.mrf.mxu0 }
  0xcc   :  { %229 = vst.msk [vmem:[%s456_s4 + $0x10] sm:$0xff] %vm226_vm1, %v275_v60 }
  0xcd   :  { %v283_v61 = vpop.f32.mrf.mxu1  ;;  %v163_v62 = vpop.f32.mrf.mxu0 }
  0xce   :  { %237 = vst.msk [vmem:[%s456_s4 + $0x50] sm:$0xff] %vm226_vm1, %v283_v61  ;;  %227 = vst.msk [vmem:[%s456_s4] sm:$0xff] %vm226_vm1, %v163_v62 }
  0xcf   :  { %v195_v63 = vpop.f32.mrf.mxu1  ;;  %v276_v0 = vpop.f32.mrf.mxu0 }
  0xd0   :  { %235 = vst.msk [vmem:[%s456_s4 + $0x40] sm:$0xff] %vm226_vm1, %v195_v63  ;;  %230 = vst.msk [vmem:[%s456_s4 + $0x18] sm:$0xff] %vm226_vm1, %v276_v0 }
  0xd1   :  { %v284_v1 = vpop.f32.mrf.mxu1  ;;  %v166_v2 = vpop.f32.mrf.mxu0 }
  0xd2   :  { %238 = vst.msk [vmem:[%s456_s4 + $0x58] sm:$0xff] %vm226_vm1, %v284_v1  ;;  %228 = vst.msk [vmem:[%s456_s4 + $0x8] sm:$0xff] %vm226_vm1, %v166_v2 }
  0xd3   :  { %v198_v3 = vpop.f32.mrf.mxu1  ;;  %v279_v4 = vpop.f32.mrf.mxu0 }
  0xd4   :  { %236 = vst.msk [vmem:[%s456_s4 + $0x48] sm:$0xff] %vm226_vm1, %v198_v3  ;;  %233 = vst.msk [vmem:[%s456_s4 + $0x30] sm:$0xff] %vm226_vm1, %v279_v4 }
  0xd5   :  { %v287_v5 = vpop.f32.mrf.mxu1  ;;  %v179_v6 = vpop.f32.mrf.mxu0 }
  0xd6   :  { %241 = vst.msk [vmem:[%s456_s4 + $0x70] sm:$0xff] %vm226_vm1, %v287_v5  ;;  %231 = vst.msk [vmem:[%s456_s4 + $0x20] sm:$0xff] %vm226_vm1, %v179_v6 }
  0xd7   :  { %v211_v7 = vpop.f32.mrf.mxu1  ;;  %v280_v8 = vpop.f32.mrf.mxu0 }
  0xd8   :  { %239 = vst.msk [vmem:[%s456_s4 + $0x60] sm:$0xff] %vm226_vm1, %v211_v7  ;;  %234 = vst.msk [vmem:[%s456_s4 + $0x38] sm:$0xff] %vm226_vm1, %v280_v8 }
  0xd9   :  { %v288_v9 = vpop.f32.mrf.mxu1  ;;  %v182_v10 = vpop.f32.mrf.mxu0 }
  0xda   :  { %242 = vst.msk [vmem:[%s456_s4 + $0x78] sm:$0xff] %vm226_vm1, %v288_v9  ;;  %232 = vst.msk [vmem:[%s456_s4 + $0x28] sm:$0xff] %vm226_vm1, %v182_v10 }
  0xdb   :  { %v214_v11 = vpop.f32.mrf.mxu1 }
  0xdc   :  { %240 = vst.msk [vmem:[%s456_s4 + $0x68] sm:$0xff] %vm226_vm1, %v214_v11 }

// kernel: stage_forward.14
= control target key start
LH: loop header
LB: loop body
LE: loop exit
PB: predicated region body
PF: predicated region fallthrough
CT: control target
= control target key end

     0   :  { %vm57_vm0 = vcmask 130048   ;;  %s488_s1 = inlined_call_operand.vmem [shape: bf16[16,16], index: 1, kind: input, shape index: {}]   ;;  %s489_s0 = inlined_call_operand.vmem [shape: f32[128,16], index: 0, kind: input, shape index: {}]   ;;  %s490_s2 = inlined_call_operand.vmem [shape: f32[1,16], index: 2, kind: input, shape index: {}]   ;;  %s491_s3 = inlined_call_operand.vmem [shape: f32[128,16], index: 3, kind: input, shape index: {}]   ;;  %s492_s4 = inlined_call_operand.vmem [shape: f32[128,16], index: 4, kind: output, shape index: {}]  }
   0x1   :  { %v270_v0 = vld [vmem:[%s488_s1] sm:$0xff]   ;;  %v19_v2 = vld [vmem:[%s489_s0 + $0x8] sm:$0xff]  ;;  %v20_v6 = vld [vmem:[%s489_s0 + $0x10] sm:$0xff] }
   0x2   :  { %v18_v1 = vld [vmem:[%s489_s0] sm:$0xff]  ;;  %250 = vmatprep.subr.bf16.mxu0 %v270_v0  ;;  %268 = vmatprep.subr.bf16.mxu1 %v270_v0  ;;  %v27_v5 = vld [vmem:[%s489_s0 + $0x48] sm:$0xff]  ;;  %v21_v7 = vld [vmem:[%s489_s0 + $0x18] sm:$0xff] }
   0x3   :  { %v26_v3 = vld [vmem:[%s489_s0 + $0x40] sm:$0xff]  ;;  %v34_v4 = vpack.c.bf16 %v19_v2, %v18_v1  ;;  %251 = vmatpush3.bf16.msra.mxu0 %v270_v0  ;;  %269 = vmatpush3.bf16.msra.mxu1 %v270_v0  ;;  %v35_v9 = vpack.c.bf16 %v21_v7, %v20_v6  ;;  %v28_v10 = vld [vmem:[%s489_s0 + $0x50] sm:$0xff]  ;;  %v29_v11 = vld [vmem:[%s489_s0 + $0x58] sm:$0xff] }
   0x4   :  { %v38_v8 = vpack.c.bf16 %v27_v5, %v26_v3  ;;  %v22_v12 = vld [vmem:[%s489_s0 + $0x20] sm:$0xff]  ;;  %v39_v13 = vpack.c.bf16 %v29_v11, %v28_v10  ;;  %v23_v14 = vld [vmem:[%s489_s0 + $0x28] sm:$0xff]  ;;  %v24_v19 = vld [vmem:[%s489_s0 + $0x30] sm:$0xff] }
   0x5   :  { %252 = vmatprep.mubr.msk.bf16.mxu0 %vm57_vm0, %v34_v4  ;;  %v30_v15 = vld [vmem:[%s489_s0 + $0x60] sm:$0xff]  ;;  %v31_v16 = vld [vmem:[%s489_s0 + $0x68] sm:$0xff]  ;;  %v36_v17 = vpack.c.bf16 %v23_v14, %v22_v12  ;;  %v25_v20 = vld [vmem:[%s489_s0 + $0x38] sm:$0xff] }
   0x6   :  { %260 = vmatprep.mubr.msk.bf16.mxu1 %vm57_vm0, %v38_v8  ;;  %v40_v18 = vpack.c.bf16 %v31_v16, %v30_v15  ;;  %253 = vmatmul.mubr.msk.bf16.vlgmr.msra.gmra.mxu0 %vm57_vm0, %v35_v9  ;;  %v32_v21 = vld [vmem:[%s489_s0 + $0x70] sm:$0xff]  ;;  %v33_v22 = vld [vmem:[%s489_s0 + $0x78] sm:$0xff]  ;;  %v37_v23 = vpack.c.bf16 %v25_v20, %v24_v19  ;;  %v358_v25 = vld [vmem:[%s490_s2] ss:$0 sm:$0xff] }
   0x7   :  { %261 = vmatmul.mubr.msk.bf16.vlgmr.msra.gmra.mxu1 %vm57_vm0, %v39_v13  ;;  %256 = vmatprep.mubr.msk.bf16.mxu0 %vm57_vm0, %v36_v17  ;;  %v41_v24 = vpack.c.bf16 %v33_v22, %v32_v21  ;;  %v181_v27 = vld [vmem:[%s491_s3 + $0x10] sm:$0xff]  ;;  %v179_v33 = vld [vmem:[%s491_s3] sm:$0xff]  ;;  %v182_v41 = vld [vmem:[%s491_s3 + $0x18] sm:$0xff] }
   0x8   :  { %264 = vmatprep.mubr.msk.bf16.mxu1 %vm57_vm0, %v40_v18  ;;  %v189_v29 = vld [vmem:[%s491_s3 + $0x50] sm:$0xff]  ;;  %v187_v35 = vld [vmem:[%s491_s3 + $0x40] sm:$0xff]  ;;  %v190_v43 = vld [vmem:[%s491_s3 + $0x58] sm:$0xff] }
   0x9   :  { %v180_v49 = vld [vmem:[%s491_s3 + $0x8] sm:$0xff]  ;;  %v185_v57 = vld [vmem:[%s491_s3 + $0x30] sm:$0xff]  ;;  %v183_v1 = vld [vmem:[%s491_s3 + $0x20] sm:$0xff] }
   0xa   :  { %v188_v51 = vld [vmem:[%s491_s3 + $0x48] sm:$0xff]  ;;  %v193_v59 = vld [vmem:[%s491_s3 + $0x70] sm:$0xff]  ;;  %v191_v3 = vld [vmem:[%s491_s3 + $0x60] sm:$0xff] }
   0xb   :  { %v186_v9 = vld [vmem:[%s491_s3 + $0x38] sm:$0xff]  ;;  %v184_v17 = vld [vmem:[%s491_s3 + $0x28] sm:$0xff] }
   0xc   :  { %v194_v11 = vld [vmem:[%s491_s3 + $0x78] sm:$0xff]  ;;  %v192_v19 = vld [vmem:[%s491_s3 + $0x68] sm:$0xff] }
   0xe   :  { %257 = vmatmul.mubr.msk.bf16.gmra.mxu0 %vm57_vm0, %v37_v23 }
   0xf   :  { %265 = vmatmul.mubr.msk.bf16.gmra.mxu1 %vm57_vm0, %v41_v24 }
  0xc6   :  { %v254_v26 = vpop.f32.mrf.mxu0 }
  0xc7   :  { %v262_v28 = vpop.f32.mrf.mxu1  ;;  %v125_v30 = vadd.f32 %v254_v26, %v358_v25 }
  0xc8   :  { %v157_v31 = vadd.f32 %v262_v28, %v358_v25  ;;  %v116_v32 = vpop.f32.mrf.mxu0 }
  0xc9   :  { %v148_v34 = vpop.f32.mrf.mxu1  ;;  %v197_v36 = vadd.f32 %v181_v27, %v125_v30  ;;  %v117_v38 = vadd.f32 %v358_v25, %v116_v32 }
  0xca   :  { %v205_v37 = vadd.f32 %v189_v29, %v157_v31  ;;  %v149_v39 = vadd.f32 %v358_v25, %v148_v34  ;;  %v255_v40 = vpop.f32.mrf.mxu0 }
  0xcb   :  { %v263_v42 = vpop.f32.mrf.mxu1  ;;  %213 = vst.msk [vmem:[%s492_s4 + $0x10] sm:$0xff] %vm57_vm0, %v197_v36  ;;  %v195_v44 = vadd.f32 %v179_v33, %v117_v38  ;;  %v128_v46 = vadd.f32 %v255_v40, %v358_v25 }
  0xcc   :  { %221 = vst.msk [vmem:[%s492_s4 + $0x50] sm:$0xff] %vm57_vm0, %v205_v37  ;;  %v203_v45 = vadd.f32 %v187_v35, %v149_v39  ;;  %v160_v47 = vadd.f32 %v263_v42, %v358_v25  ;;  %v119_v48 = vpop.f32.mrf.mxu0 }
  0xcd   :  { %v151_v50 = vpop.f32.mrf.mxu1  ;;  %211 = vst.msk [vmem:[%s492_s4] sm:$0xff] %vm57_vm0, %v195_v44  ;;  %v198_v52 = vadd.f32 %v182_v41, %v128_v46  ;;  %v120_v54 = vadd.f32 %v358_v25, %v119_v48 }
  0xce   :  { %219 = vst.msk [vmem:[%s492_s4 + $0x40] sm:$0xff] %vm57_vm0, %v203_v45  ;;  %v206_v53 = vadd.f32 %v190_v43, %v160_v47  ;;  %v152_v55 = vadd.f32 %v358_v25, %v151_v50  ;;  %v258_v56 = vpop.f32.mrf.mxu0 }
  0xcf   :  { %v266_v58 = vpop.f32.mrf.mxu1  ;;  %214 = vst.msk [vmem:[%s492_s4 + $0x18] sm:$0xff] %vm57_vm0, %v198_v52  ;;  %v196_v60 = vadd.f32 %v180_v49, %v120_v54  ;;  %v141_v62 = vadd.f32 %v258_v56, %v358_v25 }
  0xd0   :  { %222 = vst.msk [vmem:[%s492_s4 + $0x58] sm:$0xff] %vm57_vm0, %v206_v53  ;;  %v204_v61 = vadd.f32 %v188_v51, %v152_v55  ;;  %v173_v63 = vadd.f32 %v266_v58, %v358_v25  ;;  %v132_v0 = vpop.f32.mrf.mxu0 }
  0xd1   :  { %v164_v2 = vpop.f32.mrf.mxu1  ;;  %212 = vst.msk [vmem:[%s492_s4 + $0x8] sm:$0xff] %vm57_vm0, %v196_v60  ;;  %v201_v4 = vadd.f32 %v185_v57, %v141_v62  ;;  %v133_v6 = vadd.f32 %v358_v25, %v132_v0 }
  0xd2   :  { %220 = vst.msk [vmem:[%s492_s4 + $0x48] sm:$0xff] %vm57_vm0, %v204_v61  ;;  %v209_v5 = vadd.f32 %v193_v59, %v173_v63  ;;  %v165_v7 = vadd.f32 %v358_v25, %v164_v2  ;;  %v259_v8 = vpop.f32.mrf.mxu0 }
  0xd3   :  { %v267_v10 = vpop.f32.mrf.mxu1  ;;  %217 = vst.msk [vmem:[%s492_s4 + $0x30] sm:$0xff] %vm57_vm0, %v201_v4  ;;  %v199_v12 = vadd.f32 %v183_v1, %v133_v6  ;;  %v144_v14 = vadd.f32 %v259_v8, %v358_v25 }
  0xd4   :  { %225 = vst.msk [vmem:[%s492_s4 + $0x70] sm:$0xff] %vm57_vm0, %v209_v5  ;;  %v207_v13 = vadd.f32 %v191_v3, %v165_v7  ;;  %v176_v15 = vadd.f32 %v267_v10, %v358_v25  ;;  %v135_v16 = vpop.f32.mrf.mxu0 }
  0xd5   :  { %v167_v18 = vpop.f32.mrf.mxu1  ;;  %215 = vst.msk [vmem:[%s492_s4 + $0x20] sm:$0xff] %vm57_vm0, %v199_v12  ;;  %v202_v20 = vadd.f32 %v186_v9, %v144_v14  ;;  %v136_v22 = vadd.f32 %v358_v25, %v135_v16 }
  0xd6   :  { %223 = vst.msk [vmem:[%s492_s4 + $0x60] sm:$0xff] %vm57_vm0, %v207_v13  ;;  %v210_v21 = vadd.f32 %v194_v11, %v176_v15  ;;  %v168_v23 = vadd.f32 %v358_v25, %v167_v18 }
  0xd7   :  { %218 = vst.msk [vmem:[%s492_s4 + $0x38] sm:$0xff] %vm57_vm0, %v202_v20  ;;  %v200_v24 = vadd.f32 %v184_v17, %v136_v22 }
  0xd8   :  { %226 = vst.msk [vmem:[%s492_s4 + $0x78] sm:$0xff] %vm57_vm0, %v210_v21  ;;  %v208_v26 = vadd.f32 %v192_v19, %v168_v23 }
  0xd9   :  { %216 = vst.msk [vmem:[%s492_s4 + $0x28] sm:$0xff] %vm57_vm0, %v200_v24 }
  0xda   :  { %224 = vst.msk [vmem:[%s492_s4 + $0x68] sm:$0xff] %vm57_vm0, %v208_v26 }

// kernel: stage_forward.16
= control target key start
LH: loop header
LB: loop body
LE: loop exit
PB: predicated region body
PF: predicated region fallthrough
CT: control target
= control target key end

     0   :  { %vm112_vm0 = vcmask 130048   ;;  %vm313_vm1 = vcmask 523264   ;;  %s841_s3 = inlined_call_operand.vmem [shape: bf16[16,64], index: 3, kind: input, shape index: {}]   ;;  %s842_s0 = inlined_call_operand.vmem [shape: f32[128,16], index: 0, kind: input, shape index: {}]   ;;  %s843_s1 = inlined_call_operand.vmem [shape: f32[1,16], index: 1, kind: input, shape index: {}]   ;;  %s844_s2 = inlined_call_operand.vmem [shape: f32[1,16], index: 2, kind: input, shape index: {}]   ;;  %s845_s5 = inlined_call_operand.vmem [shape: bf16[64,16], index: 5, kind: input, shape index: {}]   ;;  %s846_s4 = inlined_call_operand.vmem [shape: f32[1,64], index: 4, kind: input, shape index: {}]   ;;  %s847_s6 = inlined_call_operand.vmem [shape: f32[1,16], index: 6, kind: input, shape index: {}]   ;;  %s848_s7 = inlined_call_operand.vmem [shape: f32[128,16], index: 7, kind: output, shape index: {}]  }
   0x1   :  { %v559_v0 = vld [vmem:[%s841_s3] sm:$0xff]   ;;  %v615_v2 = vld [vmem:[%s842_s0 + $0x8] sm:$0xff]  ;;  %v628_v7 = vld [vmem:[%s842_s0 + $0x10] sm:$0xff] }
   0x2   :  { %v610_v1 = vld [vmem:[%s842_s0] sm:$0xff]  ;;  %517 = vmatprep.subr.bf16.mxu0 %v559_v0  ;;  %v633_v8 = vld [vmem:[%s842_s0 + $0x18] sm:$0xff]  ;;  %v645_v12 = vld [vmem:[%s842_s0 + $0x28] sm:$0xff] }
   0x3   :  { %v471_v3 = vld [vmem:[%s843_s1] ss:$0 sm:$0xff]  ;;  %518 = vmatpush3.bf16.msra.mxu0 %v559_v0  ;;  %v650_v13 = vld [vmem:[%s842_s0 + $0x30] sm:$0xff]  ;;  %v657_v18 = vld [vmem:[%s842_s0 + $0x38] sm:$0xff] }
   0x4   :  { %v50_v4 = vmul.f32 %v471_v3, %v610_v1  ;;  %v51_v5 = vmul.f32 %v471_v3, %v615_v2  ;;  %v472_v6 = vld [vmem:[%s844_s2] ss:$0 sm:$0xff]  ;;  %v52_v9 = vmul.f32 %v471_v3, %v628_v7  ;;  %v53_v10 = vmul.f32 %v471_v3, %v633_v8  ;;  %v667_v20 = vld [vmem:[%s842_s0 + $0x48] sm:$0xff]  ;;  %v679_v36 = vld [vmem:[%s842_s0 + $0x50] sm:$0xff] }
   0x5   :  { %v640_v11 = vld [vmem:[%s842_s0 + $0x20] sm:$0xff]  ;;  %v55_v17 = vmul.f32 %v471_v3, %v645_v12  ;;  %v56_v23 = vmul.f32 %v471_v3, %v650_v13  ;;  %v57_v24 = vmul.f32 %v471_v3, %v657_v18  ;;  %v59_v30 = vmul.f32 %v471_v3, %v667_v20  ;;  %v684_v37 = vld [vmem:[%s842_s0 + $0x58] sm:$0xff]  ;;  %v694_v39 = vld [vmem:[%s842_s0 + $0x68] sm:$0xff] }
   0x6   :  { %v73_v14 = vadd.f32 %v472_v6, %v50_v4  ;;  %v74_v15 = vadd.f32 %v472_v6, %v51_v5  ;;  %v54_v16 = vmul.f32 %v471_v3, %v640_v11  ;;  %v662_v19 = vld [vmem:[%s842_s0 + $0x40] sm:$0xff]  ;;  %v75_v21 = vadd.f32 %v472_v6, %v52_v9  ;;  %v705_v50 = vld [vmem:[%s842_s0 + $0x70] sm:$0xff]  ;;  %v710_v51 = vld [vmem:[%s842_s0 + $0x78] sm:$0xff] }
   0x7   :  { %v76_v22 = vadd.f32 %v472_v6, %v53_v10  ;;  %v78_v27 = vadd.f32 %v472_v6, %v55_v17  ;;  %v58_v28 = vmul.f32 %v471_v3, %v662_v19  ;;  %v79_v32 = vadd.f32 %v472_v6, %v56_v23  ;;  %v689_v38 = vld [vmem:[%s842_s0 + $0x60] sm:$0xff]  ;;  %v560_v59 = vld [vmem:[%s845_s5 + $0x18] sm:$0xff]   ;;  %v561_v60 = vld [vmem:[%s845_s5 + $0x10] sm:$0xff]  }
   0x8   :  { %v89_v25 = vpack.c.bf16 %v74_v15, %v73_v14  ;;  %v77_v26 = vadd.f32 %v472_v6, %v54_v16  ;;  %v80_v33 = vadd.f32 %v472_v6, %v57_v24  ;;  %v82_v35 = vadd.f32 %v472_v6, %v59_v30  ;;  %535 = vmatprep.subr.bf16.mxu1 %v560_v59  ;;  %v562_v61 = vld [vmem:[%s845_s5 + $0x8] sm:$0xff]   ;;  %v563_v62 = vld [vmem:[%s845_s5] sm:$0xff]  }
   0x9   :  { %v90_v29 = vpack.c.bf16 %v76_v22, %v75_v21  ;;  %v81_v34 = vadd.f32 %v472_v6, %v58_v28  ;;  %v60_v41 = vmul.f32 %v471_v3, %v679_v36  ;;  %v61_v42 = vmul.f32 %v471_v3, %v684_v37  ;;  %536 = vmatpush3.bf16.msra.mxu1 %v560_v59  ;;  %v732_v0 = vld [vmem:[%s846_s4] ss:$0 sm:$0xff] }
   0xa   :  { %519 = vmatprep.mubr.msk.bf16.mxu0 %vm112_vm0, %v89_v25  ;;  %v91_v31 = vpack.c.bf16 %v78_v27, %v77_v26  ;;  %v92_v40 = vpack.c.bf16 %v80_v33, %v79_v32  ;;  %v62_v44 = vmul.f32 %v471_v3, %v689_v38  ;;  %v63_v45 = vmul.f32 %v471_v3, %v694_v39 }
   0xb   :  { %520 = vmatmul.mubr.msk.bf16.vlgmr.msra.gmra.mxu0 %vm112_vm0, %v90_v29  ;;  %v93_v43 = vpack.c.bf16 %v82_v35, %v81_v34  ;;  %v83_v46 = vadd.f32 %v472_v6, %v60_v41  ;;  %v84_v47 = vadd.f32 %v472_v6, %v61_v42  ;;  %v64_v53 = vmul.f32 %v471_v3, %v705_v50 }
   0xc   :  { %523 = vmatprep.mubr.msk.bf16.mxu0 %vm112_vm0, %v91_v31  ;;  %v85_v48 = vadd.f32 %v472_v6, %v62_v44  ;;  %v86_v49 = vadd.f32 %v472_v6, %v63_v45  ;;  %v65_v54 = vmul.f32 %v471_v3, %v710_v51  ;;  %537 = vmatprep.subr.bf16.mxu1 %v561_v60 }
   0xd   :  { %v94_v52 = vpack.c.bf16 %v84_v47, %v83_v46  ;;  %v87_v56 = vadd.f32 %v472_v6, %v64_v53  ;;  %538 = vmatpush3.bf16.msra.mxu1 %v561_v60 }
   0xe   :  { %v95_v55 = vpack.c.bf16 %v86_v49, %v85_v48  ;;  %v88_v57 = vadd.f32 %v472_v6, %v65_v54  ;;  %539 = vmatprep.subr.bf16.mxu1 %v562_v61 }
  0x10   :  { %v96_v58 = vpack.c.bf16 %v88_v57, %v87_v56 }
  0x11   :  { %540 = vmatpush3.bf16.msra.mxu1 %v562_v61 }
  0x12   :  { %541 = vmatprep.subr.bf16.mxu1 %v563_v62 }
  0x13   :  { %524 = vmatmul.mubr.msk.bf16.gmra.mxu0 %vm112_vm0, %v92_v40 }
  0x14   :  { %527 = vmatprep.mubr.msk.bf16.mxu0 %vm112_vm0, %v93_v43 }
  0x15   :  { %542 = vmatpush3.bf16.msra.mxu1 %v563_v62 }
  0x1b   :  { %528 = vmatmul.mubr.msk.bf16.gmra.mxu0 %vm112_vm0, %v94_v52 }
  0x1c   :  { %531 = vmatprep.mubr.msk.bf16.mxu0 %vm112_vm0, %v95_v55 }
  0x23   :  { %532 = vmatmul.mubr.msk.bf16.gmra.mxu0 %vm112_vm0, %v96_v58 }
  0xcb   :  { %v521_v63 = vpop.f32.mrf.mxu0 }
  0xcc   :  { %v180_v5 = vadd.f32 %v521_v63, %v732_v0 }
  0xcd   :  { %v171_v3 = vpop.f32.mrf.mxu0 }
  0xce   :  { %v172_v4 = vadd.f32 %v732_v0, %v171_v3  ;;  %v236_v17 = vmax.f32 %v180_v5, 0.0 }
  0xcf   :  { %v522_v6 = vpop.f32.mrf.mxu0 }
  0xd0   :  { %v183_v9 = vadd.f32 %v522_v6, %v732_v0  ;;  %v234_v14 = vmax.f32 %v172_v4, 0.0  ;;  %v252_v28 = vmin.f32 %v236_v17, 6.0 }
  0xd1   :  { %v174_v10 = vpop.f32.mrf.mxu0 }
  0xd2   :  { %v237_v15 = vmax.f32 %v183_v9, 0.0  ;;  %v175_v16 = vadd.f32 %v732_v0, %v174_v10  ;;  %v250_v25 = vmin.f32 %v234_v14, 6.0 }
  0xd3   :  { %v525_v21 = vpop.f32.mrf.mxu0 }
  0xd4   :  { %v235_v22 = vmax.f32 %v175_v16, 0.0  ;;  %v253_v23 = vmin.f32 %v237_v15, 6.0  ;;  %v196_v29 = vadd.f32 %v525_v21, %v732_v0 }
  0xd5   :  { %v187_v24 = vpop.f32.mrf.mxu0 }
  0xd6   :  { %v251_v26 = vmin.f32 %v235_v22, 6.0  ;;  %v188_v27 = vadd.f32 %v732_v0, %v187_v24  ;;  %v267_v33 = vpack.c.bf16 %v253_v23, %v252_v28  ;;  %v240_v42 = vmax.f32 %v196_v29, 0.0 }
  0xd7   :  { %v526_v30 = vpop.f32.mrf.mxu0 }
  0xd8   :  { %v199_v31 = vadd.f32 %v526_v30, %v732_v0  ;;  %v266_v32 = vpack.c.bf16 %v251_v26, %v250_v25  ;;  %v238_v35 = vmax.f32 %v188_v27, 0.0  ;;  %v256_v52 = vmin.f32 %v240_v42, 6.0 }
  0xd9   :  { %v190_v34 = vpop.f32.mrf.mxu0 }
  0xda   :  { %v241_v40 = vmax.f32 %v199_v31, 0.0  ;;  %v191_v41 = vadd.f32 %v732_v0, %v190_v34  ;;  %543 = vmatprep.mubr.msk.bf16.mxu1 %vm313_vm1, %v266_v32  ;;  %v254_v47 = vmin.f32 %v238_v35, 6.0 }
  0xdb   :  { %v529_v43 = vpop.f32.mrf.mxu0  ;;  %544 = vmatmul.mubr.msk.bf16.vlgmr.msra.gmra.mxu1 %vm313_vm1, %v267_v33 }
  0xdc   :  { %v239_v44 = vmax.f32 %v191_v41, 0.0  ;;  %v257_v45 = vmin.f32 %v241_v40, 6.0  ;;  %v212_v53 = vadd.f32 %v529_v43, %v732_v0 }
  0xdd   :  { %v203_v46 = vpop.f32.mrf.mxu0 }
  0xde   :  { %v255_v48 = vmin.f32 %v239_v44, 6.0  ;;  %v204_v49 = vadd.f32 %v732_v0, %v203_v46  ;;  %v269_v57 = vpack.c.bf16 %v257_v45, %v256_v52  ;;  %v244_v62 = vmax.f32 %v212_v53, 0.0 }
  0xdf   :  { %v530_v54 = vpop.f32.mrf.mxu0 }
  0xe0   :  { %v268_v55 = vpack.c.bf16 %v255_v48, %v254_v47  ;;  %v215_v56 = vadd.f32 %v530_v54, %v732_v0  ;;  %v242_v59 = vmax.f32 %v204_v49, 0.0  ;;  %v260_v14 = vmin.f32 %v244_v62, 6.0 }
  0xe1   :  { %v206_v58 = vpop.f32.mrf.mxu0 }
  0xe2   :  { %v245_v60 = vmax.f32 %v215_v56, 0.0  ;;  %v207_v61 = vadd.f32 %v732_v0, %v206_v58  ;;  %547 = vmatprep.mubr.msk.bf16.mxu1 %vm313_vm1, %v268_v55  ;;  %v258_v6 = vmin.f32 %v242_v59, 6.0 }
  0xe3   :  { %v533_v63 = vpop.f32.mrf.mxu0  ;;  %548 = vmatmul.mubr.msk.bf16.gmra.mxu1 %vm313_vm1, %v269_v57 }
  0xe4   :  { %v243_v3 = vmax.f32 %v207_v61, 0.0  ;;  %v261_v4 = vmin.f32 %v245_v60, 6.0  ;;  %v228_v15 = vadd.f32 %v533_v63, %v732_v0 }
  0xe5   :  { %v219_v5 = vpop.f32.mrf.mxu0 }
  0xe6   :  { %v259_v9 = vmin.f32 %v243_v3, 6.0  ;;  %v220_v10 = vadd.f32 %v732_v0, %v219_v5  ;;  %v271_v22 = vpack.c.bf16 %v261_v4, %v260_v14  ;;  %v248_v27 = vmax.f32 %v228_v15, 0.0 }
  0xe7   :  { %v534_v16 = vpop.f32.mrf.mxu0 }
  0xe8   :  { %v270_v17 = vpack.c.bf16 %v259_v9, %v258_v6  ;;  %v231_v21 = vadd.f32 %v534_v16, %v732_v0  ;;  %v246_v24 = vmax.f32 %v220_v10, 0.0  ;;  %v264_v32 = vmin.f32 %v248_v27, 6.0 }
  0xe9   :  { %v222_v23 = vpop.f32.mrf.mxu0 }
  0xea   :  { %v249_v25 = vmax.f32 %v231_v21, 0.0  ;;  %v223_v26 = vadd.f32 %v732_v0, %v222_v23  ;;  %551 = vmatprep.mubr.msk.bf16.mxu1 %vm313_vm1, %v270_v17  ;;  %v262_v30 = vmin.f32 %v246_v24, 6.0  ;;  %v483_v0 = vld [vmem:[%s847_s6] ss:$0 sm:$0xff] }
  0xeb   :  { %552 = vmatmul.mubr.msk.bf16.gmra.mxu1 %vm313_vm1, %v271_v22 }
  0xec   :  { %v247_v28 = vmax.f32 %v223_v26, 0.0  ;;  %v265_v29 = vmin.f32 %v249_v25, 6.0 }
  0xee   :  { %v263_v31 = vmin.f32 %v247_v28, 6.0  ;;  %v273_v34 = vpack.c.bf16 %v265_v29, %v264_v32 }
  0xf0   :  { %v272_v33 = vpack.c.bf16 %v263_v31, %v262_v30 }
  0xf2   :  { %555 = vmatprep.mubr.msk.bf16.mxu1 %vm313_vm1, %v272_v33 }
  0xf3   :  { %556 = vmatmul.mubr.msk.bf16.gmra.mxu1 %vm313_vm1, %v273_v34 }
 0x19b   :  { %v545_v35 = vpop.f32.mrf.mxu1 }
 0x19c   :  { %v381_v40 = vadd.f32 %v545_v35, %v483_v0 }
 0x19d   :  { %v372_v41 = vpop.f32.mrf.mxu1 }
 0x19e   :  { %v437_v42 = vadd.f32 %v381_v40, %v628_v7  ;;  %v373_v43 = vadd.f32 %v483_v0, %v372_v41 }
 0x19f   :  { %v546_v44 = vpop.f32.mrf.mxu1 }
 0x1a0   :  { %453 = vst.msk [vmem:[%s848_s7 + $0x10] sm:$0xff] %vm112_vm0, %v437_v42  ;;  %v435_v45 = vadd.f32 %v373_v43, %v610_v1  ;;  %v384_v46 = vadd.f32 %v546_v44, %v483_v0 }
 0x1a1   :  { %v375_v47 = vpop.f32.mrf.mxu1 }
 0x1a2   :  { %451 = vst.msk [vmem:[%s848_s7] sm:$0xff] %vm112_vm0, %v435_v45  ;;  %v438_v48 = vadd.f32 %v384_v46, %v633_v8  ;;  %v376_v49 = vadd.f32 %v483_v0, %v375_v47 }
 0x1a3   :  { %v549_v7 = vpop.f32.mrf.mxu1 }
 0x1a4   :  { %454 = vst.msk [vmem:[%s848_s7 + $0x18] sm:$0xff] %vm112_vm0, %v438_v48  ;;  %v436_v52 = vadd.f32 %v376_v49, %v615_v2  ;;  %v397_v53 = vadd.f32 %v549_v7, %v483_v0 }
 0x1a5   :  { %v388_v1 = vpop.f32.mrf.mxu1 }
 0x1a6   :  { %452 = vst.msk [vmem:[%s848_s7 + $0x8] sm:$0xff] %vm112_vm0, %v436_v52  ;;  %v441_v54 = vadd.f32 %v397_v53, %v650_v13  ;;  %v389_v55 = vadd.f32 %v483_v0, %v388_v1 }
 0x1a7   :  { %v550_v8 = vpop.f32.mrf.mxu1 }
 0x1a8   :  { %457 = vst.msk [vmem:[%s848_s7 + $0x30] sm:$0xff] %vm112_vm0, %v441_v54  ;;  %v439_v56 = vadd.f32 %v389_v55, %v640_v11  ;;  %v400_v57 = vadd.f32 %v550_v8, %v483_v0 }
 0x1a9   :  { %v391_v2 = vpop.f32.mrf.mxu1 }
 0x1aa   :  { %455 = vst.msk [vmem:[%s848_s7 + $0x20] sm:$0xff] %vm112_vm0, %v439_v56  ;;  %v442_v58 = vadd.f32 %v400_v57, %v657_v18  ;;  %v392_v59 = vadd.f32 %v483_v0, %v391_v2 }
 0x1ab   :  { %v553_v13 = vpop.f32.mrf.mxu1 }
 0x1ac   :  { %458 = vst.msk [vmem:[%s848_s7 + $0x38] sm:$0xff] %vm112_vm0, %v442_v58  ;;  %v440_v60 = vadd.f32 %v392_v59, %v645_v12  ;;  %v413_v61 = vadd.f32 %v553_v13, %v483_v0 }
 0x1ad   :  { %v404_v11 = vpop.f32.mrf.mxu1 }
 0x1ae   :  { %456 = vst.msk [vmem:[%s848_s7 + $0x28] sm:$0xff] %vm112_vm0, %v440_v60  ;;  %v445_v62 = vadd.f32 %v413_v61, %v679_v36  ;;  %v405_v63 = vadd.f32 %v483_v0, %v404_v11 }
 0x1af   :  { %v554_v18 = vpop.f32.mrf.mxu1 }
 0x1b0   :  { %461 = vst.msk [vmem:[%s848_s7 + $0x50] sm:$0xff] %vm112_vm0, %v445_v62  ;;  %v443_v3 = vadd.f32 %v405_v63, %v662_v19  ;;  %v416_v4 = vadd.f32 %v554_v18, %v483_v0 }
 0x1b1   :  { %v407_v12 = vpop.f32.mrf.mxu1 }
 0x1b2   :  { %459 = vst.msk [vmem:[%s848_s7 + $0x40] sm:$0xff] %vm112_vm0, %v443_v3  ;;  %v446_v5 = vadd.f32 %v416_v4, %v684_v37  ;;  %v408_v6 = vadd.f32 %v483_v0, %v407_v12 }
 0x1b3   :  { %v557_v36 = vpop.f32.mrf.mxu1 }
 0x1b4   :  { %462 = vst.msk [vmem:[%s848_s7 + $0x58] sm:$0xff] %vm112_vm0, %v446_v5  ;;  %v444_v9 = vadd.f32 %v408_v6, %v667_v20  ;;  %v429_v10 = vadd.f32 %v557_v36, %v483_v0 }
 0x1b5   :  { %v420_v19 = vpop.f32.mrf.mxu1 }
 0x1b6   :  { %460 = vst.msk [vmem:[%s848_s7 + $0x48] sm:$0xff] %vm112_vm0, %v444_v9  ;;  %v449_v14 = vadd.f32 %v429_v10, %v705_v50  ;;  %v421_v15 = vadd.f32 %v483_v0, %v420_v19 }
 0x1b7   :  { %v558_v37 = vpop.f32.mrf.mxu1 }
 0x1b8   :  { %465 = vst.msk [vmem:[%s848_s7 + $0x70] sm:$0xff] %vm112_vm0, %v449_v14  ;;  %v447_v16 = vadd.f32 %v421_v15, %v689_v38  ;;  %v432_v17 = vadd.f32 %v558_v37, %v483_v0 }
 0x1b9   :  { %v423_v20 = vpop.f32.mrf.mxu1 }
 0x1ba   :  { %463 = vst.msk [vmem:[%s848_s7 + $0x60] sm:$0xff] %vm112_vm0, %v447_v16  ;;  %v450_v21 = vadd.f32 %v432_v17, %v710_v51  ;;  %v424_v22 = vadd.f32 %v483_v0, %v423_v20 }
 0x1bc   :  { %466 = vst.msk [vmem:[%s848_s7 + $0x78] sm:$0xff] %vm112_vm0, %v450_v21  ;;  %v448_v50 = vadd.f32 %v424_v22, %v694_v39 }
 0x1be   :  { %464 = vst.msk [vmem:[%s848_s7 + $0x68] sm:$0xff] %vm112_vm0, %v448_v50 }

// kernel: stage_forward.15
= control target key start
LH: loop header
LB: loop body
LE: loop exit
PB: predicated region body
PF: predicated region fallthrough
CT: control target
= control target key end

     0   :  { %s1462_s15 = smov 0   ;;  %s2332_s0 = inlined_call_operand.vmem [shape: f32[2,8,8,16], index: 0, kind: input, shape index: {}]   ;;  %s2333_s1 = inlined_call_operand.vmem [shape: f32[1,1,1,16], index: 1, kind: input, shape index: {}]   ;;  %s2334_s2 = inlined_call_operand.vmem [shape: f32[1,1,1,16], index: 2, kind: input, shape index: {}]   ;;  %s2335_s3 = inlined_call_operand.vmem [shape: f32[16,16], index: 3, kind: input, shape index: {}]   ;;  %s2336_s4 = inlined_call_operand.vmem [shape: f32[2,8,8,16], index: 4, kind: output, shape index: {}]  }
   0x1 LB: > { %s1387_s16 = sadd.s32 4294967295, %s1434_s15   ;;  %p1391_p0 = scmp.ge.s32.totalorder %s1434_s15, 1  ;;  %s1434_s15 = sphi %s1462_s15, %s14_s15  }
   0x2   : > { %p162_p1 = scmp.lt.s32.totalorder %s1434_s15, 3 }
   0x4   : > { %p163_p2 = pnand %p1391_p0, %p162_p1 }
   0x5   : > { %p1472_p3 = scmp.lt.s32.totalorder (!%p163_p2), %s1387_s16, 1 }
   0x6   : > { %166 = sbr.rel (%p163_p2) target bundleno = 199 (0xc7), region = 36 }
   0xb   : > { %vm206_vm0 = vcmask 130048   ;;  %vm209_vm1 = vcmask 123904   ;;  %v1436_v0 = vmov 0.0   ;;  %s2339_s16 = smov (!%p1472_p3, %s1387_s16), 1  ;;  %v1519_v1 = vld [vmem:[%s2333_s1] ss:$0 sm:$0xff] }
   0xc   : > { %207 = vst.msk [vmem:[#allocation2] sm:$0xff] %vm206_vm0, %v1436_v0  ;;  %208 = vst.msk [vmem:[#allocation2 + $0x8] sm:$0xff] %vm206_vm0, %v1436_v0  ;;  %s1416_s18 = sshll.u32 %s2339_s16, 6  ;;  %v1531_v2 = vld [vmem:[%s2334_s2] ss:$0 sm:$0xff]  ;;  %vm350_vm2 = vcmask 1040384  }
   0xd   : > { %211 = vst.msk [vmem:[#allocation2 + $0x18] sm:$0xff] %vm206_vm0, %v1436_v0  ;;  %212 = vst.msk [vmem:[#allocation2 + $0x20] sm:$0xff] %vm206_vm0, %v1436_v0  ;;  %s1526_s23 = scalar_lea.vmem %s2332_s0, %s1416_s18  ;;  %v1536_v3 = vld [vmem:[%s2335_s3 + $0x6] ss:$0 sm:$0xff]  ;;  %v1542_v5 = vld [vmem:[%s2335_s3] ss:$0 sm:$0xff]  ;;  %s2052_s11 = scalar_lea.vmem %s2336_s4, %s1416_s18 }
   0xe   : > { %214 = vst.msk [vmem:[#allocation2 + $0x30] sm:$0xff] %vm206_vm0, %v1436_v0  ;;  %215 = vst.msk [vmem:[#allocation2 + $0x38] sm:$0xff] %vm206_vm0, %v1436_v0  ;;  %v198_v4 = vld [vmem:[%s1526_s23] sm:$0xff]  ;;  %v1545_v6 = vld [vmem:[%s1526_s23 + $0x8] sm:$0xff]  ;;  %vm449_vm3 = vcmask 1046528   ;;  %vm527_vm4 = vcmask 1045504  }
   0xf   : > { %217 = vst.msk [vmem:[#allocation2 + $0x48] sm:$0xff] %vm206_vm0, %v1436_v0  ;;  %218 = vst.msk [vmem:[#allocation2 + $0x50] sm:$0xff] %vm206_vm0, %v1436_v0  ;;  %v1548_v7 = vld [vmem:[%s1526_s23 + $0x10] sm:$0xff]  ;;  %v248_v8 = vmul.f32 %v1519_v1, %v198_v4  ;;  %v249_v9 = vmul.f32 %v1519_v1, %v1545_v6  ;;  %v1556_v11 = vld [vmem:[%s1526_s23 + $0x18] sm:$0xff] }
  0x10   : > { %220 = vst.msk [vmem:[#allocation2 + $0x60] sm:$0xff] %vm206_vm0, %v1436_v0  ;;  %221 = vst.msk [vmem:[#allocation2 + $0x68] sm:$0xff] %vm206_vm0, %v1436_v0  ;;  %v250_v10 = vmul.f32 %v1519_v1, %v1548_v7  ;;  %v1559_v12 = vld [vmem:[%s1526_s23 + $0x20] sm:$0xff]  ;;  %v1562_v13 = vld [vmem:[%s1526_s23 + $0x28] sm:$0xff]  ;;  %v251_v16 = vmul.f32 %v1519_v1, %v1556_v11 }
  0x11   : > { %223 = vst.msk [vmem:[#allocation2 + $0x78] sm:$0xff] %vm206_vm0, %v1436_v0  ;;  %224 = vst.msk [vmem:[#allocation2 + $0x80] sm:$0xff] %vm206_vm0, %v1436_v0  ;;  %v1569_v15 = vld [vmem:[%s2335_s3 + $0x2] ss:$0 sm:$0xff]  ;;  %v263_v17 = vadd.f32 %v1531_v2, %v248_v8  ;;  %v1577_v18 = vld [vmem:[%s2335_s3 + $0x3] ss:$0 sm:$0xff]  ;;  %v264_v19 = vadd.f32 %v1531_v2, %v249_v9  ;;  %v1588_v26 = vmul.f32 %v1519_v1, %v1559_v12 }
  0x12   : > { %226 = vst.msk [vmem:[#allocation2 + $0x90] sm:$0xff] %vm206_vm0, %v1436_v0  ;;  %227 = vst.msk [vmem:[#allocation2 + $0x98] sm:$0xff] %vm206_vm0, %v1436_v0  ;;  %v265_v20 = vadd.f32 %v1531_v2, %v250_v10  ;;  %v266_v25 = vadd.f32 %v1531_v2, %v251_v16  ;;  %v1592_v27 = vmul.f32 %v1519_v1, %v1562_v13  ;;  %v1600_v30 = vld [vmem:[%s2335_s3 + $0x1] ss:$0 sm:$0xff]  ;;  %v1618_v39 = vld [vmem:[%s2335_s3 + $0x4] ss:$0 sm:$0xff] }
  0x13   : > { %229 = vst.msk [vmem:[#allocation2 + $0xa8] sm:$0xff] %vm206_vm0, %v1436_v0  ;;  %230 = vst.msk [vmem:[#allocation2 + $0xb0] sm:$0xff] %vm206_vm0, %v1436_v0  ;;  %v280_v21 = vld [vmem:[#allocation2] sm:$0xff]  ;;  %v281_v22 = vld [vmem:[#allocation2 + $0x8] sm:$0xff] }
  0x14   : > { %232 = vst.msk [vmem:[#allocation2 + $0xc0] sm:$0xff] %vm206_vm0, %v1436_v0  ;;  %233 = vst.msk [vmem:[#allocation2 + $0xc8] sm:$0xff] %vm206_vm0, %v1436_v0  ;;  %v318_v28 = vmul.f32 %v1542_v5, %v280_v21  ;;  %v319_v29 = vmul.f32 %v1542_v5, %v281_v22  ;;  %v417_v31 = vmul.f32 %v1569_v15, %v281_v22  ;;  %v283_v32 = vld [vmem:[#allocation2 + $0x18] sm:$0xff] }
  0x15   : > { %235 = vst.msk [vmem:[#allocation2 + $0xd8] sm:$0xff] %vm206_vm0, %v1436_v0  ;;  %236 = vst.msk [vmem:[#allocation2 + $0xe0] sm:$0xff] %vm206_vm0, %v1436_v0  ;;  %v495_v36 = vmul.f32 %v1577_v18, %v281_v22  ;;  %v320_v38 = vmul.f32 %v1542_v5, %v283_v32  ;;  %v1623_v44 = vld [vmem:[#allocation2 + $0x30] sm:$0xff]  ;;  %v396_v46 = vmul.f32 %v1600_v30, %v281_v22 }
  0x16   : > { %238 = vst.msk [vmem:[#allocation2 + $0xf0] sm:$0xff] %vm206_vm0, %v1436_v0  ;;  %239 = vst.msk [vmem:[#allocation2 + $0xf8] sm:$0xff] %vm206_vm0, %v1436_v0  ;;  %v351_v41 = vrot.slane %v318_v28, 7  ;;  %v352_v42 = vrot.slane %v319_v29, 7  ;;  %v450_v43 = vrot.slane %v417_v31, 1  ;;  %v573_v52 = vmul.f32 %v1618_v39, %v283_v32 }
  0x17   : > { %210 = vst.msk [vmem:[#allocation2 + $0x10] sm:$0x3] %vm209_vm1, %v1436_v0  ;;  %213 = vst.msk [vmem:[#allocation2 + $0x28] sm:$0x3] %vm209_vm1, %v1436_v0  ;;  %v528_v48 = vrot.slane %v495_v36, 2  ;;  %v354_v55 = vrot.slane %v320_v38, 7  ;;  %v575_v56 = vmul.f32 %v1618_v39, %v1623_v44 }
  0x18   : > { %216 = vst.msk [vmem:[#allocation2 + $0x40] sm:$0x3] %vm209_vm1, %v1436_v0  ;;  %219 = vst.msk [vmem:[#allocation2 + $0x58] sm:$0x3] %vm209_vm1, %v1436_v0  ;;  %v353_v50 = vsel %vm350_vm2, %v351_v41, %v352_v42 }
  0x19   : > { %222 = vst.msk [vmem:[#allocation2 + $0x70] sm:$0x3] %vm209_vm1, %v1436_v0  ;;  %225 = vst.msk [vmem:[#allocation2 + $0x88] sm:$0x3] %vm209_vm1, %v1436_v0  ;;  %v383_v54 = vadd.f32 %v353_v50, %v198_v4  ;;  %v605_v4 = vrot.slane %v573_v52, 7 }
  0x1a   : > { %228 = vst.msk [vmem:[#allocation2 + $0xa0] sm:$0x3] %vm209_vm1, %v1436_v0  ;;  %231 = vst.msk [vmem:[#allocation2 + $0xb8] sm:$0x3] %vm209_vm1, %v1436_v0 }
  0x1b   : > { %234 = vst.msk [vmem:[#allocation2 + $0xd0] sm:$0x3] %vm209_vm1, %v1436_v0  ;;  %237 = vst.msk [vmem:[#allocation2 + $0xe8] sm:$0x3] %vm209_vm1, %v1436_v0  ;;  %v404_v62 = vadd.f32 %v396_v46, %v383_v54 }
  0x1c   : > { %240 = vst.msk [vmem:[#allocation2 + $0x100] sm:$0x3] %vm209_vm1, %v1436_v0 }
  0x1d   : > { %272 = vst.msk [vmem:[#allocation2 + $0x20] sm:$0xff] %vm206_vm0, %v263_v17  ;;  %273 = vst.msk [vmem:[#allocation2 + $0x38] sm:$0xff] %vm206_vm0, %v264_v19  ;;  %v608_v19 = vrot.slane %v575_v56, 7 }
  0x1e   : > { %v282_v23 = vld [vmem:[#allocation2 + $0x10] sm:$0x3]  ;;  %v1604_v33 = vld [vmem:[#allocation2 + $0x28] sm:$0x3]  ;;  %274 = vst.msk [vmem:[#allocation2 + $0x50] sm:$0xff] %vm206_vm0, %v265_v20  ;;  %275 = vst.msk [vmem:[#allocation2 + $0x68] sm:$0xff] %vm206_vm0, %v266_v25 }
  0x1f   : > { %v1564_v14 = vld [vmem:[#allocation2 + $0x40] sm:$0x3]  ;;  %v418_v35 = vmul.f32 %v1569_v15, %v282_v23  ;;  %v496_v37 = vmul.f32 %v1577_v18, %v282_v23  ;;  %v1621_v40 = vld [vmem:[#allocation2 + $0x58] sm:$0x3]  ;;  %v420_v45 = vmul.f32 %v1569_v15, %v1604_v33  ;;  %v498_v51 = vmul.f32 %v1577_v18, %v1604_v33  ;;  %v1666_v23 = vld [vmem:[%s2335_s3 + $0x5] ss:$0 sm:$0xff] }
  0x20   : > { %v1583_v24 = vmul.f32 %v1536_v3, %v1564_v14  ;;  %v1609_v34 = vmul.f32 %v1569_v15, %v1564_v14  ;;  %v1634_v53 = vmul.f32 %v1577_v18, %v1564_v14  ;;  %v1640_v57 = vmul.f32 %v1536_v3, %v1621_v40 }
  0x21   : > { %v451_v47 = vrot.slane %v418_v35, 1  ;;  %v529_v49 = vrot.slane %v496_v37, 2  ;;  %v454_v60 = vrot.slane %v420_v45, 1  ;;  %v532_v61 = vrot.slane %v498_v51, 2 }
  0x22   : > { %v1650_v8 = vmul.f32 %v1536_v3, %v1604_v33  ;;  %v707_v9 = vrot.slane %v1583_v24, 1  ;;  %v322_v24 = vmul.f32 %v1542_v5, %v1623_v44  ;;  %v457_v37 = vrot.slane %v1609_v34, 1 }
  0x23   : > { %v452_v58 = vsel %vm449_vm3, %v450_v43, %v451_v47  ;;  %v530_v59 = vsel %vm527_vm4, %v528_v48, %v529_v49  ;;  %v1682_v48 = vld [vmem:[#allocation2 + $0x48] sm:$0xff] }
  0x24   : > { %v1644_v63 = vld [vmem:[#allocation2 + $0x20] sm:$0xff]  ;;  %v1646_v0 = vld [vmem:[#allocation2 + $0x38] sm:$0xff]  ;;  %v482_v20 = vadd.f32 %v452_v58, %v404_v62  ;;  %v704_v43 = vrot.slane %v1650_v8, 1  ;;  %v357_v54 = vrot.slane %v322_v24, 7  ;;  %v577_v62 = vmul.f32 %v1618_v39, %v1682_v48 }
  0x25   : > { %v321_v10 = vmul.f32 %v1542_v5, %v1644_v63  ;;  %v419_v16 = vmul.f32 %v1569_v15, %v1644_v63  ;;  %v497_v17 = vmul.f32 %v1577_v18, %v1644_v63  ;;  %v574_v21 = vmul.f32 %v1618_v39, %v1644_v63  ;;  %v1684_v49 = vld [vmem:[#allocation2 + $0x50] sm:$0xff] }
  0x26   : > { %v576_v22 = vmul.f32 %v1618_v39, %v1646_v0  ;;  %v673_v31 = vmul.f32 %v1536_v3, %v1646_v0  ;;  %v397_v32 = vmul.f32 %v1600_v30, %v1644_v63  ;;  %v560_v38 = vadd.f32 %v530_v59, %v482_v20 }
  0x27   : > { %v355_v25 = vrot.slane %v321_v10, 7  ;;  %v453_v28 = vrot.slane %v419_v16, 1  ;;  %v531_v29 = vrot.slane %v497_v17, 2  ;;  %v606_v35 = vrot.slane %v574_v21, 7 }
  0x28   : > { %v609_v36 = vrot.slane %v576_v22, 7  ;;  %v651_v42 = vmul.f32 %v1666_v23, %v1646_v0  ;;  %v323_v34 = vmul.f32 %v1542_v5, %v1646_v0  ;;  %v706_v52 = vrot.slane %v673_v31, 1 }
  0x29   : > { %v356_v41 = vsel %vm350_vm2, %v354_v55, %v355_v25  ;;  %v455_v46 = vsel %vm449_vm3, %v453_v28, %v454_v60  ;;  %v607_v47 = vsel %vm350_vm2, %v605_v4, %v606_v35  ;;  %v533_v50 = vsel %vm527_vm4, %v531_v29, %v532_v61 }
  0x2a   : > { %v384_v45 = vadd.f32 %v356_v41, %v1545_v6  ;;  %v610_v51 = vsel %vm350_vm2, %v608_v19, %v609_v36  ;;  %v358_v56 = vrot.slane %v323_v34, 7  ;;  %v421_v6 = vmul.f32 %v1569_v15, %v1646_v0  ;;  %v1715_v36 = vld [vmem:[#allocation2 + $0x60] sm:$0xff] }
  0x2b   : > { %v499_v58 = vmul.f32 %v1577_v18, %v1646_v0  ;;  %v1694_v59 = vadd.f32 %v607_v47, %v560_v38  ;;  %v535_v60 = vrot.slane %v1634_v53, 2  ;;  %v578_v61 = vmul.f32 %v1618_v39, %v1684_v49  ;;  %v1721_v47 = vld [vmem:[#allocation2 + $0x68] sm:$0xff] }
  0x2c   : > { %v405_v55 = vadd.f32 %v397_v32, %v384_v45  ;;  %v359_v10 = vsel %vm350_vm2, %v357_v54, %v358_v56  ;;  %v456_v16 = vrot.slane %v421_v6, 1  ;;  %v708_v19 = vsel %vm449_vm3, %v706_v52, %v707_v9 }
  0x2d   : > { %v534_v17 = vrot.slane %v499_v58, 2  ;;  %v385_v20 = vadd.f32 %v359_v10, %v1548_v7  ;;  %v398_v21 = vmul.f32 %v1600_v30, %v1646_v0  ;;  %v675_v53 = vmul.f32 %v1536_v3, %v1684_v49  ;;  %v1731_v58 = vld [vmem:[#allocation2 + $0x70] sm:$0x3] }
  0x2e   : > { %v483_v4 = vadd.f32 %v455_v46, %v405_v55  ;;  %v611_v24 = vrot.slane %v577_v62, 7  ;;  %v612_v25 = vrot.slane %v578_v61, 7  ;;  %v652_v28 = vmul.f32 %v1666_v23, %v1684_v49 }
  0x2f   : > { %v406_v29 = vadd.f32 %v398_v21, %v385_v20  ;;  %v458_v31 = vsel %vm449_vm3, %v456_v16, %v457_v37  ;;  %v536_v32 = vsel %vm527_vm4, %v534_v17, %v535_v60  ;;  %v324_v7 = vmul.f32 %v1542_v5, %v1682_v48 }
  0x30   : > { %v561_v22 = vadd.f32 %v533_v50, %v483_v4  ;;  %v710_v35 = vrot.slane %v1640_v57, 1  ;;  %v325_v38 = vmul.f32 %v1542_v5, %v1684_v49  ;;  %v423_v41 = vmul.f32 %v1569_v15, %v1684_v49 }
  0x31   : > { %v484_v45 = vadd.f32 %v458_v31, %v406_v29  ;;  %v709_v46 = vrot.slane %v675_v53, 1  ;;  %v360_v37 = vrot.slane %v324_v7, 7  ;;  %v424_v34 = vmul.f32 %v1569_v15, %v1621_v40 }
  0x32   : > { %v638_v9 = vadd.f32 %v610_v51, %v561_v22  ;;  %v361_v51 = vrot.slane %v325_v38, 7  ;;  %v459_v52 = vrot.slane %v423_v41, 1  ;;  %v501_v57 = vmul.f32 %v1577_v18, %v1684_v49  ;;  %v1756_v41 = vld [vmem:[#allocation2 + $0x78] sm:$0xff] }
  0x33   : > { %v562_v54 = vadd.f32 %v536_v32, %v484_v45  ;;  %v460_v55 = vrot.slane %v424_v34, 1  ;;  %v502_v56 = vmul.f32 %v1577_v18, %v1621_v40  ;;  %v579_v6 = vmul.f32 %v1618_v39, %v1715_v36 }
  0x34   : > { %v659_v50 = vadd.f32 %v651_v42, %v638_v9  ;;  %v613_v60 = vsel %vm350_vm2, %v611_v24, %v612_v25  ;;  %v362_v62 = vsel %vm350_vm2, %v360_v37, %v361_v51  ;;  %v399_v42 = vmul.f32 %v1600_v30, %v1684_v49 }
  0x35   : > { %v580_v61 = vmul.f32 %v1618_v39, %v1721_v47  ;;  %v639_v4 = vadd.f32 %v613_v60, %v562_v54  ;;  %v386_v10 = vadd.f32 %v362_v62, %v1556_v11  ;;  %v537_v16 = vrot.slane %v501_v57, 2 }
  0x36   : > { %v538_v17 = vrot.slane %v502_v56, 2  ;;  %v711_v20 = vsel %vm449_vm3, %v709_v46, %v710_v35  ;;  %v614_v21 = vrot.slane %v579_v6, 7  ;;  %v677_v22 = vmul.f32 %v1536_v3, %v1721_v47 }
  0x37   : > { %v615_v53 = vrot.slane %v580_v61, 7  ;;  %v1743_v24 = vadd.f32 %v708_v19, %v659_v50  ;;  %v407_v25 = vadd.f32 %v399_v42, %v386_v10  ;;  %v461_v29 = vsel %vm449_vm3, %v459_v52, %v460_v55 }
  0x38   : > { %v678_v31 = vmul.f32 %v1536_v3, %v1731_v58  ;;  %v660_v32 = vadd.f32 %v652_v28, %v639_v4  ;;  %v653_v11 = vmul.f32 %v1666_v23, %v1721_v47  ;;  %v267_v7 = vadd.f32 %v1531_v2, %v1588_v26  ;;  %v1760_v28 = vld [vmem:[#allocation2 + $0x88] sm:$0x3] }
  0x39   : > { %v326_v9 = vmul.f32 %v1542_v5, %v1715_v36  ;;  %v485_v35 = vadd.f32 %v461_v29, %v407_v25  ;;  %v539_v19 = vsel %vm527_vm4, %v537_v16, %v538_v17  ;;  %v616_v38 = vsel %vm350_vm2, %v614_v21, %v615_v53  ;;  %v1784_v25 = vld [vmem:[#allocation2 + $0x90] sm:$0xff] }
  0x3a   : > { %v327_v45 = vmul.f32 %v1542_v5, %v1721_v47  ;;  %v712_v46 = vrot.slane %v677_v22, 1  ;;  %276 = vst.msk [vmem:[#allocation2 + $0x80] sm:$0xff] %vm206_vm0, %v267_v7  ;;  %v425_v26 = vmul.f32 %v1569_v15, %v1721_v47  ;;  %v426_v34 = vmul.f32 %v1569_v15, %v1731_v58 }
  0x3b   : > { %v363_v37 = vrot.slane %v326_v9, 7  ;;  %v563_v50 = vadd.f32 %v539_v19, %v485_v35  ;;  %v713_v51 = vrot.slane %v678_v31, 1  ;;  %v503_v57 = vmul.f32 %v1577_v18, %v1721_v47  ;;  %v1788_v31 = vld [vmem:[#allocation2 + $0xa0] sm:$0x3] }
  0x3c   : > { %v364_v52 = vrot.slane %v327_v45, 7  ;;  %v462_v54 = vrot.slane %v425_v26, 1  ;;  %v463_v55 = vrot.slane %v426_v34, 1  ;;  %v504_v56 = vmul.f32 %v1577_v18, %v1731_v58 }
  0x3d   : > { %v581_v6 = vmul.f32 %v1618_v39, %v1756_v41  ;;  %v640_v60 = vadd.f32 %v616_v38, %v563_v50  ;;  %v540_v42 = vrot.slane %v503_v57, 2  ;;  %v680_v61 = vmul.f32 %v1536_v3, %v1760_v28 }
  0x3e   : > { %v365_v62 = vsel %vm350_vm2, %v363_v37, %v364_v52  ;;  %v1776_v4 = vadd.f32 %v711_v20, %v660_v32  ;;  %v400_v16 = vmul.f32 %v1600_v30, %v1721_v47  ;;  %v541_v17 = vrot.slane %v504_v56, 2  ;;  %v204_v56 = vld [vmem:[%s1526_s23 + $0x30] sm:$0xff] }
  0x3f   : > { %v387_v10 = vadd.f32 %v365_v62, %v1559_v12  ;;  %v661_v21 = vadd.f32 %v653_v11, %v640_v60  ;;  %v714_v53 = vsel %vm449_vm3, %v712_v46, %v713_v51  ;;  %v268_v22 = vadd.f32 %v1531_v2, %v1592_v27 }
  0x40   : > { %v328_v29 = vmul.f32 %v1542_v5, %v1756_v41  ;;  %v464_v12 = vsel %vm449_vm3, %v462_v54, %v463_v55  ;;  %v617_v32 = vrot.slane %v581_v6, 7  ;;  %v716_v7 = vrot.slane %v680_v61, 1 }
  0x41   : > { %v408_v20 = vadd.f32 %v400_v16, %v387_v10  ;;  %v1791_v9 = vadd.f32 %v714_v53, %v661_v21  ;;  %v1793_v11 = vld [vmem:[#allocation2 + $0x80] sm:$0xff]  ;;  %v542_v35 = vsel %vm527_vm4, %v540_v42, %v541_v17  ;;  %277 = vst.msk [vmem:[#allocation2 + $0x98] sm:$0xff] %vm206_vm0, %v268_v22  ;;  %v428_v27 = vmul.f32 %v1569_v15, %v1760_v28 }
  0x42   : > { %v506_v19 = vmul.f32 %v1577_v18, %v1760_v28  ;;  %v582_v45 = vmul.f32 %v1618_v39, %v1793_v11  ;;  %v679_v46 = vmul.f32 %v1536_v3, %v1793_v11  ;;  %v583_v37 = vmul.f32 %v1618_v39, %v1784_v25 }
  0x43   : > { %v486_v38 = vadd.f32 %v464_v12, %v408_v20  ;;  %v329_v26 = vmul.f32 %v1542_v5, %v1793_v11  ;;  %v366_v34 = vrot.slane %v328_v29, 7  ;;  %v427_v50 = vmul.f32 %v1569_v15, %v1793_v11 }
  0x44   : > { %v682_v51 = vmul.f32 %v1536_v3, %v1788_v31  ;;  %v618_v57 = vrot.slane %v582_v45, 7  ;;  %v715_v54 = vrot.slane %v679_v46, 1  ;;  %v505_v55 = vmul.f32 %v1577_v18, %v1793_v11 }
  0x45   : > { %v564_v52 = vadd.f32 %v542_v35, %v486_v38  ;;  %v654_v6 = vmul.f32 %v1666_v23, %v1793_v11  ;;  %v367_v60 = vrot.slane %v329_v26, 7  ;;  %v465_v62 = vrot.slane %v427_v50, 1 }
  0x46   : > { %v466_v42 = vrot.slane %v428_v27, 1  ;;  %v619_v61 = vsel %vm350_vm2, %v617_v32, %v618_v57  ;;  %v401_v10 = vmul.f32 %v1600_v30, %v1793_v11  ;;  %v544_v16 = vrot.slane %v506_v19, 2  ;;  %v1840_v57 = vld [vmem:[#allocation2 + $0xa8] sm:$0xff] }
  0x47   : > { %v620_v17 = vrot.slane %v583_v37, 7  ;;  %v641_v21 = vadd.f32 %v619_v61, %v564_v52  ;;  %v368_v53 = vsel %vm350_vm2, %v366_v34, %v367_v60  ;;  %v543_v22 = vrot.slane %v505_v55, 2 }
  0x48   : > { %v254_v29 = vmul.f32 %v1519_v1, %v204_v56  ;;  %v717_v20 = vsel %vm449_vm3, %v715_v54, %v716_v7  ;;  %v1824_v12 = vld [vmem:[#allocation2 + $0x98] sm:$0xff]  ;;  %v388_v35 = vadd.f32 %v368_v53, %v1562_v13  ;;  %v719_v27 = vrot.slane %v682_v51, 1 }
  0x49   : > { %v330_v32 = vmul.f32 %v1542_v5, %v1784_v25  ;;  %v467_v38 = vsel %vm449_vm3, %v465_v62, %v466_v42  ;;  %v584_v19 = vmul.f32 %v1618_v39, %v1824_v12  ;;  %v681_v45 = vmul.f32 %v1536_v3, %v1824_v12  ;;  %v1842_v54 = vld [vmem:[#allocation2 + $0xb8] sm:$0x3] }
  0x4a   : > { %v430_v46 = vmul.f32 %v1569_v15, %v1788_v31  ;;  %v409_v7 = vadd.f32 %v401_v10, %v388_v35  ;;  %v269_v37 = vadd.f32 %v1531_v2, %v254_v29  ;;  %v331_v13 = vmul.f32 %v1542_v5, %v1824_v12 }
  0x4b   : > { %v369_v26 = vrot.slane %v330_v32, 7  ;;  %v662_v34 = vadd.f32 %v654_v6, %v641_v21  ;;  %v545_v50 = vsel %vm527_vm4, %v543_v22, %v544_v16  ;;  %v621_v51 = vrot.slane %v584_v19, 7  ;;  %v205_v21 = vld [vmem:[%s1526_s23 + $0x38] sm:$0xff] }
  0x4c   : > { %v718_v52 = vrot.slane %v681_v45, 1  ;;  %v487_v55 = vadd.f32 %v467_v38, %v409_v7  ;;  %278 = vst.msk [vmem:[#allocation2 + $0xb0] sm:$0xff] %vm206_vm0, %v269_v37  ;;  %v370_v60 = vrot.slane %v331_v13, 7  ;;  %v402_v62 = vmul.f32 %v1600_v30, %v1824_v12 }
  0x4d   : > { %v429_v42 = vmul.f32 %v1569_v15, %v1824_v12  ;;  %v622_v6 = vsel %vm350_vm2, %v620_v17, %v621_v51  ;;  %v469_v61 = vrot.slane %v430_v46, 1  ;;  %v507_v10 = vmul.f32 %v1577_v18, %v1824_v12 }
  0x4e   : > { %v508_v16 = vmul.f32 %v1577_v18, %v1788_v31  ;;  %v565_v53 = vadd.f32 %v545_v50, %v487_v55  ;;  %v371_v22 = vsel %vm350_vm2, %v369_v26, %v370_v60  ;;  %v585_v35 = vmul.f32 %v1618_v39, %v1840_v57  ;;  %v1871_v50 = vld [vmem:[#allocation2 + $0xc0] sm:$0xff] }
  0x4f   : > { %v468_v29 = vrot.slane %v429_v42, 1  ;;  %v389_v32 = vadd.f32 %v371_v22, %v204_v56  ;;  %v546_v38 = vrot.slane %v507_v10, 2  ;;  %v1860_v17 = vmul.f32 %v1536_v3, %v1842_v54 }
  0x50   : > { %v547_v19 = vrot.slane %v508_v16, 2  ;;  %v1862_v45 = vadd.f32 %v717_v20, %v662_v34  ;;  %v642_v46 = vadd.f32 %v622_v6, %v565_v53  ;;  %v655_v7 = vmul.f32 %v1666_v23, %v1824_v12 }
  0x51   : > { %v255_v37 = vmul.f32 %v1519_v1, %v205_v21  ;;  %v1868_v13 = vsel %vm449_vm3, %v718_v52, %v719_v27  ;;  %v410_v26 = vadd.f32 %v402_v62, %v389_v32  ;;  %v470_v56 = vsel %vm449_vm3, %v468_v29, %v469_v61 }
  0x52   : > { %v332_v51 = vmul.f32 %v1542_v5, %v1840_v57  ;;  %v548_v20 = vsel %vm527_vm4, %v546_v38, %v547_v19  ;;  %v623_v34 = vrot.slane %v585_v35, 7  ;;  %v432_v60 = vmul.f32 %v1569_v15, %v1842_v54 }
  0x53   : > { %v270_v55 = vadd.f32 %v1531_v2, %v255_v37  ;;  %v1879_v1 = vadd.f32 %v655_v7, %v642_v46  ;;  %v1881_v27 = vld [vmem:[#allocation2 + $0xb0] sm:$0xff]  ;;  %v488_v52 = vadd.f32 %v470_v56, %v410_v26  ;;  %v722_v62 = vrot.slane %v1860_v17, 1 }
  0x54   : > { %v510_v42 = vmul.f32 %v1577_v18, %v1842_v54  ;;  %v586_v6 = vmul.f32 %v1618_v39, %v1881_v27  ;;  %v1890_v61 = vmul.f32 %v1536_v3, %v1881_v27  ;;  %v372_v2 = vrot.slane %v332_v51, 7 }
  0x55   : > { %279 = vst.msk [vmem:[#allocation2 + $0xc8] sm:$0xff] %vm206_vm0, %v270_v55  ;;  %v587_v10 = vmul.f32 %v1618_v39, %v1871_v50  ;;  %v566_v16 = vadd.f32 %v548_v20, %v488_v52  ;;  %v333_v53 = vmul.f32 %v1542_v5, %v1881_v27  ;;  %v431_v22 = vmul.f32 %v1569_v15, %v1881_v27  ;;  %v1911_v15 = vld [vmem:[%s2335_s3 + $0x7] ss:$0 sm:$0xff] }
  0x56   : > { %v650_v29 = vmul.f32 %v1666_v23, %v1644_v63  ;;  %v624_v35 = vrot.slane %v586_v6, 7  ;;  %v656_v32 = vmul.f32 %v1666_v23, %v1881_v27  ;;  %v472_v38 = vrot.slane %v432_v60, 1 }
  0x57   : > { %v509_v19 = vmul.f32 %v1577_v18, %v1881_v27  ;;  %v721_v46 = vrot.slane %v1890_v61, 1  ;;  %v373_v7 = vrot.slane %v333_v53, 7  ;;  %v403_v5 = vmul.f32 %v1600_v30, %v1881_v27  ;;  %v1917_v18 = vld [vmem:[%s2335_s3 + $0x8] ss:$0 sm:$0xff] }
  0x58   : > { %v471_v37 = vrot.slane %v431_v22, 1  ;;  %v625_v26 = vsel %vm350_vm2, %v623_v34, %v624_v35  ;;  %v550_v51 = vrot.slane %v510_v42, 2  ;;  %v626_v20 = vrot.slane %v587_v10, 7 }
  0x59   : > { %v549_v56 = vrot.slane %v509_v19, 2  ;;  %v643_v55 = vadd.f32 %v625_v26, %v566_v16  ;;  %v374_v60 = vsel %vm350_vm2, %v372_v2, %v373_v7  ;;  %v658_v30 = vadd.f32 %v650_v29, %v1694_v59  ;;  %v1947_v29 = vld [vmem:[%s2335_s3 + $0xa] ss:$0 sm:$0xff] }
  0x5a   : > { %v671_v52 = vmul.f32 %v1536_v3, %v1644_v63  ;;  %v390_v6 = vadd.f32 %v374_v60, %v205_v21  ;;  %v473_v61 = vsel %vm449_vm3, %v471_v37, %v472_v38  ;;  %v748_v34 = vmul.f32 %v1911_v15, %v1644_v63  ;;  %v1957_v37 = vld [vmem:[%s2335_s3 + $0xb] ss:$0 sm:$0xff] }
  0x5b   : > { %v749_v42 = vmul.f32 %v1911_v15, %v1604_v33  ;;  %v1928_v10 = vadd.f32 %v656_v32, %v643_v55  ;;  %v825_v59 = vmul.f32 %v1917_v18, %v1623_v44  ;;  %v826_v3 = vmul.f32 %v1917_v18, %v1646_v0  ;;  %v1942_v33 = vld [vmem:[%s2335_s3 + $0x9] ss:$0 sm:$0xff] }
  0x5c   : > { %v1930_v53 = vld [vmem:[#allocation2 + $0xc8] sm:$0xff]  ;;  %v703_v16 = vrot.slane %v671_v52, 1  ;;  %v411_v21 = vadd.f32 %v403_v5, %v390_v6  ;;  %v551_v2 = vsel %vm527_vm4, %v549_v56, %v550_v51  ;;  %v780_v22 = vrot.slane %v748_v34, 2 }
  0x5d   : > { %v588_v63 = vmul.f32 %v1618_v39, %v1930_v53  ;;  %v657_v44 = vmul.f32 %v1666_v23, %v1930_v53  ;;  %v781_v32 = vrot.slane %v749_v42, 2  ;;  %v857_v39 = vrot.slane %v825_v59, 7  ;;  %v1969_v56 = vld [vmem:[%s2335_s3 + $0xc] ss:$0 sm:$0xff] }
  0x5e   : > { %v705_v35 = vsel %vm449_vm3, %v703_v16, %v704_v43  ;;  %v489_v38 = vadd.f32 %v473_v61, %v411_v21  ;;  %v858_v5 = vrot.slane %v826_v3, 7  ;;  %v902_v23 = vmul.f32 %v1942_v33, %v1646_v0  ;;  %v1989_v21 = vld [vmem:[%s2335_s3 + $0xf] ss:$0 sm:$0xff] }
  0x5f   : > { %v627_v19 = vrot.slane %v588_v63, 7  ;;  %v735_v7 = vadd.f32 %v705_v35, %v658_v30  ;;  %v782_v26 = vsel %vm527_vm4, %v780_v22, %v781_v32  ;;  %v923_v8 = vmul.f32 %v1947_v29, %v1646_v0  ;;  %v2003_v32 = vld [vmem:[%s2335_s3 + $0xd] ss:$0 sm:$0xff] }
  0x60   : > { %v924_v43 = vmul.f32 %v1947_v29, %v1564_v14  ;;  %v567_v51 = vadd.f32 %v551_v2, %v489_v38  ;;  %v859_v30 = vsel %vm350_vm2, %v857_v39, %v858_v5  ;;  %v1000_v61 = vmul.f32 %v1957_v37, %v1646_v0 }
  0x61   : > { %v628_v55 = vsel %vm350_vm2, %v626_v20, %v627_v19  ;;  %v812_v60 = vadd.f32 %v782_v26, %v735_v7  ;;  %v955_v52 = vrot.slane %v923_v8, 1  ;;  %v1001_v34 = vmul.f32 %v1957_v37, %v1564_v14  ;;  %v1984_v20 = vld [vmem:[%s2335_s3 + $0xe] ss:$0 sm:$0xff] }
  0x62   : > { %v956_v6 = vrot.slane %v924_v43, 1  ;;  %v644_v42 = vadd.f32 %v628_v55, %v567_v51  ;;  %v1077_v59 = vmul.f32 %v1969_v56, %v1682_v48  ;;  %v1078_v3 = vmul.f32 %v1969_v56, %v1684_v49 }
  0x63   : > { %v889_v16 = vadd.f32 %v859_v30, %v812_v60  ;;  %v1993_v2 = vadd.f32 %v1868_v13, %v1879_v1  ;;  %v1998_v63 = vsel %vm449_vm3, %v721_v46, %v722_v62  ;;  %v1032_v22 = vrot.slane %v1000_v61, 2 }
  0x64   : > { %v1033_v35 = vrot.slane %v1001_v34, 2  ;;  %v2005_v39 = vadd.f32 %v657_v44, %v644_v42  ;;  %v1109_v19 = vrot.slane %v1077_v59, 7  ;;  %v1110_v7 = vrot.slane %v1078_v3, 7 }
  0x65   : > { %v910_v38 = vadd.f32 %v902_v23, %v889_v16  ;;  %v957_v13 = vsel %vm449_vm3, %v955_v52, %v956_v6  ;;  %v1175_v17 = vmul.f32 %v1984_v20, %v1684_v49  ;;  %v1176_v1 = vmul.f32 %v1984_v20, %v1621_v40 }
  0x66   : > { %v1252_v62 = vmul.f32 %v1989_v21, %v1684_v49  ;;  %v1154_v5 = vmul.f32 %v2003_v32, %v1684_v49  ;;  %v1253_v44 = vmul.f32 %v1989_v21, %v1621_v40  ;;  %v750_v26 = vmul.f32 %v1911_v15, %v1646_v0 }
  0x67   : > { %v987_v46 = vadd.f32 %v957_v13, %v910_v38  ;;  %v1034_v23 = vsel %vm527_vm4, %v1032_v22, %v1033_v35  ;;  %v1207_v8 = vrot.slane %v1175_v17, 1  ;;  %v1208_v43 = vrot.slane %v1176_v1, 1 }
  0x68   : > { %v751_v51 = vmul.f32 %v1911_v15, %v1564_v14  ;;  %v1111_v60 = vsel %vm350_vm2, %v1109_v19, %v1110_v7  ;;  %v783_v30 = vrot.slane %v750_v26, 2  ;;  %v827_v52 = vmul.f32 %v1917_v18, %v1682_v48 }
  0x69   : > { %v1064_v55 = vadd.f32 %v1034_v23, %v987_v46  ;;  %v1284_v6 = vrot.slane %v1252_v62, 2  ;;  %v1285_v61 = vrot.slane %v1253_v44, 2  ;;  %v828_v0 = vmul.f32 %v1917_v18, %v1684_v49 }
  0x6a   : > { %v784_v34 = vrot.slane %v751_v51, 2  ;;  %v1209_v16 = vsel %vm449_vm3, %v1207_v8, %v1208_v43  ;;  %v860_v59 = vrot.slane %v827_v52, 7  ;;  %v925_v14 = vmul.f32 %v1947_v29, %v1684_v49 }
  0x6b   : > { %v1141_v42 = vadd.f32 %v1111_v60, %v1064_v55  ;;  %v861_v22 = vrot.slane %v828_v0, 7  ;;  %v926_v48 = vmul.f32 %v1947_v29, %v1621_v40  ;;  %v1002_v35 = vmul.f32 %v1957_v37, %v1684_v49 }
  0x6c   : > { %v785_v3 = vsel %vm527_vm4, %v783_v30, %v784_v34  ;;  %v958_v7 = vrot.slane %v925_v14, 1  ;;  %v1003_v13 = vmul.f32 %v1957_v37, %v1621_v40  ;;  %v903_v1 = vmul.f32 %v1942_v33, %v1684_v49 }
  0x6d   : > { %v1162_v38 = vadd.f32 %v1154_v5, %v1141_v42  ;;  %v813_v19 = vadd.f32 %v785_v3, %v1743_v24  ;;  %v862_v17 = vsel %vm350_vm2, %v860_v59, %v861_v22  ;;  %v959_v62 = vrot.slane %v926_v48, 1 }
  0x6e   : > { %v1079_v46 = vmul.f32 %v1969_v56, %v1715_v36  ;;  %v1286_v26 = vsel %vm527_vm4, %v1284_v6, %v1285_v61  ;;  %v1080_v24 = vmul.f32 %v1969_v56, %v1721_v47  ;;  %v1035_v5 = vrot.slane %v1002_v35, 2 }
  0x6f   : > { %v1239_v44 = vadd.f32 %v1209_v16, %v1162_v38  ;;  %v890_v23 = vadd.f32 %v862_v17, %v813_v19  ;;  %v1036_v8 = vrot.slane %v1003_v13, 2  ;;  %v1177_v51 = vmul.f32 %v1984_v20, %v1721_v47 }
  0x70   : > { %v1112_v43 = vrot.slane %v1079_v46, 7  ;;  %v960_v30 = vsel %vm449_vm3, %v958_v7, %v959_v62  ;;  %v1113_v52 = vrot.slane %v1080_v24, 7  ;;  %v1178_v6 = vmul.f32 %v1984_v20, %v1731_v58 }
  0x71   : > { %v1316_v55 = vadd.f32 %v1286_v26, %v1239_v44  ;;  %v911_v60 = vadd.f32 %v903_v1, %v890_v23  ;;  %v1210_v61 = vrot.slane %v1177_v51, 1  ;;  %v1254_v34 = vmul.f32 %v1989_v21, %v1721_v47 }
  0x72   : > { %v1255_v0 = vmul.f32 %v1989_v21, %v1731_v58  ;;  %v1155_v16 = vmul.f32 %v2003_v32, %v1721_v47  ;;  %v752_v59 = vmul.f32 %v1911_v15, %v1684_v49  ;;  %v753_v14 = vmul.f32 %v1911_v15, %v1621_v40 }
  0x73   : > { %1324 = vst.msk [vmem:[%s2052_s11] sm:$0xff] %vm206_vm0, %v1316_v55  ;;  %v988_v42 = vadd.f32 %v960_v30, %v911_v60  ;;  %v1037_v3 = vsel %vm527_vm4, %v1035_v5, %v1036_v8  ;;  %v1114_v22 = vsel %vm350_vm2, %v1112_v43, %v1113_v52  ;;  %v1211_v48 = vrot.slane %v1178_v6, 1 }
  0x74   : > { %v829_v35 = vmul.f32 %v1917_v18, %v1715_v36  ;;  %v786_v19 = vrot.slane %v752_v59, 2  ;;  %v787_v7 = vrot.slane %v753_v14, 2  ;;  %v830_v13 = vmul.f32 %v1917_v18, %v1721_v47 }
  0x75   : > { %v1065_v38 = vadd.f32 %v1037_v3, %v988_v42  ;;  %v1212_v17 = vsel %vm449_vm3, %v1210_v61, %v1211_v48  ;;  %v1287_v49 = vrot.slane %v1254_v34, 2  ;;  %v1288_v1 = vrot.slane %v1255_v0, 2 }
  0x76   : > { %v863_v62 = vrot.slane %v829_v35, 7  ;;  %v788_v46 = vsel %vm527_vm4, %v786_v19, %v787_v7  ;;  %v864_v44 = vrot.slane %v830_v13, 7  ;;  %v927_v26 = vmul.f32 %v1947_v29, %v1721_v47 }
  0x77   : > { %v1142_v40 = vadd.f32 %v1114_v22, %v1065_v38  ;;  %v814_v36 = vadd.f32 %v788_v46, %v1776_v4  ;;  %v928_v23 = vmul.f32 %v1947_v29, %v1731_v58  ;;  %v1004_v24 = vmul.f32 %v1957_v37, %v1721_v47 }
  0x78   : > { %v1005_v5 = vmul.f32 %v1957_v37, %v1731_v58  ;;  %v865_v43 = vsel %vm350_vm2, %v863_v62, %v864_v44  ;;  %v961_v51 = vrot.slane %v927_v26, 1  ;;  %v1081_v55 = vmul.f32 %v1969_v56, %v1756_v41 }
  0x79   : > { %v1163_v8 = vadd.f32 %v1155_v16, %v1142_v40  ;;  %v1289_v60 = vsel %vm527_vm4, %v1287_v49, %v1288_v1  ;;  %v891_v30 = vadd.f32 %v865_v43, %v814_v36  ;;  %v904_v4 = vmul.f32 %v1942_v33, %v1721_v47 }
  0x7a   : > { %v962_v52 = vrot.slane %v928_v23, 1  ;;  %v1038_v61 = vrot.slane %v1004_v24, 2  ;;  %v1039_v34 = vrot.slane %v1005_v5, 2  ;;  %v1082_v0 = vmul.f32 %v1969_v56, %v1793_v11 }
  0x7b   : > { %v1240_v6 = vadd.f32 %v1212_v17, %v1163_v8  ;;  %v912_v42 = vadd.f32 %v904_v4, %v891_v30  ;;  %v1115_v59 = vrot.slane %v1081_v55, 7  ;;  %v1179_v14 = vmul.f32 %v1984_v20, %v1793_v11 }
  0x7c   : > { %v963_v16 = vsel %vm449_vm3, %v961_v51, %v962_v52  ;;  %v1116_v22 = vrot.slane %v1082_v0, 7  ;;  %v1180_v48 = vmul.f32 %v1984_v20, %v1760_v28  ;;  %v1256_v35 = vmul.f32 %v1989_v21, %v1793_v11 }
  0x7d   : > { %v1317_v3 = vadd.f32 %v1289_v60, %v1240_v6  ;;  %v989_v38 = vadd.f32 %v963_v16, %v912_v42  ;;  %v1213_v19 = vrot.slane %v1179_v14, 1  ;;  %v1257_v7 = vmul.f32 %v1989_v21, %v1760_v28 }
  0x7e   : > { %v754_v13 = vmul.f32 %v1911_v15, %v1721_v47  ;;  %v1040_v17 = vsel %vm527_vm4, %v1038_v61, %v1039_v34  ;;  %v1156_v49 = vmul.f32 %v2003_v32, %v1793_v11  ;;  %v1214_v1 = vrot.slane %v1180_v48, 1 }
  0x7f   : > { %1325 = vst.msk [vmem:[%s2052_s11 + $0x8] sm:$0xff] %vm206_vm0, %v1317_v3  ;;  %v755_v62 = vmul.f32 %v1911_v15, %v1731_v58  ;;  %v1066_v40 = vadd.f32 %v1040_v17, %v989_v38  ;;  %v1117_v46 = vsel %vm350_vm2, %v1115_v59, %v1116_v22  ;;  %v831_v26 = vmul.f32 %v1917_v18, %v1756_v41 }
  0x80   : > { %v789_v44 = vrot.slane %v754_v13, 2  ;;  %v1290_v36 = vrot.slane %v1256_v35, 2  ;;  %v1291_v47 = vrot.slane %v1257_v7, 2  ;;  %v832_v24 = vmul.f32 %v1917_v18, %v1793_v11 }
  0x81   : > { %v790_v23 = vrot.slane %v755_v62, 2  ;;  %v1143_v5 = vadd.f32 %v1117_v46, %v1066_v40  ;;  %v1215_v8 = vsel %vm449_vm3, %v1213_v19, %v1214_v1  ;;  %v866_v43 = vrot.slane %v831_v26, 7 }
  0x82   : > { %v929_v58 = vmul.f32 %v1947_v29, %v1793_v11  ;;  %v867_v55 = vrot.slane %v832_v24, 7  ;;  %v930_v60 = vmul.f32 %v1947_v29, %v1760_v28  ;;  %v1006_v41 = vmul.f32 %v1957_v37, %v1793_v11 }
  0x83   : > { %v791_v51 = vsel %vm527_vm4, %v789_v44, %v790_v23  ;;  %v1164_v30 = vadd.f32 %v1156_v49, %v1143_v5  ;;  %v1007_v6 = vmul.f32 %v1957_v37, %v1760_v28  ;;  %v905_v34 = vmul.f32 %v1942_v33, %v1793_v11 }
  0x84   : > { %v815_v4 = vadd.f32 %v791_v51, %v1791_v9  ;;  %v964_v52 = vrot.slane %v929_v58, 1  ;;  %v868_v61 = vsel %vm350_vm2, %v866_v43, %v867_v55  ;;  %v965_v0 = vrot.slane %v930_v60, 1 }
  0x85   : > { %v1083_v42 = vmul.f32 %v1969_v56, %v1784_v25  ;;  %v1241_v16 = vadd.f32 %v1215_v8, %v1164_v30  ;;  %v1292_v59 = vsel %vm527_vm4, %v1290_v36, %v1291_v47  ;;  %v1084_v9 = vmul.f32 %v1969_v56, %v1824_v12 }
  0x86   : > { %v892_v14 = vadd.f32 %v868_v61, %v815_v4  ;;  %v1041_v3 = vrot.slane %v1006_v41, 2  ;;  %v1042_v22 = vrot.slane %v1007_v6, 2  ;;  %v1181_v35 = vmul.f32 %v1984_v20, %v1824_v12 }
  0x87   : > { %v1118_v48 = vrot.slane %v1083_v42, 7  ;;  %v1318_v38 = vadd.f32 %v1292_v59, %v1241_v16  ;;  %v966_v7 = vsel %vm449_vm3, %v964_v52, %v965_v0  ;;  %v1119_v13 = vrot.slane %v1084_v9, 7 }
  0x88   : > { %v913_v19 = vadd.f32 %v905_v34, %v892_v14  ;;  %v1182_v17 = vmul.f32 %v1984_v20, %v1788_v31  ;;  %v1216_v49 = vrot.slane %v1181_v35, 1  ;;  %v1258_v1 = vmul.f32 %v1989_v21, %v1824_v12 }
  0x89   : > { %v1259_v62 = vmul.f32 %v1989_v21, %v1788_v31  ;;  %1326 = vst.msk [vmem:[%s2052_s11 + $0x10] sm:$0xff] %vm206_vm0, %v1318_v38  ;;  %v1157_v46 = vmul.f32 %v2003_v32, %v1824_v12  ;;  %v756_v44 = vmul.f32 %v1911_v15, %v1793_v11  ;;  %v757_v26 = vmul.f32 %v1911_v15, %v1760_v28 }
  0x8a   : > { %v990_v40 = vadd.f32 %v966_v7, %v913_v19  ;;  %v1043_v36 = vsel %vm527_vm4, %v1041_v3, %v1042_v22  ;;  %v1120_v47 = vsel %vm350_vm2, %v1118_v48, %v1119_v13  ;;  %v1217_v23 = vrot.slane %v1182_v17, 1 }
  0x8b   : > { %v833_v24 = vmul.f32 %v1917_v18, %v1784_v25  ;;  %v792_v8 = vrot.slane %v756_v44, 2  ;;  %v793_v43 = vrot.slane %v757_v26, 2  ;;  %v834_v58 = vmul.f32 %v1917_v18, %v1824_v12 }
  0x8c   : > { %v1067_v5 = vadd.f32 %v1043_v36, %v990_v40  ;;  %v1218_v51 = vsel %vm449_vm3, %v1216_v49, %v1217_v23  ;;  %v1293_v11 = vrot.slane %v1258_v1, 2  ;;  %v1294_v55 = vrot.slane %v1259_v62, 2 }
  0x8d   : > { %v869_v60 = vrot.slane %v833_v24, 7  ;;  %v794_v41 = vsel %vm527_vm4, %v792_v8, %v793_v43  ;;  %v870_v30 = vrot.slane %v834_v58, 7  ;;  %v931_v4 = vmul.f32 %v1947_v29, %v1824_v12 }
  0x8e   : > { %v1144_v28 = vadd.f32 %v1120_v47, %v1067_v5  ;;  %v816_v25 = vadd.f32 %v794_v41, %v1862_v45  ;;  %v932_v52 = vmul.f32 %v1947_v29, %v1788_v31  ;;  %v1008_v6 = vmul.f32 %v1957_v37, %v1824_v12 }
  0x8f   : > { %v1009_v61 = vmul.f32 %v1957_v37, %v1788_v31  ;;  %v871_v0 = vsel %vm350_vm2, %v869_v60, %v870_v30  ;;  %v967_v42 = vrot.slane %v931_v4, 1  ;;  %v1085_v16 = vmul.f32 %v1969_v56, %v1840_v57 }
  0x90   : > { %v1165_v34 = vadd.f32 %v1157_v46, %v1144_v28  ;;  %v1295_v59 = vsel %vm527_vm4, %v1293_v11, %v1294_v55  ;;  %v893_v14 = vadd.f32 %v871_v0, %v816_v25  ;;  %v906_v45 = vmul.f32 %v1942_v33, %v1824_v12 }
  0x91   : > { %v968_v9 = vrot.slane %v932_v52, 1  ;;  %v1044_v22 = vrot.slane %v1008_v6, 2  ;;  %v1045_v48 = vrot.slane %v1009_v61, 2  ;;  %v1086_v35 = vmul.f32 %v1969_v56, %v1881_v27 }
  0x92   : > { %v1242_v3 = vadd.f32 %v1218_v51, %v1165_v34  ;;  %v914_v38 = vadd.f32 %v906_v45, %v893_v14  ;;  %v1121_v7 = vrot.slane %v1085_v16, 7  ;;  %v1183_v13 = vmul.f32 %v1984_v20, %v1881_v27 }
  0x93   : > { %v969_v19 = vsel %vm449_vm3, %v967_v42, %v968_v9  ;;  %v1122_v49 = vrot.slane %v1086_v35, 7  ;;  %v1184_v1 = vmul.f32 %v1984_v20, %v1842_v54  ;;  %v1260_v62 = vmul.f32 %v1989_v21, %v1881_v27 }
  0x94   : > { %v1319_v17 = vadd.f32 %v1295_v59, %v1242_v3  ;;  %v2189_v40 = vadd.f32 %v1998_v63, %v1928_v10  ;;  %v991_v46 = vadd.f32 %v969_v19, %v914_v38  ;;  %v1261_v44 = vmul.f32 %v1989_v21, %v1842_v54  ;;  %v2221_v59 = vld [vmem:[#allocation2 + $0xd0] sm:$0x3] }
  0x95   : > { %v758_v26 = vmul.f32 %v1911_v15, %v1824_v12  ;;  %v1046_v36 = vsel %vm527_vm4, %v1044_v22, %v1045_v48  ;;  %v1158_v47 = vmul.f32 %v2003_v32, %v1881_v27  ;;  %v1219_v23 = vrot.slane %v1183_v13, 1 }
  0x96   : > { %1327 = vst.msk [vmem:[%s2052_s11 + $0x18] sm:$0xff] %vm206_vm0, %v1319_v17  ;;  %v759_v24 = vmul.f32 %v1911_v15, %v1788_v31  ;;  %v1068_v10 = vadd.f32 %v1046_v36, %v991_v46  ;;  %v1123_v63 = vsel %vm350_vm2, %v1121_v7, %v1122_v49  ;;  %v835_v8 = vmul.f32 %v1917_v18, %v1840_v57 }
  0x97   : > { %v795_v5 = vrot.slane %v758_v26, 2  ;;  %v1220_v43 = vrot.slane %v1184_v1, 1  ;;  %v1296_v12 = vrot.slane %v1260_v62, 2  ;;  %v836_v51 = vmul.f32 %v1917_v18, %v1881_v27 }
  0x98   : > { %v796_v58 = vrot.slane %v759_v24, 2  ;;  %v1145_v11 = vadd.f32 %v1123_v63, %v1068_v10  ;;  %v1297_v55 = vrot.slane %v1261_v44, 2  ;;  %v872_v60 = vrot.slane %v835_v8, 7  ;;  %v307_v63 = vld [vmem:[#allocation2 + $0xd8] sm:$0xff] }
  0x99   : > { %v933_v28 = vmul.f32 %v1947_v29, %v1881_v27  ;;  %v873_v41 = vrot.slane %v836_v51, 7  ;;  %v934_v30 = vmul.f32 %v1947_v29, %v1842_v54  ;;  %v1010_v57 = vmul.f32 %v1957_v37, %v1881_v27 }
  0x9a   : > { %v797_v31 = vsel %vm527_vm4, %v795_v5, %v796_v58  ;;  %v1166_v4 = vadd.f32 %v1158_v47, %v1145_v11  ;;  %v1011_v6 = vmul.f32 %v1957_v37, %v1842_v54  ;;  %v1221_v61 = vsel %vm449_vm3, %v1219_v23, %v1220_v43 }
  0x9b   : > { %v817_v25 = vadd.f32 %v797_v31, %v1993_v2  ;;  %v970_v52 = vrot.slane %v933_v28, 1  ;;  %v874_v34 = vsel %vm350_vm2, %v872_v60, %v873_v41  ;;  %v971_v0 = vrot.slane %v934_v30, 1 }
  0x9c   : > { %v1087_v42 = vmul.f32 %v1969_v56, %v1871_v50  ;;  %v1243_v16 = vadd.f32 %v1221_v61, %v1166_v4  ;;  %v907_v2 = vmul.f32 %v1942_v33, %v1881_v27  ;;  %v1088_v45 = vmul.f32 %v1969_v56, %v1930_v53 }
  0x9d   : > { %v894_v14 = vadd.f32 %v874_v34, %v817_v25  ;;  %v1298_v9 = vsel %vm527_vm4, %v1296_v12, %v1297_v55  ;;  %v1047_v3 = vrot.slane %v1010_v57, 2  ;;  %v1048_v22 = vrot.slane %v1011_v6, 2  ;;  %v2261_v57 = vld [vmem:[#allocation2 + $0xe0] sm:$0xff] }
  0x9e   : > { %v1185_v48 = vmul.f32 %v1984_v20, %v1930_v53  ;;  %v1320_v35 = vadd.f32 %v1298_v9, %v1243_v16  ;;  %v972_v19 = vsel %vm449_vm3, %v970_v52, %v971_v0  ;;  %v1124_v7 = vrot.slane %v1087_v42, 7  ;;  %v309_v42 = vld [vmem:[#allocation2 + $0xe8] sm:$0x3] }
  0x9f   : > { %v915_v38 = vadd.f32 %v907_v2, %v894_v14  ;;  %v1125_v13 = vrot.slane %v1088_v45, 7  ;;  %v1186_v17 = vmul.f32 %v1984_v20, %v2221_v59  ;;  %v1262_v49 = vmul.f32 %v1989_v21, %v1930_v53 }
  0xa0   : > { %v1263_v1 = vmul.f32 %v1989_v21, %v2221_v59  ;;  %1328 = vst.msk [vmem:[%s2052_s11 + $0x20] sm:$0xff] %vm206_vm0, %v1320_v35  ;;  %v1222_v46 = vrot.slane %v1185_v48, 1  ;;  %v760_v44 = vmul.f32 %v1911_v15, %v1881_v27  ;;  %v761_v26 = vmul.f32 %v1911_v15, %v1842_v54 }
  0xa1   : > { %v992_v62 = vadd.f32 %v972_v19, %v915_v38  ;;  %v1049_v36 = vsel %vm527_vm4, %v1047_v3, %v1048_v22  ;;  %v1159_v47 = vmul.f32 %v2003_v32, %v1930_v53  ;;  %v1223_v23 = vrot.slane %v1186_v17, 1 }
  0xa2   : > { %v837_v24 = vmul.f32 %v1917_v18, %v1871_v50  ;;  %v798_v5 = vrot.slane %v760_v44, 2  ;;  %v799_v8 = vrot.slane %v761_v26, 2  ;;  %v838_v43 = vmul.f32 %v1917_v18, %v1930_v53 }
  0xa3   : > { %v1069_v10 = vadd.f32 %v1049_v36, %v992_v62  ;;  %v1126_v27 = vsel %vm350_vm2, %v1124_v7, %v1125_v13  ;;  %v1299_v12 = vrot.slane %v1262_v49, 2  ;;  %v1300_v54 = vrot.slane %v1263_v1, 2 }
  0xa4   : > { %v875_v58 = vrot.slane %v837_v24, 7  ;;  %v1224_v11 = vsel %vm449_vm3, %v1222_v46, %v1223_v23  ;;  %v800_v55 = vsel %vm527_vm4, %v798_v5, %v799_v8  ;;  %v876_v60 = vrot.slane %v838_v43, 7  ;;  %v1427_v46 = vld [vmem:[%s2335_s3 + $0x6] ss:$0 sm:$0xff] }
  0xa5   : > { %v1146_v51 = vadd.f32 %v1126_v27, %v1069_v10  ;;  %v818_v50 = vadd.f32 %v800_v55, %v2189_v40  ;;  %v2255_v28 = vmul.f32 %v1917_v18, %v307_v63  ;;  %v935_v31 = vmul.f32 %v1947_v29, %v1930_v53 }
  0xa6   : > { %v936_v41 = vmul.f32 %v1947_v29, %v2221_v59  ;;  %v877_v4 = vsel %vm350_vm2, %v875_v58, %v876_v60  ;;  %v908_v25 = vmul.f32 %v1942_v33, %v1930_v53  ;;  %v1012_v40 = vmul.f32 %v1957_v37, %v1930_v53 }
  0xa7   : > { %v1167_v30 = vadd.f32 %v1159_v47, %v1146_v51  ;;  %v895_v52 = vadd.f32 %v877_v4, %v818_v50  ;;  %v973_v6 = vrot.slane %v935_v31, 1  ;;  %v1013_v34 = vmul.f32 %v1957_v37, %v2221_v59  ;;  %v310_v51 = vld [vmem:[#allocation2 + $0xf0] sm:$0xff] }
  0xa8   : > { %v974_v61 = vrot.slane %v936_v41, 1  ;;  %v1050_v16 = vrot.slane %v1012_v40, 2  ;;  %v1089_v14 = vmul.f32 %v1969_v56, %v307_v63  ;;  %v1301_v2 = vsel %vm527_vm4, %v1299_v12, %v1300_v54  ;;  %v311_v41 = vld [vmem:[#allocation2 + $0xf8] sm:$0xff] }
  0xa9   : > { %v1244_v0 = vadd.f32 %v1224_v11, %v1167_v30  ;;  %v916_v45 = vadd.f32 %v908_v25, %v895_v52  ;;  %v1051_v9 = vrot.slane %v1013_v34, 2  ;;  %v1090_v3 = vmul.f32 %v1969_v56, %v2261_v57 }
  0xaa   : > { %v975_v48 = vsel %vm449_vm3, %v973_v6, %v974_v61  ;;  %v1127_v35 = vrot.slane %v1089_v14, 7  ;;  %v1187_v38 = vmul.f32 %v1984_v20, %v2261_v57  ;;  %v878_v19 = vrot.slane %v2255_v28, 7 }
  0xab   : > { %v1321_v22 = vadd.f32 %v1301_v2, %v1244_v0  ;;  %v993_v7 = vadd.f32 %v975_v48, %v916_v45  ;;  %v1128_v13 = vrot.slane %v1090_v3, 7  ;;  %v1188_v17 = vmul.f32 %v1984_v20, %v309_v42 }
  0xac   : > { %v1052_v49 = vsel %vm527_vm4, %v1050_v16, %v1051_v9  ;;  %v1264_v1 = vmul.f32 %v1989_v21, %v2261_v57  ;;  %v1265_v62 = vmul.f32 %v1989_v21, %v309_v42  ;;  %v685_v44 = vmul.f32 %v1427_v46, %v1930_v53  ;;  %v312_v16 = vld [vmem:[#allocation2 + $0x100] sm:$0x3] }
  0xad   : > { %1329 = vst.msk [vmem:[%s2052_s11 + $0x28] sm:$0xff] %vm206_vm0, %v1321_v22  ;;  %v938_v26 = vmul.f32 %v1947_v29, %v309_v42  ;;  %v1070_v36 = vadd.f32 %v1052_v49, %v993_v7  ;;  %v1225_v47 = vrot.slane %v1187_v38, 1  ;;  %v686_v23 = vmul.f32 %v1427_v46, %v2221_v59 }
  0xae   : > { %v1129_v24 = vsel %vm350_vm2, %v1127_v35, %v1128_v13  ;;  %v1226_v10 = vrot.slane %v1188_v17, 1  ;;  %v724_v63 = vrot.slane %v685_v44, 1  ;;  %v762_v5 = vmul.f32 %v1911_v15, %v1930_v53 }
  0xaf   : > { %v1147_v8 = vadd.f32 %v1129_v24, %v1070_v36  ;;  %v1160_v43 = vmul.f32 %v2003_v32, %v2261_v57  ;;  %v725_v27 = vrot.slane %v686_v23, 1  ;;  %v763_v12 = vmul.f32 %v1911_v15, %v2221_v59 }
  0xb0   : > { %v1302_v54 = vrot.slane %v1264_v1, 2  ;;  %v1303_v58 = vrot.slane %v1265_v62, 2  ;;  %v801_v11 = vrot.slane %v762_v5, 2  ;;  %v840_v55 = vmul.f32 %v1917_v18, %v2261_v57 }
  0xb1   : > { %v1168_v60 = vadd.f32 %v1160_v43, %v1147_v8  ;;  %v726_v50 = vsel %vm449_vm3, %v724_v63, %v725_v27  ;;  %v802_v28 = vrot.slane %v763_v12, 2  ;;  %v937_v53 = vmul.f32 %v1947_v29, %v2261_v57 }
  0xb2   : > { %v1227_v31 = vsel %vm449_vm3, %v1225_v47, %v1226_v10  ;;  %v742_v30 = vadd.f32 %v726_v50, %v2005_v39  ;;  %v879_v15 = vrot.slane %v840_v55, 7  ;;  %v1014_v59 = vmul.f32 %v1957_v37, %v2261_v57 }
  0xb3   : > { %v1245_v4 = vadd.f32 %v1227_v31, %v1168_v60  ;;  %v803_v18 = vsel %vm527_vm4, %v801_v11, %v802_v28  ;;  %v1015_v25 = vmul.f32 %v1957_v37, %v309_v42  ;;  %v1091_v40 = vmul.f32 %v1969_v56, %v310_v51 }
  0xb4   : > { %v1304_v52 = vsel %vm527_vm4, %v1302_v54, %v1303_v58  ;;  %v819_v29 = vadd.f32 %v803_v18, %v742_v30  ;;  %v880_v6 = vsel %vm350_vm2, %v878_v19, %v879_v15  ;;  %v977_v61 = vrot.slane %v938_v26, 1 }
  0xb5   : > { %v1322_v34 = vadd.f32 %v1304_v52, %v1245_v4  ;;  %v976_v39 = vrot.slane %v937_v53, 1  ;;  %v1092_v0 = vmul.f32 %v1969_v56, %v311_v41  ;;  %v909_v2 = vmul.f32 %v1942_v33, %v2261_v57 }
  0xb6   : > { %v896_v14 = vadd.f32 %v880_v6, %v819_v29  ;;  %v1053_v37 = vrot.slane %v1014_v59, 2  ;;  %v1054_v42 = vrot.slane %v1015_v25, 2  ;;  %v1130_v45 = vrot.slane %v1091_v40, 7 }
  0xb7   : > { %1330 = vst.msk [vmem:[%s2052_s11 + $0x30] sm:$0xff] %vm206_vm0, %v1322_v34  ;;  %v1131_v9 = vrot.slane %v1092_v0, 7  ;;  %v978_v22 = vsel %vm449_vm3, %v976_v39, %v977_v61  ;;  %v1189_v48 = vmul.f32 %v1984_v20, %v311_v41  ;;  %v1190_v35 = vmul.f32 %v1984_v20, %v312_v16 }
  0xb8   : > { %v917_v3 = vadd.f32 %v909_v2, %v896_v14  ;;  %v1055_v56 = vsel %vm527_vm4, %v1053_v37, %v1054_v42  ;;  %v1266_v33 = vmul.f32 %v1989_v21, %v311_v41  ;;  %v1267_v57 = vmul.f32 %v1989_v21, %v312_v16 }
  0xb9   : > { %v1132_v19 = vsel %vm350_vm2, %v1130_v45, %v1131_v9  ;;  %v1228_v13 = vrot.slane %v1189_v48, 1  ;;  %v1229_v17 = vrot.slane %v1190_v35, 1  ;;  %v1161_v1 = vmul.f32 %v2003_v32, %v311_v41 }
  0xba   : > { %v994_v38 = vadd.f32 %v978_v22, %v917_v3  ;;  %v1305_v62 = vrot.slane %v1266_v33, 2  ;;  %v1306_v46 = vrot.slane %v1267_v57, 2 }
  0xbb   : > { %v1230_v20 = vsel %vm449_vm3, %v1228_v13, %v1229_v17 }
  0xbc   : > { %v1071_v7 = vadd.f32 %v1055_v56, %v994_v38  ;;  %v1307_v36 = vsel %vm527_vm4, %v1305_v62, %v1306_v46 }
  0xbe   : > { %v1148_v49 = vadd.f32 %v1132_v19, %v1071_v7 }
  0xc0   : > { %v1169_v44 = vadd.f32 %v1161_v1, %v1148_v49 }
  0xc2   : > { %v1246_v26 = vadd.f32 %v1230_v20, %v1169_v44 }
  0xc4   : > { %v1323_v47 = vadd.f32 %v1307_v36, %v1246_v26 }
  0xc6   : > { %1331 = vst.msk [vmem:[%s2052_s11 + $0x38] sm:$0xff] %vm206_vm0, %v1323_v47 }
  0xc7 PF: > { %s14_s15 = sadd.s32 1, %s1434_s15  }
  0xc8   : > { %p11_p4 = scmp.ge.s32.totalorder %s14_s15, 4  }
  0xca   :  { %13 = sbr.rel (!%p11_p4) target bundleno = 1 (0x1), region = 67 }

// kernel: stage_forward.13
= control target key start
LH: loop header
LB: loop body
LE: loop exit
PB: predicated region body
PF: predicated region fallthrough
CT: control target
= control target key end

     0   :  { %vm113_vm0 = vcmask 64512   ;;  %vm1574_vm1 = vcmask 130048   ;;  %s4784_s1 = inlined_call_operand.vmem [shape: f32[8,2,16,8], index: 1, kind: input, shape index: {}]   ;;  %s4785_s0 = inlined_call_operand.vmem [shape: f32[8,2,16,8], index: 0, kind: input, shape index: {}]   ;;  %s4786_s3 = inlined_call_operand.vmem [shape: f32[2,16,16], index: 3, kind: input, shape index: {}]   ;;  %s4787_s2 = inlined_call_operand.vmem [shape: f32[8,2,16,8], index: 2, kind: input, shape index: {}]   ;;  %s4788_s4 = inlined_call_operand.vmem [shape: f32[8,2,16,8], index: 4, kind: output, shape index: {}]  }
   0x1   :  { %v50_v0 = vld [vmem:[%s4784_s1 + $0x8] sm:$0xff]  ;;  %v52_v1 = vld [vmem:[%s4784_s1 + $0x18] sm:$0xff]  ;;  %v49_v2 = vld [vmem:[%s4784_s1] sm:$0xff] }
   0x2   :  { %3483 = vmatprep.subr.msk.mxu0 %vm113_vm0, %v50_v0  ;;  %3490 = vmatprep.subr.msk.mxu1 %vm113_vm0, %v52_v1  ;;  %v51_v3 = vld [vmem:[%s4784_s1 + $0x10] sm:$0xff]  ;;  %v17_v4 = vld [vmem:[%s4785_s0] sm:$0xff]  ;;  %v54_v6 = vld [vmem:[%s4784_s1 + $0x28] sm:$0xff] }
   0x3   :  { %3484 = vmatpush3.xpose.msk.msra.mxu0 %vm113_vm0, %v50_v0  ;;  %3491 = vmatpush3.xpose.msk.msra.mxu1 %vm113_vm0, %v52_v1  ;;  %v19_v5 = vld [vmem:[%s4785_s0 + $0x10] sm:$0xff]  ;;  %v56_v7 = vld [vmem:[%s4784_s1 + $0x38] sm:$0xff]  ;;  %v18_v8 = vld [vmem:[%s4785_s0 + $0x8] sm:$0xff] }
   0x4   :  { %3485 = vmatprep.subr.msk.mxu0 %vm113_vm0, %v49_v2  ;;  %3492 = vmatprep.subr.msk.mxu1 %vm113_vm0, %v51_v3  ;;  %v20_v9 = vld [vmem:[%s4785_s0 + $0x18] sm:$0xff]  ;;  %v53_v10 = vld [vmem:[%s4784_s1 + $0x20] sm:$0xff]  ;;  %v55_v11 = vld [vmem:[%s4784_s1 + $0x30] sm:$0xff] }
   0x5   :  { %3487 = vmatprep.mubr.msk.f32.mxu0 %vm113_vm0, %v17_v4  ;;  %3494 = vmatprep.mubr.msk.f32.mxu1 %vm113_vm0, %v19_v5  ;;  %v23_v12 = vld [vmem:[%s4785_s0 + $0x30] sm:$0xff]  ;;  %v21_v13 = vld [vmem:[%s4785_s0 + $0x20] sm:$0xff]  ;;  %v58_v14 = vld [vmem:[%s4784_s1 + $0x48] sm:$0xff] }
   0x6   :  { %v60_v15 = vld [vmem:[%s4784_s1 + $0x58] sm:$0xff]  ;;  %v22_v17 = vld [vmem:[%s4785_s0 + $0x28] sm:$0xff]  ;;  %v57_v18 = vld [vmem:[%s4784_s1 + $0x40] sm:$0xff] }
   0x7   :  { %3486 = vmatpush3.xpose.msk.msra.mxu0 %vm113_vm0, %v49_v2  ;;  %3493 = vmatpush3.xpose.msk.msra.mxu1 %vm113_vm0, %v51_v3  ;;  %v24_v16 = vld [vmem:[%s4785_s0 + $0x38] sm:$0xff]  ;;  %v59_v19 = vld [vmem:[%s4784_s1 + $0x50] sm:$0xff]  ;;  %v25_v21 = vld [vmem:[%s4785_s0 + $0x40] sm:$0xff] }
   0x8   :  { %3497 = vmatprep.subr.msk.mxu0 %vm113_vm0, %v54_v6  ;;  %3504 = vmatprep.subr.msk.mxu1 %vm113_vm0, %v56_v7  ;;  %v27_v20 = vld [vmem:[%s4785_s0 + $0x50] sm:$0xff]  ;;  %v62_v22 = vld [vmem:[%s4784_s1 + $0x68] sm:$0xff]  ;;  %v64_v23 = vld [vmem:[%s4784_s1 + $0x78] sm:$0xff] }
   0x9   :  { %v28_v24 = vld [vmem:[%s4785_s0 + $0x58] sm:$0xff]  ;;  %v26_v25 = vld [vmem:[%s4785_s0 + $0x48] sm:$0xff]  ;;  %v61_v26 = vld [vmem:[%s4784_s1 + $0x60] sm:$0xff] }
   0xa   :  { %3488 = vmatmul.mubr.msk.f32.vlgmr.msra.gmra.mxu0 %vm113_vm0, %v18_v8  ;;  %3495 = vmatmul.mubr.msk.f32.vlgmr.msra.gmra.mxu1 %vm113_vm0, %v20_v9  ;;  %v63_v27 = vld [vmem:[%s4784_s1 + $0x70] sm:$0xff]  ;;  %v29_v29 = vld [vmem:[%s4785_s0 + $0x60] sm:$0xff]  ;;  %v66_v30 = vld [vmem:[%s4784_s1 + $0x88] sm:$0xff] }
   0xb   :  { %3498 = vmatpush3.xpose.msk.msra.mxu0 %vm113_vm0, %v54_v6  ;;  %3505 = vmatpush3.xpose.msk.msra.mxu1 %vm113_vm0, %v56_v7  ;;  %v31_v28 = vld [vmem:[%s4785_s0 + $0x70] sm:$0xff]  ;;  %v68_v31 = vld [vmem:[%s4784_s1 + $0x98] sm:$0xff]  ;;  %v30_v33 = vld [vmem:[%s4785_s0 + $0x68] sm:$0xff] }
   0xc   :  { %3499 = vmatprep.subr.msk.mxu0 %vm113_vm0, %v53_v10  ;;  %3506 = vmatprep.subr.msk.mxu1 %vm113_vm0, %v55_v11  ;;  %v32_v32 = vld [vmem:[%s4785_s0 + $0x78] sm:$0xff]  ;;  %v65_v34 = vld [vmem:[%s4784_s1 + $0x80] sm:$0xff]  ;;  %v67_v35 = vld [vmem:[%s4784_s1 + $0x90] sm:$0xff] }
   0xd   :  { %3508 = vmatprep.mubr.msk.f32.mxu1 %vm113_vm0, %v23_v12  ;;  %3501 = vmatprep.mubr.msk.f32.mxu0 %vm113_vm0, %v21_v13  ;;  %v35_v36 = vld [vmem:[%s4785_s0 + $0x90] sm:$0xff]  ;;  %v33_v37 = vld [vmem:[%s4785_s0 + $0x80] sm:$0xff]  ;;  %v70_v38 = vld [vmem:[%s4784_s1 + $0xa8] sm:$0xff] }
   0xe   :  { %v72_v39 = vld [vmem:[%s4784_s1 + $0xb8] sm:$0xff]  ;;  %v34_v41 = vld [vmem:[%s4785_s0 + $0x88] sm:$0xff]  ;;  %v69_v42 = vld [vmem:[%s4784_s1 + $0xa0] sm:$0xff] }
   0xf   :  { %3500 = vmatpush3.xpose.msk.msra.mxu0 %vm113_vm0, %v53_v10  ;;  %3507 = vmatpush3.xpose.msk.msra.mxu1 %vm113_vm0, %v55_v11  ;;  %v36_v40 = vld [vmem:[%s4785_s0 + $0x98] sm:$0xff]  ;;  %v71_v43 = vld [vmem:[%s4784_s1 + $0xb0] sm:$0xff]  ;;  %v37_v45 = vld [vmem:[%s4785_s0 + $0xa0] sm:$0xff] }
  0x10   :  { %3511 = vmatprep.subr.msk.mxu0 %vm113_vm0, %v58_v14  ;;  %3518 = vmatprep.subr.msk.mxu1 %vm113_vm0, %v60_v15  ;;  %v39_v44 = vld [vmem:[%s4785_s0 + $0xb0] sm:$0xff]  ;;  %v74_v46 = vld [vmem:[%s4784_s1 + $0xc8] sm:$0xff]  ;;  %v76_v47 = vld [vmem:[%s4784_s1 + $0xd8] sm:$0xff] }
  0x11   :  { %v40_v48 = vld [vmem:[%s4785_s0 + $0xb8] sm:$0xff]  ;;  %v38_v49 = vld [vmem:[%s4785_s0 + $0xa8] sm:$0xff]  ;;  %v73_v50 = vld [vmem:[%s4784_s1 + $0xc0] sm:$0xff] }
  0x12   :  { %3509 = vmatmul.mubr.msk.f32.vlgmr.msra.gmra.mxu1 %vm113_vm0, %v24_v16  ;;  %3502 = vmatmul.mubr.msk.f32.vlgmr.msra.gmra.mxu0 %vm113_vm0, %v22_v17  ;;  %v75_v51 = vld [vmem:[%s4784_s1 + $0xd0] sm:$0xff]  ;;  %v41_v53 = vld [vmem:[%s4785_s0 + $0xc0] sm:$0xff]  ;;  %v78_v54 = vld [vmem:[%s4784_s1 + $0xe8] sm:$0xff] }
  0x13   :  { %3512 = vmatpush3.xpose.msk.msra.mxu0 %vm113_vm0, %v58_v14  ;;  %3519 = vmatpush3.xpose.msk.msra.mxu1 %vm113_vm0, %v60_v15  ;;  %v43_v52 = vld [vmem:[%s4785_s0 + $0xd0] sm:$0xff]  ;;  %v80_v55 = vld [vmem:[%s4784_s1 + $0xf8] sm:$0xff]  ;;  %v42_v57 = vld [vmem:[%s4785_s0 + $0xc8] sm:$0xff] }
  0x14   :  { %3513 = vmatprep.subr.msk.mxu0 %vm113_vm0, %v57_v18  ;;  %3520 = vmatprep.subr.msk.mxu1 %vm113_vm0, %v59_v19  ;;  %v44_v56 = vld [vmem:[%s4785_s0 + $0xd8] sm:$0xff]  ;;  %v77_v58 = vld [vmem:[%s4784_s1 + $0xe0] sm:$0xff]  ;;  %v79_v59 = vld [vmem:[%s4784_s1 + $0xf0] sm:$0xff] }
  0x15   :  { %3522 = vmatprep.mubr.msk.f32.mxu1 %vm113_vm0, %v27_v20  ;;  %3515 = vmatprep.mubr.msk.f32.mxu0 %vm113_vm0, %v25_v21  ;;  %v45_v60 = vld [vmem:[%s4785_s0 + $0xe0] sm:$0xff]  ;;  %v47_v61 = vld [vmem:[%s4785_s0 + $0xf0] sm:$0xff]  ;;  %v46_v62 = vld [vmem:[%s4785_s0 + $0xe8] sm:$0xff] }
  0x16   :  { %v48_v63 = vld [vmem:[%s4785_s0 + $0xf8] sm:$0xff]  ;;  %v4151_v2 = vld [vmem:[%s4786_s3 + $0x8] sm:$0xff]  ;;  %v4161_v8 = vld [vmem:[%s4786_s3] sm:$0xff] }
  0x17   :  { %3514 = vmatpush3.xpose.msk.msra.mxu0 %vm113_vm0, %v57_v18  ;;  %3521 = vmatpush3.xpose.msk.msra.mxu1 %vm113_vm0, %v59_v19  ;;  %v4156_v3 = vld [vmem:[%s4786_s3 + $0x18] sm:$0xff]  ;;  %v4172_v13 = vld [vmem:[%s4786_s3 + $0x10] sm:$0xff] }
  0x18   :  { %3525 = vmatprep.subr.msk.mxu0 %vm113_vm0, %v62_v22  ;;  %3532 = vmatprep.subr.msk.mxu1 %vm113_vm0, %v64_v23 }
  0x1a   :  { %3523 = vmatmul.mubr.msk.f32.vlgmr.msra.gmra.mxu1 %vm113_vm0, %v28_v24  ;;  %3516 = vmatmul.mubr.msk.f32.vlgmr.msra.gmra.mxu0 %vm113_vm0, %v26_v25 }
  0x1b   :  { %3526 = vmatpush3.xpose.msk.msra.mxu0 %vm113_vm0, %v62_v22  ;;  %3533 = vmatpush3.xpose.msk.msra.mxu1 %vm113_vm0, %v64_v23 }
  0x1c   :  { %3527 = vmatprep.subr.msk.mxu0 %vm113_vm0, %v61_v26  ;;  %3534 = vmatprep.subr.msk.mxu1 %vm113_vm0, %v63_v27 }
  0x1d   :  { %3536 = vmatprep.mubr.msk.f32.mxu1 %vm113_vm0, %v31_v28  ;;  %3529 = vmatprep.mubr.msk.f32.mxu0 %vm113_vm0, %v29_v29 }
  0x1f   :  { %3528 = vmatpush3.xpose.msk.msra.mxu0 %vm113_vm0, %v61_v26  ;;  %3535 = vmatpush3.xpose.msk.msra.mxu1 %vm113_vm0, %v63_v27 }
  0x20   :  { %3539 = vmatprep.subr.msk.mxu0 %vm113_vm0, %v66_v30  ;;  %3546 = vmatprep.subr.msk.mxu1 %vm113_vm0, %v68_v31 }
  0x22   :  { %3537 = vmatmul.mubr.msk.f32.vlgmr.msra.gmra.mxu1 %vm113_vm0, %v32_v32  ;;  %3530 = vmatmul.mubr.msk.f32.vlgmr.msra.gmra.mxu0 %vm113_vm0, %v30_v33 }
  0x23   :  { %3540 = vmatpush3.xpose.msk.msra.mxu0 %vm113_vm0, %v66_v30  ;;  %3547 = vmatpush3.xpose.msk.msra.mxu1 %vm113_vm0, %v68_v31 }
  0x24   :  { %3541 = vmatprep.subr.msk.mxu0 %vm113_vm0, %v65_v34  ;;  %3548 = vmatprep.subr.msk.mxu1 %vm113_vm0, %v67_v35 }
  0x25   :  { %3550 = vmatprep.mubr.msk.f32.mxu1 %vm113_vm0, %v35_v36  ;;  %3543 = vmatprep.mubr.msk.f32.mxu0 %vm113_vm0, %v33_v37 }
  0x27   :  { %3542 = vmatpush3.xpose.msk.msra.mxu0 %vm113_vm0, %v65_v34  ;;  %3549 = vmatpush3.xpose.msk.msra.mxu1 %vm113_vm0, %v67_v35 }
  0x28   :  { %3553 = vmatprep.subr.msk.mxu0 %vm113_vm0, %v70_v38  ;;  %3560 = vmatprep.subr.msk.mxu1 %vm113_vm0, %v72_v39 }
  0x2a   :  { %3551 = vmatmul.mubr.msk.f32.vlgmr.msra.gmra.mxu1 %vm113_vm0, %v36_v40  ;;  %3544 = vmatmul.mubr.msk.f32.vlgmr.msra.gmra.mxu0 %vm113_vm0, %v34_v41 }
  0x2b   :  { %3554 = vmatpush3.xpose.msk.msra.mxu0 %vm113_vm0, %v70_v38  ;;  %3561 = vmatpush3.xpose.msk.msra.mxu1 %vm113_vm0, %v72_v39 }
  0x2c   :  { %3555 = vmatprep.subr.msk.mxu0 %vm113_vm0, %v69_v42  ;;  %3562 = vmatprep.subr.msk.mxu1 %vm113_vm0, %v71_v43 }
  0x2d   :  { %3564 = vmatprep.mubr.msk.f32.mxu1 %vm113_vm0, %v39_v44  ;;  %3557 = vmatprep.mubr.msk.f32.mxu0 %vm113_vm0, %v37_v45 }
  0x2f   :  { %3556 = vmatpush3.xpose.msk.msra.mxu0 %vm113_vm0, %v69_v42  ;;  %3563 = vmatpush3.xpose.msk.msra.mxu1 %vm113_vm0, %v71_v43 }
  0x30   :  { %3567 = vmatprep.subr.msk.mxu0 %vm113_vm0, %v74_v46  ;;  %3574 = vmatprep.subr.msk.mxu1 %vm113_vm0, %v76_v47 }
  0x32   :  { %3565 = vmatmul.mubr.msk.f32.vlgmr.msra.gmra.mxu1 %vm113_vm0, %v40_v48  ;;  %3558 = vmatmul.mubr.msk.f32.vlgmr.msra.gmra.mxu0 %vm113_vm0, %v38_v49 }
  0x33   :  { %3568 = vmatpush3.xpose.msk.msra.mxu0 %vm113_vm0, %v74_v46  ;;  %3575 = vmatpush3.xpose.msk.msra.mxu1 %vm113_vm0, %v76_v47 }
  0x34   :  { %3569 = vmatprep.subr.msk.mxu0 %vm113_vm0, %v73_v50  ;;  %3576 = vmatprep.subr.msk.mxu1 %vm113_vm0, %v75_v51 }
  0x35   :  { %3578 = vmatprep.mubr.msk.f32.mxu1 %vm113_vm0, %v43_v52  ;;  %3571 = vmatprep.mubr.msk.f32.mxu0 %vm113_vm0, %v41_v53 }
  0x37   :  { %3570 = vmatpush3.xpose.msk.msra.mxu0 %vm113_vm0, %v73_v50  ;;  %3577 = vmatpush3.xpose.msk.msra.mxu1 %vm113_vm0, %v75_v51 }
  0x38   :  { %3581 = vmatprep.subr.msk.mxu0 %vm113_vm0, %v78_v54  ;;  %3588 = vmatprep.subr.msk.mxu1 %vm113_vm0, %v80_v55 }
  0x3a   :  { %3579 = vmatmul.mubr.msk.f32.vlgmr.msra.gmra.mxu1 %vm113_vm0, %v44_v56  ;;  %3572 = vmatmul.mubr.msk.f32.vlgmr.msra.gmra.mxu0 %vm113_vm0, %v42_v57 }
  0x3b   :  { %3582 = vmatpush3.xpose.msk.msra.mxu0 %vm113_vm0, %v78_v54  ;;  %3589 = vmatpush3.xpose.msk.msra.mxu1 %vm113_vm0, %v80_v55 }
  0x3c   :  { %3583 = vmatprep.subr.msk.mxu0 %vm113_vm0, %v77_v58  ;;  %3590 = vmatprep.subr.msk.mxu1 %vm113_vm0, %v79_v59 }
  0x3d   :  { %3585 = vmatprep.mubr.msk.f32.mxu0 %vm113_vm0, %v45_v60  ;;  %3592 = vmatprep.mubr.msk.f32.mxu1 %vm113_vm0, %v47_v61 }
  0x3f   :  { %3584 = vmatpush3.xpose.msk.msra.mxu0 %vm113_vm0, %v77_v58  ;;  %3591 = vmatpush3.xpose.msk.msra.mxu1 %vm113_vm0, %v79_v59 }
  0x42   :  { %3586 = vmatmul.mubr.msk.f32.vlgmr.msra.gmra.mxu0 %vm113_vm0, %v46_v62  ;;  %3593 = vmatmul.mubr.msk.f32.vlgmr.msra.gmra.mxu1 %vm113_vm0, %v48_v63 }
  0xca   :  { %v3489_v0 = vpop.f32.mrf.mxu0  ;;  %v3496_v1 = vpop.f32.mrf.mxu1 }
  0xcb   :  { %v1507_v4 = vmul.f32 0.35355338, %v3489_v0  ;;  %v1509_v5 = vmul.f32 0.35355338, %v3496_v1 }
  0xcc   :  { %v192_v6 = vpop.f32.mrf.mxu0  ;;  %v279_v7 = vpop.f32.mrf.mxu1 }
  0xcd   :  { %v1506_v9 = vmul.f32 0.35355338, %v192_v6  ;;  %v1508_v10 = vmul.f32 0.35355338, %v279_v7  ;;  %v4164_v11 = vadd.f32 %v4151_v2, %v1507_v4  ;;  %v4167_v12 = vadd.f32 %v4156_v3, %v1509_v5 }
  0xcf   :  { %v1578_v14 = vsel %vm1574_vm1, %v4164_v11, -inf  ;;  %v4177_v15 = vadd.f32 %v4161_v8, %v1506_v9  ;;  %v4180_v16 = vadd.f32 %v4172_v13, %v1508_v10  ;;  %v1584_v18 = vsel %vm1574_vm1, %v4167_v12, -inf }
  0xd0   :  { %1579 = vmax.xlane.f32.xlu1 %v1578_v14 }
  0xd1   :  { %v1575_v17 = vsel %vm1574_vm1, %v4177_v15, -inf  ;;  %v1581_v25 = vsel %vm1574_vm1, %v4180_v16, -inf }
  0xd2   :  { %v3510_v19 = vpop.f32.mrf.mxu1  ;;  %1576 = vmax.xlane.f32.xlu0 %v1575_v17  ;;  %v3503_v20 = vpop.f32.mrf.mxu0 }
  0xd3   :  { %v1513_v21 = vmul.f32 0.35355338, %v3510_v19  ;;  %v1511_v22 = vmul.f32 0.35355338, %v3503_v20 }
  0xd4   :  { %1585 = vmax.xlane.f32.xlu1 %v1584_v18  ;;  %v366_v23 = vpop.f32.mrf.mxu0  ;;  %v453_v24 = vpop.f32.mrf.mxu1 }
  0xd5   :  { %v1510_v26 = vmul.f32 0.35355338, %v366_v23  ;;  %v1512_v27 = vmul.f32 0.35355338, %v453_v24  ;;  %v4189_v28 = vadd.f32 %v4156_v3, %v1513_v21  ;;  %v4192_v29 = vadd.f32 %v4151_v2, %v1511_v22 }
  0xd6   :  { %1582 = vmax.xlane.f32.xlu0 %v1581_v25 }
  0xd7   :  { %v1596_v30 = vsel %vm1574_vm1, %v4189_v28, -inf  ;;  %v1590_v31 = vsel %vm1574_vm1, %v4192_v29, -inf  ;;  %v4199_v32 = vadd.f32 %v4172_v13, %v1512_v27  ;;  %v4202_v33 = vadd.f32 %v4161_v8, %v1510_v26 }
  0xd8   :  { %1597 = vmax.xlane.f32.xlu1 %v1596_v30 }
  0xd9   :  { %v1593_v34 = vsel %vm1574_vm1, %v4199_v32, -inf  ;;  %v1587_v41 = vsel %vm1574_vm1, %v4202_v33, -inf }
  0xda   :  { %v3524_v35 = vpop.f32.mrf.mxu1  ;;  %1591 = vmax.xlane.f32.xlu0 %v1590_v31  ;;  %v3517_v36 = vpop.f32.mrf.mxu0 }
  0xdb   :  { %v1517_v37 = vmul.f32 0.35355338, %v3524_v35  ;;  %v1515_v38 = vmul.f32 0.35355338, %v3517_v36 }
  0xdc   :  { %1594 = vmax.xlane.f32.xlu1 %v1593_v34  ;;  %v540_v39 = vpop.f32.mrf.mxu0  ;;  %v627_v40 = vpop.f32.mrf.mxu1 }
  0xdd   :  { %v1514_v42 = vmul.f32 0.35355338, %v540_v39  ;;  %v1516_v43 = vmul.f32 0.35355338, %v627_v40  ;;  %v4209_v44 = vadd.f32 %v4156_v3, %v1517_v37  ;;  %v4212_v45 = vadd.f32 %v4151_v2, %v1515_v38 }
  0xde   :  { %1588 = vmax.xlane.f32.xlu0 %v1587_v41 }
  0xdf   :  { %v1608_v46 = vsel %vm1574_vm1, %v4209_v44, -inf  ;;  %v1602_v47 = vsel %vm1574_vm1, %v4212_v45, -inf  ;;  %v4219_v48 = vadd.f32 %v4172_v13, %v1516_v43  ;;  %v4222_v49 = vadd.f32 %v4161_v8, %v1514_v42 }
  0xe0   :  { %1609 = vmax.xlane.f32.xlu1 %v1608_v46 }
  0xe1   :  { %v1605_v50 = vsel %vm1574_vm1, %v4219_v48, -inf  ;;  %v1599_v57 = vsel %vm1574_vm1, %v4222_v49, -inf }
  0xe2   :  { %v3538_v51 = vpop.f32.mrf.mxu1  ;;  %1603 = vmax.xlane.f32.xlu0 %v1602_v47  ;;  %v3531_v52 = vpop.f32.mrf.mxu0 }
  0xe3   :  { %v1521_v53 = vmul.f32 0.35355338, %v3538_v51  ;;  %v1519_v54 = vmul.f32 0.35355338, %v3531_v52 }
  0xe4   :  { %1606 = vmax.xlane.f32.xlu1 %v1605_v50  ;;  %v714_v55 = vpop.f32.mrf.mxu0  ;;  %v801_v56 = vpop.f32.mrf.mxu1 }
  0xe5   :  { %v1518_v58 = vmul.f32 0.35355338, %v714_v55  ;;  %v1520_v59 = vmul.f32 0.35355338, %v801_v56  ;;  %v4229_v60 = vadd.f32 %v4156_v3, %v1521_v53  ;;  %v4232_v61 = vadd.f32 %v4151_v2, %v1519_v54 }
  0xe6   :  { %1600 = vmax.xlane.f32.xlu0 %v1599_v57 }
  0xe7   :  { %v1620_v62 = vsel %vm1574_vm1, %v4229_v60, -inf  ;;  %v1614_v63 = vsel %vm1574_vm1, %v4232_v61, -inf  ;;  %v4239_v0 = vadd.f32 %v4172_v13, %v1520_v59  ;;  %v4242_v1 = vadd.f32 %v4161_v8, %v1518_v58 }
  0xe8   :  { %1621 = vmax.xlane.f32.xlu1 %v1620_v62 }
  0xe9   :  { %v1617_v4 = vsel %vm1574_vm1, %v4239_v0, -inf  ;;  %v1611_v17 = vsel %vm1574_vm1, %v4242_v1, -inf }
  0xea   :  { %v3552_v5 = vpop.f32.mrf.mxu1  ;;  %1615 = vmax.xlane.f32.xlu0 %v1614_v63  ;;  %v3545_v6 = vpop.f32.mrf.mxu0 }
  0xeb   :  { %v1525_v7 = vmul.f32 0.35355338, %v3552_v5  ;;  %v1523_v9 = vmul.f32 0.35355338, %v3545_v6 }
  0xec   :  { %1618 = vmax.xlane.f32.xlu1 %v1617_v4  ;;  %v888_v10 = vpop.f32.mrf.mxu0  ;;  %v975_v14 = vpop.f32.mrf.mxu1 }
  0xed   :  { %v1522_v18 = vmul.f32 0.35355338, %v888_v10  ;;  %v1524_v19 = vmul.f32 0.35355338, %v975_v14  ;;  %v4249_v20 = vadd.f32 %v4156_v3, %v1525_v7  ;;  %v4252_v21 = vadd.f32 %v4151_v2, %v1523_v9 }
  0xee   :  { %1612 = vmax.xlane.f32.xlu0 %v1611_v17 }
  0xef   :  { %v1632_v22 = vsel %vm1574_vm1, %v4249_v20, -inf  ;;  %v1626_v23 = vsel %vm1574_vm1, %v4252_v21, -inf  ;;  %v4259_v24 = vadd.f32 %v4172_v13, %v1524_v19  ;;  %v4262_v25 = vadd.f32 %v4161_v8, %v1522_v18 }
  0xf0   :  { %1633 = vmax.xlane.f32.xlu1 %v1632_v22 }
  0xf1   :  { %v1629_v26 = vsel %vm1574_vm1, %v4259_v24, -inf  ;;  %v1623_v37 = vsel %vm1574_vm1, %v4262_v25, -inf }
  0xf2   :  { %v3566_v27 = vpop.f32.mrf.mxu1  ;;  %1627 = vmax.xlane.f32.xlu0 %v1626_v23  ;;  %v3559_v30 = vpop.f32.mrf.mxu0 }
  0xf3   :  { %v1529_v31 = vmul.f32 0.35355338, %v3566_v27  ;;  %v1527_v34 = vmul.f32 0.35355338, %v3559_v30 }
  0xf4   :  { %1630 = vmax.xlane.f32.xlu1 %v1629_v26  ;;  %v1062_v35 = vpop.f32.mrf.mxu0  ;;  %v1149_v36 = vpop.f32.mrf.mxu1 }
  0xf5   :  { %v1526_v38 = vmul.f32 0.35355338, %v1062_v35  ;;  %v1528_v39 = vmul.f32 0.35355338, %v1149_v36  ;;  %v4269_v40 = vadd.f32 %v4156_v3, %v1529_v31  ;;  %v4272_v41 = vadd.f32 %v4151_v2, %v1527_v34 }
  0xf6   :  { %1624 = vmax.xlane.f32.xlu0 %v1623_v37 }
  0xf7   :  { %v1644_v42 = vsel %vm1574_vm1, %v4269_v40, -inf  ;;  %v1638_v43 = vsel %vm1574_vm1, %v4272_v41, -inf  ;;  %v4279_v46 = vadd.f32 %v4172_v13, %v1528_v39  ;;  %v4282_v47 = vadd.f32 %v4161_v8, %v1526_v38 }
  0xf8   :  { %1645 = vmax.xlane.f32.xlu1 %v1644_v42 }
  0xf9   :  { %v1641_v50 = vsel %vm1574_vm1, %v4279_v46, -inf  ;;  %v1635_v57 = vsel %vm1574_vm1, %v4282_v47, -inf }
  0xfa   :  { %v3580_v51 = vpop.f32.mrf.mxu1  ;;  %1639 = vmax.xlane.f32.xlu0 %v1638_v43  ;;  %v3573_v52 = vpop.f32.mrf.mxu0 }
  0xfb   :  { %v1533_v53 = vmul.f32 0.35355338, %v3580_v51  ;;  %v1531_v54 = vmul.f32 0.35355338, %v3573_v52 }
  0xfc   :  { %1642 = vmax.xlane.f32.xlu1 %v1641_v50  ;;  %v1236_v55 = vpop.f32.mrf.mxu0  ;;  %v1323_v56 = vpop.f32.mrf.mxu1 }
  0xfd   :  { %v1530_v58 = vmul.f32 0.35355338, %v1236_v55  ;;  %v1532_v59 = vmul.f32 0.35355338, %v1323_v56  ;;  %v4289_v62 = vadd.f32 %v4156_v3, %v1533_v53  ;;  %v4292_v63 = vadd.f32 %v4151_v2, %v1531_v54 }
  0xfe   :  { %1636 = vmax.xlane.f32.xlu0 %v1635_v57 }
  0xff   :  { %v1656_v4 = vsel %vm1574_vm1, %v4289_v62, -inf  ;;  %v1650_v5 = vsel %vm1574_vm1, %v4292_v63, -inf  ;;  %v4299_v6 = vadd.f32 %v4172_v13, %v1532_v59  ;;  %v4302_v7 = vadd.f32 %v4161_v8, %v1530_v58 }
 0x100   :  { %1657 = vmax.xlane.f32.xlu1 %v1656_v4 }
 0x101   :  { %v1653_v9 = vsel %vm1574_vm1, %v4299_v6, -inf  ;;  %v1647_v22 = vsel %vm1574_vm1, %v4302_v7, -inf }
 0x102   :  { %v3594_v10 = vpop.f32.mrf.mxu1  ;;  %1651 = vmax.xlane.f32.xlu0 %v1650_v5  ;;  %v3587_v14 = vpop.f32.mrf.mxu0 }
 0x103   :  { %v1537_v17 = vmul.f32 0.35355338, %v3594_v10  ;;  %v1535_v23 = vmul.f32 0.35355338, %v3587_v14 }
 0x104   :  { %v1497_v18 = vpop.f32.mrf.mxu1  ;;  %1654 = vmax.xlane.f32.xlu1 %v1653_v9  ;;  %v1410_v19 = vpop.f32.mrf.mxu0 }
 0x105   :  { %v1536_v26 = vmul.f32 0.35355338, %v1497_v18  ;;  %v1534_v27 = vmul.f32 0.35355338, %v1410_v19  ;;  %v4319_v36 = vadd.f32 %v4156_v3, %v1537_v17  ;;  %v4322_v37 = vadd.f32 %v4151_v2, %v1535_v23 }
 0x106   :  { %1648 = vmax.xlane.f32.xlu0 %v1647_v22 }
 0x107   :  { %v4309_v30 = vadd.f32 %v4172_v13, %v1536_v26  ;;  %v4312_v31 = vadd.f32 %v4161_v8, %v1534_v27  ;;  %v1668_v13 = vsel %vm1574_vm1, %v4319_v36, -inf  ;;  %v1662_v8 = vsel %vm1574_vm1, %v4322_v37, -inf }
 0x109   :  { %v1665_v34 = vsel %vm1574_vm1, %v4309_v30, -inf  ;;  %v1659_v35 = vsel %vm1574_vm1, %v4312_v31, -inf }
 0x10a   :  { %1666 = vmax.xlane.f32.xlu1 %v1665_v34  ;;  %1660 = vmax.xlane.f32.xlu0 %v1659_v35 }
 0x10e   :  { %1669 = vmax.xlane.f32.xlu1 %v1668_v13  ;;  %1663 = vmax.xlane.f32.xlu0 %v1662_v8 }
 0x159   :  { %v1580_v38 = vpop.xlane.xlu1 %1579 }
 0x15a   :  { %v1672_v39 = vsub.f32 %v4164_v11, %v1580_v38 }
 0x15b   :  { %v1577_v42 = vpop.xlane.xlu0 %1576 }
 0x15c   :  { %v1705_v43 = vmul.f32 1.442695, %v1672_v39  ;;  %v1671_v3 = vsub.f32 %v4177_v15, %v1577_v42 }
 0x15d   :  { %v1586_v50 = vpop.xlane.xlu1 %1585 }
 0x15e   :  { %3707 = vpow2.f32 %v1705_v43  ;;  %v1703_v2 = vmul.f32 1.442695, %v1671_v3  ;;  %v1674_v51 = vsub.f32 %v4167_v12, %v1586_v50 }
 0x15f   :  { %v1583_v52 = vpop.xlane.xlu0 %1582 }
 0x160   :  { %3709 = vpow2.f32 %v1703_v2  ;;  %v1709_v53 = vmul.f32 1.442695, %v1674_v51  ;;  %v1673_v54 = vsub.f32 %v4180_v16, %v1583_v52 }
 0x161   :  { %v1598_v55 = vpop.xlane.xlu1 %1597 }
 0x162   :  { %3711 = vpow2.f32 %v1709_v53  ;;  %v1707_v56 = vmul.f32 1.442695, %v1673_v54  ;;  %v1678_v57 = vsub.f32 %v4189_v28, %v1598_v55 }
 0x163   :  { %v1592_v11 = vpop.xlane.xlu0 %1591 }
 0x164   :  { %3713 = vpow2.f32 %v1707_v56  ;;  %v1717_v58 = vmul.f32 1.442695, %v1678_v57  ;;  %v1676_v15 = vsub.f32 %v4192_v29, %v1592_v11 }
 0x165   :  { %v1595_v59 = vpop.xlane.xlu1 %1594 }
 0x166   :  { %v1713_v4 = vmul.f32 1.442695, %v1676_v15  ;;  %v1677_v5 = vsub.f32 %v4199_v32, %v1595_v59  ;;  %3715 = vpow2.f32 %v1717_v58 }
 0x167   :  { %v1589_v12 = vpop.xlane.xlu0 %1588 }
 0x168   :  { %3717 = vpow2.f32 %v1713_v4  ;;  %v1715_v9 = vmul.f32 1.442695, %v1677_v5  ;;  %v1675_v16 = vsub.f32 %v4202_v33, %v1589_v12 }
 0x169   :  { %v1610_v10 = vpop.xlane.xlu1 %1609 }
 0x16a   :  { %v1711_v14 = vmul.f32 1.442695, %v1675_v16  ;;  %v1682_v17 = vsub.f32 %v4209_v44, %v1610_v10  ;;  %3719 = vpow2.f32 %v1715_v9 }
 0x16b   :  { %v4337_v28 = vpop.eup %3707  ;;  %v1604_v18 = vpop.xlane.xlu0 %1603 }
 0x16c   :  { %3721 = vpow2.f32 %v1711_v14  ;;  %v1725_v29 = vmul.f32 1.442695, %v1682_v17  ;;  %v1680_v19 = vsub.f32 %v4212_v45, %v1604_v18  ;;  %v1770_v32 = vsel %vm1574_vm1, %v4337_v28, 0.0 }
 0x16d   :  { %v4342_v22 = vpop.eup %3709  ;;  %v1607_v23 = vpop.xlane.xlu1 %1606  ;;  %1771 = vadd.xlane.f32.xlu0 %v1770_v32 }
 0x16e   :  { %v1721_v33 = vmul.f32 1.442695, %v1680_v19  ;;  %v1681_v26 = vsub.f32 %v4219_v48, %v1607_v23  ;;  %3723 = vpow2.f32 %v1725_v29  ;;  %v1767_v34 = vsel %vm1574_vm1, %v4342_v22, 0.0 }
 0x16f   :  { %v4345_v27 = vpop.eup %3711  ;;  %v1601_v44 = vpop.xlane.xlu0 %1600 }
 0x170   :  { %3725 = vpow2.f32 %v1721_v33  ;;  %v1723_v35 = vmul.f32 1.442695, %v1681_v26  ;;  %v1679_v45 = vsub.f32 %v4222_v49, %v1601_v44  ;;  %v1776_v13 = vsel %vm1574_vm1, %v4345_v27, 0.0 }
 0x171   :  { %v4352_v8 = vpop.eup %3713  ;;  %1777 = vadd.xlane.f32.xlu1 %v1776_v13  ;;  %v1622_v38 = vpop.xlane.xlu1 %1621  ;;  %1768 = vadd.xlane.f32.xlu0 %v1767_v34 }
 0x172   :  { %v1719_v48 = vmul.f32 1.442695, %v1679_v45  ;;  %v1686_v39 = vsub.f32 %v4229_v60, %v1622_v38  ;;  %3727 = vpow2.f32 %v1723_v35  ;;  %v1773_v49 = vsel %vm1574_vm1, %v4352_v8, 0.0 }
 0x173   :  { %v1616_v42 = vpop.xlane.xlu0 %1615  ;;  %v4355_v43 = vpop.eup %3715 }
 0x174   :  { %3729 = vpow2.f32 %v1719_v48  ;;  %v1733_v3 = vmul.f32 1.442695, %v1686_v39  ;;  %v1684_v50 = vsub.f32 %v4232_v61, %v1616_v42  ;;  %v1788_v57 = vsel %vm1574_vm1, %v4355_v43, 0.0 }
 0x175   :  { %v4360_v2 = vpop.eup %3717  ;;  %v1619_v51 = vpop.xlane.xlu1 %1618  ;;  %1774 = vadd.xlane.f32.xlu1 %v1773_v49 }
 0x176   :  { %v1729_v52 = vmul.f32 1.442695, %v1684_v50  ;;  %v1685_v53 = vsub.f32 %v4239_v0, %v1619_v51  ;;  %v1782_v60 = vsel %vm1574_vm1, %v4360_v2, 0.0  ;;  %3731 = vpow2.f32 %v1733_v3 }
 0x177   :  { %v1613_v54 = vpop.xlane.xlu0 %1612  ;;  %1783 = vadd.xlane.f32.xlu0 %v1782_v60  ;;  %v4365_v55 = vpop.eup %3719  ;;  %v81_v60 = vld [vmem:[%s4787_s2] sm:$0xff] }
 0x178   :  { %3733 = vpow2.f32 %v1729_v52  ;;  %v1731_v61 = vmul.f32 1.442695, %v1685_v53  ;;  %v1683_v56 = vsub.f32 %v4242_v1, %v1613_v54  ;;  %v1785_v9 = vsel %vm1574_vm1, %v4365_v55, 0.0  ;;  %v82_v52 = vld [vmem:[%s4787_s2 + $0x8] sm:$0xff] }
 0x179   :  { %v4370_v11 = vpop.eup %3721  ;;  %v1634_v58 = vpop.xlane.xlu1 %1633  ;;  %1789 = vadd.xlane.f32.xlu1 %v1788_v57  ;;  %3595 = vmatprep.subr.mxu0 %v82_v52 }
 0x17a   :  { %v1727_v0 = vmul.f32 1.442695, %v1683_v56  ;;  %v1690_v15 = vsub.f32 %v4249_v20, %v1634_v58  ;;  %v1779_v59 = vsel %vm1574_vm1, %v4370_v11, 0.0  ;;  %3735 = vpow2.f32 %v1731_v61  ;;  %3596 = vmatpush3.msra.mxu0 %v82_v52 }
 0x17b   :  { %v1628_v4 = vpop.xlane.xlu0 %1627  ;;  %1780 = vadd.xlane.f32.xlu0 %v1779_v59  ;;  %v4375_v5 = vpop.eup %3723  ;;  %3597 = vmatprep.subr.mxu0 %v81_v60 }
 0x17c   :  { %3737 = vpow2.f32 %v1727_v0  ;;  %v1741_v1 = vmul.f32 1.442695, %v1690_v15  ;;  %v1688_v12 = vsub.f32 %v4252_v21, %v1628_v4  ;;  %v1800_v32 = vsel %vm1574_vm1, %v4375_v5, 0.0  ;;  %3598 = vmatpush3.msra.mxu0 %v81_v60 }
 0x17d   :  { %v4380_v16 = vpop.eup %3725  ;;  %v1631_v10 = vpop.xlane.xlu1 %1630  ;;  %1786 = vadd.xlane.f32.xlu1 %v1785_v9 }
 0x17e   :  { %v1737_v20 = vmul.f32 1.442695, %v1688_v12  ;;  %v1689_v14 = vsub.f32 %v4259_v24, %v1631_v10  ;;  %v1794_v17 = vsel %vm1574_vm1, %v4380_v16, 0.0  ;;  %3739 = vpow2.f32 %v1741_v1  ;;  %v83_v1 = vld [vmem:[%s4787_s2 + $0x10] sm:$0xff] }
 0x17f   :  { %v1625_v18 = vpop.xlane.xlu0 %1624  ;;  %1795 = vadd.xlane.f32.xlu0 %v1794_v17  ;;  %v4385_v29 = vpop.eup %3727 }
 0x180   :  { %3741 = vpow2.f32 %v1737_v20  ;;  %v1739_v21 = vmul.f32 1.442695, %v1689_v14  ;;  %v1687_v19 = vsub.f32 %v4262_v25, %v1625_v18  ;;  %v1797_v13 = vsel %vm1574_vm1, %v4385_v29, 0.0 }
 0x181   :  { %v4390_v23 = vpop.eup %3729  ;;  %v1646_v33 = vpop.xlane.xlu1 %1645  ;;  %1801 = vadd.xlane.f32.xlu1 %v1800_v32 }
 0x182   :  { %v1735_v24 = vmul.f32 1.442695, %v1687_v19  ;;  %v1694_v26 = vsub.f32 %v4269_v40, %v1646_v33  ;;  %v1791_v44 = vsel %vm1574_vm1, %v4390_v23, 0.0  ;;  %3743 = vpow2.f32 %v1739_v21 }
 0x183   :  { %v1640_v34 = vpop.xlane.xlu0 %1639  ;;  %1792 = vadd.xlane.f32.xlu0 %v1791_v44  ;;  %v4395_v35 = vpop.eup %3731 }
 0x184   :  { %3745 = vpow2.f32 %v1735_v24  ;;  %v1749_v25 = vmul.f32 1.442695, %v1694_v26  ;;  %v1692_v45 = vsub.f32 %v4272_v41, %v1640_v34  ;;  %v1812_v51 = vsel %vm1574_vm1, %v4395_v35, 0.0  ;;  %v4455_v24 = vld [vmem:[%s4787_s2 + $0x38] sm:$0xff] }
 0x185   :  { %v4400_v38 = vpop.eup %3733  ;;  %v1643_v48 = vpop.xlane.xlu1 %1642  ;;  %1798 = vadd.xlane.f32.xlu1 %v1797_v13 }
 0x186   :  { %v1745_v40 = vmul.f32 1.442695, %v1692_v45  ;;  %v1693_v39 = vsub.f32 %v4279_v46, %v1643_v48  ;;  %v1806_v42 = vsel %vm1574_vm1, %v4400_v38, 0.0  ;;  %3747 = vpow2.f32 %v1749_v25 }
 0x187   :  { %v1637_v3 = vpop.xlane.xlu0 %1636  ;;  %1807 = vadd.xlane.f32.xlu0 %v1806_v42  ;;  %v4405_v50 = vpop.eup %3735 }
 0x188   :  { %3749 = vpow2.f32 %v1745_v40  ;;  %v1747_v41 = vmul.f32 1.442695, %v1693_v39  ;;  %v1691_v49 = vsub.f32 %v4282_v47, %v1637_v3  ;;  %v1809_v15 = vsel %vm1574_vm1, %v4405_v50, 0.0 }
 0x189   :  { %v4413_v46 = vpop.eup %3737  ;;  %v1658_v53 = vpop.xlane.xlu1 %1657  ;;  %1813 = vadd.xlane.f32.xlu1 %v1812_v51 }
 0x18a   :  { %v1743_v54 = vmul.f32 1.442695, %v1691_v49  ;;  %v1698_v61 = vsub.f32 %v4289_v62, %v1658_v53  ;;  %v1803_v47 = vsel %vm1574_vm1, %v4413_v46, 0.0  ;;  %3751 = vpow2.f32 %v1747_v41  ;;  %v84_v62 = vld [vmem:[%s4787_s2 + $0x18] sm:$0xff] }
 0x18b   :  { %v1652_v56 = vpop.xlane.xlu0 %1651  ;;  %1804 = vadd.xlane.f32.xlu0 %v1803_v47  ;;  %v4421_v57 = vpop.eup %3739  ;;  %3602 = vmatprep.subr.mxu1 %v84_v62 }
 0x18c   :  { %3753 = vpow2.f32 %v1743_v54  ;;  %v1757_v58 = vmul.f32 1.442695, %v1698_v61  ;;  %v1696_v0 = vsub.f32 %v4292_v63, %v1652_v56  ;;  %3603 = vmatpush3.msra.mxu1 %v84_v62  ;;  %v1824_v18 = vsel %vm1574_vm1, %v4421_v57, 0.0 }
 0x18d   :  { %v4429_v59 = vpop.eup %3741  ;;  %v1655_v4 = vpop.xlane.xlu1 %1654  ;;  %1810 = vadd.xlane.f32.xlu1 %v1809_v15  ;;  %3604 = vmatprep.subr.mxu1 %v83_v1 }
 0x18e   :  { %v1753_v12 = vmul.f32 1.442695, %v1696_v0  ;;  %v1697_v63 = vsub.f32 %v4299_v6, %v1655_v4  ;;  %v1818_v9 = vsel %vm1574_vm1, %v4429_v59, 0.0  ;;  %3755 = vpow2.f32 %v1757_v58  ;;  %3605 = vmatpush3.msra.mxu1 %v83_v1  ;;  %v4447_v6 = vld [vmem:[%s4787_s2 + $0x28] sm:$0xff] }
 0x18f   :  { %v1649_v10 = vpop.xlane.xlu0 %1648  ;;  %1819 = vadd.xlane.f32.xlu0 %v1818_v9  ;;  %v4437_v20 = vpop.eup %3743  ;;  %3609 = vmatprep.subr.mxu0 %v4447_v6 }
 0x190   :  { %3757 = vpow2.f32 %v1753_v12  ;;  %v1755_v14 = vmul.f32 1.442695, %v1697_v63  ;;  %v1695_v17 = vsub.f32 %v4302_v7, %v1649_v10  ;;  %v1821_v25 = vsel %vm1574_vm1, %v4437_v20, 0.0  ;;  %3616 = vmatprep.subr.mxu1 %v4455_v24 }
 0x191   :  { %v4442_v21 = vpop.eup %3745  ;;  %1825 = vadd.xlane.f32.xlu1 %v1824_v18 }
 0x192   :  { %v1751_v19 = vmul.f32 1.442695, %v1695_v17  ;;  %v1815_v32 = vsel %vm1574_vm1, %v4442_v21, 0.0  ;;  %3759 = vpow2.f32 %v1755_v14 }
 0x193   :  { %v1667_v7 = vpop.xlane.xlu1 %1666  ;;  %1816 = vadd.xlane.f32.xlu0 %v1815_v32  ;;  %v1661_v33 = vpop.xlane.xlu0 %1660 }
 0x194   :  { %v4457_v26 = vpop.eup %3747  ;;  %3761 = vpow2.f32 %v1751_v19  ;;  %v1701_v44 = vsub.f32 %v4309_v30, %v1667_v7  ;;  %v1699_v34 = vsub.f32 %v4312_v31, %v1661_v33 }
 0x195   :  { %v4464_v45 = vpop.eup %3749  ;;  %1822 = vadd.xlane.f32.xlu1 %v1821_v25  ;;  %v1836_v41 = vsel %vm1574_vm1, %v4457_v26, 0.0 }
 0x196   :  { %v1763_v13 = vmul.f32 1.442695, %v1701_v44  ;;  %v1759_v48 = vmul.f32 1.442695, %v1699_v34  ;;  %v1830_v40 = vsel %vm1574_vm1, %v4464_v45, 0.0 }
 0x197   :  { %v1670_v39 = vpop.xlane.xlu1 %1669  ;;  %1831 = vadd.xlane.f32.xlu0 %v1830_v40  ;;  %v1664_v42 = vpop.xlane.xlu0 %1663 }
 0x198   :  { %v4468_v3 = vpop.eup %3751  ;;  %3763 = vpow2.f32 %v1763_v13  ;;  %v1702_v30 = vsub.f32 %v4319_v36, %v1670_v39  ;;  %v1700_v31 = vsub.f32 %v4322_v37, %v1664_v42 }
 0x199   :  { %v4474_v49 = vpop.eup %3753  ;;  %3765 = vpow2.f32 %v1759_v48  ;;  %1837 = vadd.xlane.f32.xlu1 %v1836_v41  ;;  %v1833_v36 = vsel %vm1574_vm1, %v4468_v3, 0.0  ;;  %v85_v41 = vld [vmem:[%s4787_s2 + $0x20] sm:$0xff] }
 0x19a   :  { %v1765_v51 = vmul.f32 1.442695, %v1702_v30  ;;  %v1761_v52 = vmul.f32 1.442695, %v1700_v31  ;;  %v1827_v53 = vsel %vm1574_vm1, %v4474_v49, 0.0 }
 0x19b   :  { %1828 = vadd.xlane.f32.xlu0 %v1827_v53  ;;  %v4478_v60 = vpop.eup %3755  ;;  %v87_v53 = vld [vmem:[%s4787_s2 + $0x30] sm:$0xff] }
 0x19c   :  { %3767 = vpow2.f32 %v1765_v51  ;;  %v1848_v47 = vsel %vm1574_vm1, %v4478_v60, 0.0 }
 0x19d   :  { %v4482_v37 = vpop.eup %3757  ;;  %3769 = vpow2.f32 %v1761_v52  ;;  %1834 = vadd.xlane.f32.xlu1 %v1833_v36 }
 0x19e   :  { %v1842_v54 = vsel %vm1574_vm1, %v4482_v37, 0.0 }
 0x19f   :  { %1843 = vadd.xlane.f32.xlu0 %v1842_v54  ;;  %v4486_v61 = vpop.eup %3759 }
 0x1a0   :  { %v1845_v0 = vsel %vm1574_vm1, %v4486_v61, 0.0 }
 0x1a1   :  { %v4490_v56 = vpop.eup %3761  ;;  %1849 = vadd.xlane.f32.xlu1 %v1848_v47 }
 0x1a2   :  { %v1839_v58 = vsel %vm1574_vm1, %v4490_v56, 0.0 }
 0x1a3   :  { %1840 = vadd.xlane.f32.xlu0 %v1839_v58 }
 0x1a5   :  { %v4496_v15 = vpop.eup %3763  ;;  %1846 = vadd.xlane.f32.xlu1 %v1845_v0 }
 0x1a6   :  { %v4498_v62 = vpop.eup %3765  ;;  %v1857_v1 = vsel %vm1574_vm1, %v4496_v15, 0.0 }
 0x1a7   :  { %v1851_v4 = vsel %vm1574_vm1, %v4498_v62, 0.0 }
 0x1a8   :  { %1852 = vadd.xlane.f32.xlu0 %v1851_v4 }
 0x1a9   :  { %v4504_v12 = vpop.eup %3767  ;;  %1858 = vadd.xlane.f32.xlu1 %v1857_v1 }
 0x1aa   :  { %v4506_v63 = vpop.eup %3769  ;;  %v1860_v10 = vsel %vm1574_vm1, %v4504_v12, 0.0 }
 0x1ab   :  { %v1854_v9 = vsel %vm1574_vm1, %v4506_v63, 0.0 }
 0x1ac   :  { %1855 = vadd.xlane.f32.xlu0 %v1854_v9  ;;  %v89_v9 = vld [vmem:[%s4787_s2 + $0x40] sm:$0xff] }
 0x1ad   :  { %1861 = vadd.xlane.f32.xlu1 %v1860_v10 }
 0x1f6   :  { %v1772_v14 = vpop.xlane.xlu0 %1771 }
 0x1f7   :  { %3771 = vrcp.f32 %v1772_v14 }
 0x1fa   :  { %v1778_v17 = vpop.xlane.xlu1 %1777  ;;  %v1769_v18 = vpop.xlane.xlu0 %1768 }
 0x1fb   :  { %3773 = vrcp.f32 %v1769_v18 }
 0x1fc   :  { %3775 = vrcp.f32 %v1778_v17 }
 0x1fe   :  { %v1775_v19 = vpop.xlane.xlu1 %1774 }
 0x1ff   :  { %3777 = vrcp.f32 %v1775_v19 }
 0x200   :  { %v1784_v32 = vpop.xlane.xlu0 %1783 }
 0x201   :  { %3779 = vrcp.f32 %v1784_v32 }
 0x202   :  { %v1790_v7 = vpop.xlane.xlu1 %1789 }
 0x204   :  { %v1781_v33 = vpop.xlane.xlu0 %1780  ;;  %v3772_v34 = vpop.eup %3771 }
 0x205   :  { %3781 = vrcp.f32 %v1781_v33  ;;  %v1896_v42 = vmul.f32 %v3772_v34, %v4337_v28  ;;  %v90_v28 = vld [vmem:[%s4787_s2 + $0x48] sm:$0xff] }
 0x206   :  { %3783 = vrcp.f32 %v1790_v7  ;;  %v1787_v44 = vpop.xlane.xlu1 %1786 }
 0x207   :  { %3785 = vrcp.f32 %v1787_v44 }
 0x208   :  { %v1796_v25 = vpop.xlane.xlu0 %1795  ;;  %v3774_v13 = vpop.eup %3773 }
 0x209   :  { %v1895_v40 = vmul.f32 %v3774_v13, %v4342_v22  ;;  %v3776_v39 = vpop.eup %3775  ;;  %3787 = vrcp.f32 %v1796_v25  ;;  %v93_v13 = vld [vmem:[%s4787_s2 + $0x60] sm:$0xff] }
 0x20a   :  { %v1802_v48 = vpop.xlane.xlu1 %1801  ;;  %v1898_v22 = vmul.f32 %v3776_v39, %v4345_v27  ;;  %v92_v27 = vld [vmem:[%s4787_s2 + $0x58] sm:$0xff] }
 0x20b   :  { %3599 = vmatprep.mubr.msk.f32.mxu0 %vm1574_vm1, %v1895_v40 }
 0x20c   :  { %v3778_v30 = vpop.eup %3777  ;;  %v1793_v31 = vpop.xlane.xlu0 %1792  ;;  %3600 = vmatmul.mubr.msk.f32.vlgmr.msra.gmra.mxu0 %vm1574_vm1, %v1896_v42 }
 0x20d   :  { %3789 = vrcp.f32 %v1793_v31  ;;  %v1897_v51 = vmul.f32 %v3778_v30, %v4352_v8  ;;  %3610 = vmatpush3.msra.mxu0 %v4447_v6 }
 0x20e   :  { %3791 = vrcp.f32 %v1802_v48  ;;  %v1799_v52 = vpop.xlane.xlu1 %1798  ;;  %3611 = vmatprep.subr.mxu0 %v85_v41  ;;  %v3780_v36 = vpop.eup %3779 }
 0x20f   :  { %3793 = vrcp.f32 %v1799_v52  ;;  %3606 = vmatprep.mubr.msk.f32.mxu1 %vm1574_vm1, %v1897_v51  ;;  %3612 = vmatpush3.msra.mxu0 %v85_v41  ;;  %v1900_v1 = vmul.f32 %v3780_v36, %v4360_v2  ;;  %v91_v2 = vld [vmem:[%s4787_s2 + $0x50] sm:$0xff] }
 0x210   :  { %3607 = vmatmul.mubr.msk.f32.vlgmr.msra.gmra.mxu1 %vm1574_vm1, %v1898_v22  ;;  %v1808_v8 = vpop.xlane.xlu0 %1807  ;;  %3623 = vmatprep.subr.mxu0 %v90_v28 }
 0x211   :  { %3617 = vmatpush3.msra.mxu1 %v4455_v24  ;;  %3795 = vrcp.f32 %v1808_v8 }
 0x212   :  { %v3782_v6 = vpop.eup %3781  ;;  %v1814_v54 = vpop.xlane.xlu1 %1813  ;;  %3618 = vmatprep.subr.mxu1 %v87_v53 }
 0x213   :  { %v3784_v47 = vpop.eup %3783  ;;  %v1899_v58 = vmul.f32 %v3782_v6, %v4370_v11  ;;  %3619 = vmatpush3.msra.mxu1 %v87_v53  ;;  %v97_v53 = vld [vmem:[%s4787_s2 + $0x80] sm:$0xff] }
 0x214   :  { %v3786_v0 = vpop.eup %3785  ;;  %v1805_v4 = vpop.xlane.xlu0 %1804  ;;  %3630 = vmatprep.subr.mxu1 %v92_v27  ;;  %v1902_v11 = vmul.f32 %v3784_v47, %v4355_v43  ;;  %v96_v43 = vld [vmem:[%s4787_s2 + $0x78] sm:$0xff] }
 0x215   :  { %3797 = vrcp.f32 %v1805_v4  ;;  %3613 = vmatprep.mubr.msk.f32.mxu0 %vm1574_vm1, %v1899_v58  ;;  %v1901_v24 = vmul.f32 %v3786_v0, %v4365_v55  ;;  %v94_v55 = vld [vmem:[%s4787_s2 + $0x68] sm:$0xff] }
 0x216   :  { %3799 = vrcp.f32 %v1814_v54  ;;  %v1811_v10 = vpop.xlane.xlu1 %1810  ;;  %3614 = vmatmul.mubr.msk.f32.vlgmr.msra.gmra.mxu0 %vm1574_vm1, %v1900_v1  ;;  %v3788_v17 = vpop.eup %3787 }
 0x217   :  { %3801 = vrcp.f32 %v1811_v10  ;;  %3620 = vmatprep.mubr.msk.f32.mxu1 %vm1574_vm1, %v1901_v24  ;;  %3624 = vmatpush3.msra.mxu0 %v90_v28  ;;  %v1904_v34 = vmul.f32 %v3788_v17, %v4380_v16  ;;  %v95_v16 = vld [vmem:[%s4787_s2 + $0x70] sm:$0xff] }
 0x218   :  { %3621 = vmatmul.mubr.msk.f32.vlgmr.msra.gmra.mxu1 %vm1574_vm1, %v1902_v11  ;;  %v1820_v14 = vpop.xlane.xlu0 %1819  ;;  %3625 = vmatprep.subr.mxu0 %v89_v9 }
 0x219   :  { %3626 = vmatpush3.msra.mxu0 %v89_v9  ;;  %3631 = vmatpush3.msra.mxu1 %v92_v27  ;;  %3803 = vrcp.f32 %v1820_v14  ;;  %v101_v9 = vld [vmem:[%s4787_s2 + $0xa0] sm:$0xff] }
 0x21a   :  { %v3790_v18 = vpop.eup %3789  ;;  %v1826_v19 = vpop.xlane.xlu1 %1825  ;;  %3632 = vmatprep.subr.mxu1 %v91_v2  ;;  %3637 = vmatprep.subr.mxu0 %v94_v55 }
 0x21b   :  { %v3792_v32 = vpop.eup %3791  ;;  %v1903_v7 = vmul.f32 %v3790_v18, %v4390_v23  ;;  %3633 = vmatpush3.msra.mxu1 %v91_v2 }
 0x21c   :  { %v3794_v33 = vpop.eup %3793  ;;  %v1817_v44 = vpop.xlane.xlu0 %1816  ;;  %3644 = vmatprep.subr.mxu1 %v96_v43  ;;  %v1906_v23 = vmul.f32 %v3792_v32, %v4375_v5  ;;  %v100_v5 = vld [vmem:[%s4787_s2 + $0x98] sm:$0xff] }
 0x21d   :  { %3805 = vrcp.f32 %v1817_v44  ;;  %3627 = vmatprep.mubr.msk.f32.mxu0 %vm1574_vm1, %v1903_v7  ;;  %v1905_v25 = vmul.f32 %v3794_v33, %v4385_v29  ;;  %v98_v29 = vld [vmem:[%s4787_s2 + $0x88] sm:$0xff]  ;;  %v105_v33 = vld [vmem:[%s4787_s2 + $0xc0] sm:$0xff] }
 0x21e   :  { %3807 = vrcp.f32 %v1826_v19  ;;  %v1823_v48 = vpop.xlane.xlu1 %1822  ;;  %3628 = vmatmul.mubr.msk.f32.vlgmr.msra.gmra.mxu0 %vm1574_vm1, %v1904_v34  ;;  %v3796_v39 = vpop.eup %3795 }
 0x21f   :  { %3809 = vrcp.f32 %v1823_v48  ;;  %3634 = vmatprep.mubr.msk.f32.mxu1 %vm1574_vm1, %v1905_v25  ;;  %3638 = vmatpush3.msra.mxu0 %v94_v55  ;;  %v1908_v22 = vmul.f32 %v3796_v39, %v4400_v38  ;;  %v99_v38 = vld [vmem:[%s4787_s2 + $0x90] sm:$0xff] }
 0x220   :  { %3635 = vmatmul.mubr.msk.f32.vlgmr.msra.gmra.mxu1 %vm1574_vm1, %v1906_v23  ;;  %v1832_v40 = vpop.xlane.xlu0 %1831  ;;  %3639 = vmatprep.subr.mxu0 %v93_v13 }
 0x221   :  { %3640 = vmatpush3.msra.mxu0 %v93_v13  ;;  %3645 = vmatpush3.msra.mxu1 %v96_v43  ;;  %3811 = vrcp.f32 %v1832_v40  ;;  %v109_v40 = vld [vmem:[%s4787_s2 + $0xe0] sm:$0xff] }
 0x222   :  { %v3798_v42 = vpop.eup %3797  ;;  %v1838_v30 = vpop.xlane.xlu1 %1837  ;;  %3646 = vmatprep.subr.mxu1 %v95_v16  ;;  %3651 = vmatprep.subr.mxu0 %v98_v29 }
 0x223   :  { %v3800_v31 = vpop.eup %3799  ;;  %v1907_v41 = vmul.f32 %v3798_v42, %v4413_v46  ;;  %3647 = vmatpush3.msra.mxu1 %v95_v16 }
 0x224   :  { %v3802_v51 = vpop.eup %3801  ;;  %v1829_v52 = vpop.xlane.xlu0 %1828  ;;  %3658 = vmatprep.subr.mxu1 %v100_v5  ;;  %v1910_v46 = vmul.f32 %v3800_v31, %v4395_v35  ;;  %v104_v35 = vld [vmem:[%s4787_s2 + $0xb8] sm:$0xff] }
 0x225   :  { %3813 = vrcp.f32 %v1829_v52  ;;  %3641 = vmatprep.mubr.msk.f32.mxu0 %vm1574_vm1, %v1907_v41  ;;  %v1909_v28 = vmul.f32 %v3802_v51, %v4405_v50  ;;  %v102_v50 = vld [vmem:[%s4787_s2 + $0xa8] sm:$0xff] }
 0x226   :  { %3815 = vrcp.f32 %v1838_v30  ;;  %v1835_v8 = vpop.xlane.xlu1 %1834  ;;  %3642 = vmatmul.mubr.msk.f32.vlgmr.msra.gmra.mxu0 %vm1574_vm1, %v1908_v22  ;;  %v3804_v27 = vpop.eup %3803 }
 0x227   :  { %3817 = vrcp.f32 %v1835_v8  ;;  %3648 = vmatprep.mubr.msk.f32.mxu1 %vm1574_vm1, %v1909_v28  ;;  %3652 = vmatpush3.msra.mxu0 %v98_v29  ;;  %v1912_v1 = vmul.f32 %v3804_v27, %v4429_v59  ;;  %v103_v59 = vld [vmem:[%s4787_s2 + $0xb0] sm:$0xff] }
 0x228   :  { %3649 = vmatmul.mubr.msk.f32.vlgmr.msra.gmra.mxu1 %vm1574_vm1, %v1910_v46  ;;  %v1844_v36 = vpop.xlane.xlu0 %1843  ;;  %3653 = vmatprep.subr.mxu0 %v97_v53 }
 0x229   :  { %3654 = vmatpush3.msra.mxu0 %v97_v53  ;;  %3659 = vmatpush3.msra.mxu1 %v100_v5  ;;  %3819 = vrcp.f32 %v1844_v36 }
 0x22a   :  { %v3806_v6 = vpop.eup %3805  ;;  %v1850_v54 = vpop.xlane.xlu1 %1849  ;;  %3660 = vmatprep.subr.mxu1 %v99_v38  ;;  %3665 = vmatprep.subr.mxu0 %v102_v50 }
 0x22b   :  { %v3808_v47 = vpop.eup %3807  ;;  %v1911_v58 = vmul.f32 %v3806_v6, %v4442_v21  ;;  %3661 = vmatpush3.msra.mxu1 %v99_v38 }
 0x22c   :  { %v3810_v0 = vpop.eup %3809  ;;  %v1841_v4 = vpop.xlane.xlu0 %1840  ;;  %3672 = vmatprep.subr.mxu1 %v104_v35  ;;  %v1914_v21 = vmul.f32 %v3808_v47, %v4421_v57  ;;  %v108_v57 = vld [vmem:[%s4787_s2 + $0xd8] sm:$0xff] }
 0x22d   :  { %3821 = vrcp.f32 %v1841_v4  ;;  %3655 = vmatprep.mubr.msk.f32.mxu0 %vm1574_vm1, %v1911_v58  ;;  %v1913_v24 = vmul.f32 %v3810_v0, %v4437_v20  ;;  %v106_v20 = vld [vmem:[%s4787_s2 + $0xc8] sm:$0xff] }
 0x22e   :  { %3823 = vrcp.f32 %v1850_v54  ;;  %v1847_v10 = vpop.xlane.xlu1 %1846  ;;  %3656 = vmatmul.mubr.msk.f32.vlgmr.msra.gmra.mxu0 %vm1574_vm1, %v1912_v1  ;;  %v3812_v11 = vpop.eup %3811 }
 0x22f   :  { %3825 = vrcp.f32 %v1847_v10  ;;  %3662 = vmatprep.mubr.msk.f32.mxu1 %vm1574_vm1, %v1913_v24  ;;  %3666 = vmatpush3.msra.mxu0 %v102_v50  ;;  %v1916_v19 = vmul.f32 %v3812_v11, %v4464_v45  ;;  %v107_v45 = vld [vmem:[%s4787_s2 + $0xd0] sm:$0xff] }
 0x230   :  { %3663 = vmatmul.mubr.msk.f32.vlgmr.msra.gmra.mxu1 %vm1574_vm1, %v1914_v21  ;;  %3667 = vmatprep.subr.mxu0 %v101_v9 }
 0x231   :  { %v1853_v2 = vpop.xlane.xlu0 %1852  ;;  %3668 = vmatpush3.msra.mxu0 %v101_v9  ;;  %3673 = vmatpush3.msra.mxu1 %v104_v35 }
 0x232   :  { %v3814_v55 = vpop.eup %3813  ;;  %3827 = vrcp.f32 %v1853_v2  ;;  %v1859_v14 = vpop.xlane.xlu1 %1858  ;;  %3674 = vmatprep.subr.mxu1 %v103_v59  ;;  %3679 = vmatprep.subr.mxu0 %v106_v20 }
 0x233   :  { %v3816_v17 = vpop.eup %3815  ;;  %3829 = vrcp.f32 %v1859_v14  ;;  %v1915_v43 = vmul.f32 %v3814_v55, %v4474_v49  ;;  %3675 = vmatpush3.msra.mxu1 %v103_v59 }
 0x234   :  { %v3818_v18 = vpop.eup %3817  ;;  %3686 = vmatprep.subr.mxu1 %v108_v57  ;;  %v1918_v49 = vmul.f32 %v3816_v17, %v4457_v26  ;;  %v112_v26 = vld [vmem:[%s4787_s2 + $0xf8] sm:$0xff] }
 0x235   :  { %v1856_v32 = vpop.xlane.xlu0 %1855  ;;  %3669 = vmatprep.mubr.msk.f32.mxu0 %vm1574_vm1, %v1915_v43  ;;  %v1917_v7 = vmul.f32 %v3818_v18, %v4468_v3  ;;  %v110_v3 = vld [vmem:[%s4787_s2 + $0xe8] sm:$0xff] }
 0x236   :  { %3831 = vrcp.f32 %v1856_v32  ;;  %v1862_v44 = vpop.xlane.xlu1 %1861  ;;  %3670 = vmatmul.mubr.msk.f32.vlgmr.msra.gmra.mxu0 %vm1574_vm1, %v1916_v19  ;;  %v3820_v34 = vpop.eup %3819 }
 0x237   :  { %3833 = vrcp.f32 %v1862_v44  ;;  %3676 = vmatprep.mubr.msk.f32.mxu1 %vm1574_vm1, %v1917_v7  ;;  %3680 = vmatpush3.msra.mxu0 %v106_v20  ;;  %v1920_v16 = vmul.f32 %v3820_v34, %v4482_v37  ;;  %v111_v37 = vld [vmem:[%s4787_s2 + $0xf0] sm:$0xff] }
 0x238   :  { %3677 = vmatmul.mubr.msk.f32.vlgmr.msra.gmra.mxu1 %vm1574_vm1, %v1918_v49  ;;  %3681 = vmatprep.subr.mxu0 %v105_v33 }
 0x239   :  { %3682 = vmatpush3.msra.mxu0 %v105_v33  ;;  %3687 = vmatpush3.msra.mxu1 %v108_v57 }
 0x23a   :  { %v3822_v25 = vpop.eup %3821  ;;  %3688 = vmatprep.subr.mxu1 %v107_v45  ;;  %3693 = vmatprep.subr.mxu0 %v110_v3 }
 0x23b   :  { %v3824_v13 = vpop.eup %3823  ;;  %v1919_v48 = vmul.f32 %v3822_v25, %v4490_v56  ;;  %3689 = vmatpush3.msra.mxu1 %v107_v45 }
 0x23c   :  { %v3826_v23 = vpop.eup %3825  ;;  %3700 = vmatprep.subr.mxu1 %v112_v26  ;;  %v1922_v39 = vmul.f32 %v3824_v13, %v4478_v60 }
 0x23d   :  { %3683 = vmatprep.mubr.msk.f32.mxu0 %vm1574_vm1, %v1919_v48  ;;  %v1921_v29 = vmul.f32 %v3826_v23, %v4486_v61 }
 0x23e   :  { %3684 = vmatmul.mubr.msk.f32.vlgmr.msra.gmra.mxu0 %vm1574_vm1, %v1920_v16 }
 0x23f   :  { %v3828_v5 = vpop.eup %3827  ;;  %3690 = vmatprep.mubr.msk.f32.mxu1 %vm1574_vm1, %v1921_v29  ;;  %3694 = vmatpush3.msra.mxu0 %v110_v3 }
 0x240   :  { %v3830_v56 = vpop.eup %3829  ;;  %3691 = vmatmul.mubr.msk.f32.vlgmr.msra.gmra.mxu1 %vm1574_vm1, %v1922_v39  ;;  %v1923_v61 = vmul.f32 %v3828_v5, %v4498_v62  ;;  %3695 = vmatprep.subr.mxu0 %v109_v40 }
 0x241   :  { %3701 = vmatpush3.msra.mxu1 %v112_v26  ;;  %v1925_v42 = vmul.f32 %v3830_v56, %v4496_v15  ;;  %3696 = vmatpush3.msra.mxu0 %v109_v40 }
 0x242   :  { %3697 = vmatprep.mubr.msk.f32.mxu0 %vm1574_vm1, %v1923_v61  ;;  %3702 = vmatprep.subr.mxu1 %v111_v37 }
 0x243   :  { %v3832_v60 = vpop.eup %3831  ;;  %3704 = vmatprep.mubr.msk.f32.mxu1 %vm1574_vm1, %v1925_v42  ;;  %3703 = vmatpush3.msra.mxu1 %v111_v37 }
 0x244   :  { %v3834_v30 = vpop.eup %3833  ;;  %v1924_v31 = vmul.f32 %v3832_v60, %v4506_v63 }
 0x245   :  { %v1926_v41 = vmul.f32 %v3834_v30, %v4504_v12 }
 0x246   :  { %3698 = vmatmul.mubr.msk.f32.vlgmr.msra.gmra.mxu0 %vm1574_vm1, %v1924_v31 }
 0x247   :  { %3705 = vmatmul.mubr.msk.f32.vlgmr.msra.gmra.mxu1 %vm1574_vm1, %v1926_v41 }
 0x2cc   :  { %v3601_v62 = vpop.f32.mrf.mxu0 }
 0x2cd   :  { %3224 = vst.msk [vmem:[%s4788_s4 + $0x8] sm:$0xff] %vm113_vm0, %v3601_v62 }
 0x2ce   :  { %v1999_v15 = vpop.f32.mrf.mxu0 }
 0x2cf   :  { %3223 = vst.msk [vmem:[%s4788_s4] sm:$0xff] %vm113_vm0, %v1999_v15 }
 0x2d0   :  { %v3608_v51 = vpop.f32.mrf.mxu1 }
 0x2d1   :  { %3226 = vst.msk [vmem:[%s4788_s4 + $0x18] sm:$0xff] %vm113_vm0, %v3608_v51 }
 0x2d2   :  { %v2080_v12 = vpop.f32.mrf.mxu1 }
 0x2d3   :  { %3225 = vst.msk [vmem:[%s4788_s4 + $0x10] sm:$0xff] %vm113_vm0, %v2080_v12 }
 0x2d6   :  { %v3615_v63 = vpop.f32.mrf.mxu0 }
 0x2d7   :  { %3228 = vst.msk [vmem:[%s4788_s4 + $0x28] sm:$0xff] %vm113_vm0, %v3615_v63 }
 0x2d8   :  { %v2161_v52 = vpop.f32.mrf.mxu0  ;;  %v3622_v22 = vpop.f32.mrf.mxu1 }
 0x2d9   :  { %3227 = vst.msk [vmem:[%s4788_s4 + $0x20] sm:$0xff] %vm113_vm0, %v2161_v52  ;;  %3230 = vst.msk [vmem:[%s4788_s4 + $0x38] sm:$0xff] %vm113_vm0, %v3622_v22 }
 0x2da   :  { %v2242_v28 = vpop.f32.mrf.mxu1 }
 0x2db   :  { %3229 = vst.msk [vmem:[%s4788_s4 + $0x30] sm:$0xff] %vm113_vm0, %v2242_v28 }
 0x2de   :  { %v3629_v53 = vpop.f32.mrf.mxu0 }
 0x2df   :  { %3232 = vst.msk [vmem:[%s4788_s4 + $0x48] sm:$0xff] %vm113_vm0, %v3629_v53 }
 0x2e0   :  { %v2323_v8 = vpop.f32.mrf.mxu0  ;;  %v3636_v46 = vpop.f32.mrf.mxu1 }
 0x2e1   :  { %3231 = vst.msk [vmem:[%s4788_s4 + $0x40] sm:$0xff] %vm113_vm0, %v2323_v8  ;;  %3234 = vst.msk [vmem:[%s4788_s4 + $0x58] sm:$0xff] %vm113_vm0, %v3636_v46 }
 0x2e2   :  { %v2404_v38 = vpop.f32.mrf.mxu1 }
 0x2e3   :  { %3233 = vst.msk [vmem:[%s4788_s4 + $0x50] sm:$0xff] %vm113_vm0, %v2404_v38 }
 0x2e6   :  { %v3643_v50 = vpop.f32.mrf.mxu0 }
 0x2e7   :  { %3236 = vst.msk [vmem:[%s4788_s4 + $0x68] sm:$0xff] %vm113_vm0, %v3643_v50 }
 0x2e8   :  { %v2485_v36 = vpop.f32.mrf.mxu0  ;;  %v3650_v27 = vpop.f32.mrf.mxu1 }
 0x2e9   :  { %3235 = vst.msk [vmem:[%s4788_s4 + $0x60] sm:$0xff] %vm113_vm0, %v2485_v36  ;;  %3238 = vst.msk [vmem:[%s4788_s4 + $0x78] sm:$0xff] %vm113_vm0, %v3650_v27 }
 0x2ea   :  { %v2566_v35 = vpop.f32.mrf.mxu1 }
 0x2eb   :  { %3237 = vst.msk [vmem:[%s4788_s4 + $0x70] sm:$0xff] %vm113_vm0, %v2566_v35 }
 0x2ee   :  { %v3657_v6 = vpop.f32.mrf.mxu0 }
 0x2ef   :  { %3240 = vst.msk [vmem:[%s4788_s4 + $0x88] sm:$0xff] %vm113_vm0, %v3657_v6 }
 0x2f0   :  { %v2647_v54 = vpop.f32.mrf.mxu0  ;;  %v3664_v47 = vpop.f32.mrf.mxu1 }
 0x2f1   :  { %3239 = vst.msk [vmem:[%s4788_s4 + $0x80] sm:$0xff] %vm113_vm0, %v2647_v54  ;;  %3242 = vst.msk [vmem:[%s4788_s4 + $0x98] sm:$0xff] %vm113_vm0, %v3664_v47 }
 0x2f2   :  { %v2728_v58 = vpop.f32.mrf.mxu1 }
 0x2f3   :  { %3241 = vst.msk [vmem:[%s4788_s4 + $0x90] sm:$0xff] %vm113_vm0, %v2728_v58 }
 0x2f6   :  { %v3671_v0 = vpop.f32.mrf.mxu0 }
 0x2f7   :  { %3244 = vst.msk [vmem:[%s4788_s4 + $0xa8] sm:$0xff] %vm113_vm0, %v3671_v0 }
 0x2f8   :  { %v2809_v4 = vpop.f32.mrf.mxu0  ;;  %v3678_v1 = vpop.f32.mrf.mxu1 }
 0x2f9   :  { %3243 = vst.msk [vmem:[%s4788_s4 + $0xa0] sm:$0xff] %vm113_vm0, %v2809_v4  ;;  %3246 = vst.msk [vmem:[%s4788_s4 + $0xb8] sm:$0xff] %vm113_vm0, %v3678_v1 }
 0x2fa   :  { %v2890_v24 = vpop.f32.mrf.mxu1 }
 0x2fb   :  { %3245 = vst.msk [vmem:[%s4788_s4 + $0xb0] sm:$0xff] %vm113_vm0, %v2890_v24 }
 0x2fe   :  { %v3685_v9 = vpop.f32.mrf.mxu0 }
 0x2ff   :  { %3248 = vst.msk [vmem:[%s4788_s4 + $0xc8] sm:$0xff] %vm113_vm0, %v3685_v9 }
 0x300   :  { %v2971_v10 = vpop.f32.mrf.mxu0  ;;  %v3692_v21 = vpop.f32.mrf.mxu1 }
 0x301   :  { %3247 = vst.msk [vmem:[%s4788_s4 + $0xc0] sm:$0xff] %vm113_vm0, %v2971_v10  ;;  %3250 = vst.msk [vmem:[%s4788_s4 + $0xd8] sm:$0xff] %vm113_vm0, %v3692_v21 }
 0x302   :  { %v3052_v59 = vpop.f32.mrf.mxu1 }
 0x303   :  { %3249 = vst.msk [vmem:[%s4788_s4 + $0xd0] sm:$0xff] %vm113_vm0, %v3052_v59 }
 0x306   :  { %v3699_v20 = vpop.f32.mrf.mxu0 }
 0x307   :  { %3252 = vst.msk [vmem:[%s4788_s4 + $0xe8] sm:$0xff] %vm113_vm0, %v3699_v20  ;;  %v3706_v11 = vpop.f32.mrf.mxu1 }
 0x308   :  { %v3133_v2 = vpop.f32.mrf.mxu0  ;;  %3254 = vst.msk [vmem:[%s4788_s4 + $0xf8] sm:$0xff] %vm113_vm0, %v3706_v11 }
 0x309   :  { %3251 = vst.msk [vmem:[%s4788_s4 + $0xe0] sm:$0xff] %vm113_vm0, %v3133_v2  ;;  %v3214_v57 = vpop.f32.mrf.mxu1 }
 0x30a   :  { %3253 = vst.msk [vmem:[%s4788_s4 + $0xf0] sm:$0xff] %vm113_vm0, %v3214_v57 }

// kernel: stage_forward.21
= control target key start
LH: loop header
LB: loop body
LE: loop exit
PB: predicated region body
PF: predicated region fallthrough
CT: control target
= control target key end

     0   :  { %vm113_vm0 = vcmask 130048   ;;  %s855_s0 = inlined_call_operand.vmem [shape: f32[128,16], index: 0, kind: input, shape index: {}]   ;;  %s856_s1 = inlined_call_operand.vmem [shape: f32[1,16], index: 1, kind: input, shape index: {}]   ;;  %s857_s2 = inlined_call_operand.vmem [shape: f32[1,16], index: 2, kind: input, shape index: {}]   ;;  %s858_s3 = inlined_call_operand.vmem [shape: bf16[16,64], index: 3, kind: input, shape index: {}]   ;;  %s859_s4 = inlined_call_operand.vmem [shape: f32[1,64], index: 4, kind: input, shape index: {}]   ;;  %s860_s5 = inlined_call_operand.vmem [shape: bf16[64,16], index: 5, kind: input, shape index: {}]   ;;  %s861_s6 = inlined_call_operand.vmem [shape: f32[1,16], index: 6, kind: input, shape index: {}]   ;;  %s862_s7 = inlined_call_operand.hbm [shape: f32[128,16], index: 7, kind: output, shape index: {}]  }
   0x1   :  { %v575_v0 = vld [vmem:[%s858_s3] sm:$0xff]   ;;  %v656_v2 = vld [vmem:[%s855_s0 + $0x8] sm:$0xff]  ;;  %v669_v7 = vld [vmem:[%s855_s0 + $0x10] sm:$0xff] }
   0x2   :  { %v651_v1 = vld [vmem:[%s855_s0] sm:$0xff]  ;;  %530 = vmatprep.subr.bf16.mxu0 %v575_v0  ;;  %v674_v8 = vld [vmem:[%s855_s0 + $0x18] sm:$0xff]  ;;  %v686_v12 = vld [vmem:[%s855_s0 + $0x28] sm:$0xff] }
   0x3   :  { %v484_v3 = vld [vmem:[%s856_s1] ss:$0 sm:$0xff]  ;;  %531 = vmatpush3.bf16.msra.mxu0 %v575_v0  ;;  %v691_v13 = vld [vmem:[%s855_s0 + $0x30] sm:$0xff]  ;;  %v698_v18 = vld [vmem:[%s855_s0 + $0x38] sm:$0xff] }
   0x4   :  { %v51_v4 = vmul.f32 %v484_v3, %v651_v1  ;;  %v52_v5 = vmul.f32 %v484_v3, %v656_v2  ;;  %v485_v6 = vld [vmem:[%s857_s2] ss:$0 sm:$0xff]  ;;  %v53_v9 = vmul.f32 %v484_v3, %v669_v7  ;;  %v54_v10 = vmul.f32 %v484_v3, %v674_v8  ;;  %v708_v20 = vld [vmem:[%s855_s0 + $0x48] sm:$0xff] }
   0x5   :  { %v681_v11 = vld [vmem:[%s855_s0 + $0x20] sm:$0xff]  ;;  %v56_v17 = vmul.f32 %v484_v3, %v686_v12  ;;  %v57_v23 = vmul.f32 %v484_v3, %v691_v13  ;;  %v58_v24 = vmul.f32 %v484_v3, %v698_v18  ;;  %v60_v30 = vmul.f32 %v484_v3, %v708_v20 }
   0x6   :  { %v74_v14 = vadd.f32 %v485_v6, %v51_v4  ;;  %v75_v15 = vadd.f32 %v485_v6, %v52_v5  ;;  %v55_v16 = vmul.f32 %v484_v3, %v681_v11  ;;  %v703_v19 = vld [vmem:[%s855_s0 + $0x40] sm:$0xff]  ;;  %v76_v21 = vadd.f32 %v485_v6, %v53_v9 }
   0x7   :  { %v77_v22 = vadd.f32 %v485_v6, %v54_v10  ;;  %v79_v27 = vadd.f32 %v485_v6, %v56_v17  ;;  %v59_v28 = vmul.f32 %v484_v3, %v703_v19  ;;  %v80_v32 = vadd.f32 %v485_v6, %v57_v23 }
   0x8   :  { %v90_v25 = vpack.c.bf16 %v75_v15, %v74_v14  ;;  %v78_v26 = vadd.f32 %v485_v6, %v55_v16  ;;  %v81_v33 = vadd.f32 %v485_v6, %v58_v24 }
   0x9   :  { %v91_v29 = vpack.c.bf16 %v77_v22, %v76_v21 }
   0xa   :  { %532 = vmatprep.mubr.msk.bf16.mxu0 %vm113_vm0, %v90_v25  ;;  %v92_v31 = vpack.c.bf16 %v79_v27, %v78_v26 }
   0xb   :  { %533 = vmatmul.mubr.msk.bf16.vlgmr.msra.gmra.mxu0 %vm113_vm0, %v91_v29 }
   0xc   :  { %12 = vsyncpa [#allocation3], 0  ;;  %536 = vmatprep.mubr.msk.bf16.mxu0 %vm113_vm0, %v92_v31  ;;  %v82_v34 = vadd.f32 %v485_v6, %v59_v28  ;;  %v83_v35 = vadd.f32 %v485_v6, %v60_v30  ;;  %v720_v36 = vld [vmem:[%s855_s0 + $0x50] sm:$0xff]  ;;  %v725_v37 = vld [vmem:[%s855_s0 + $0x58] sm:$0xff]  ;;  %v93_v40 = vpack.c.bf16 %v81_v33, %v80_v32  ;;  %vm314_vm1 = vcmask 523264  }
   0xd   :  { %v730_v38 = vld [vmem:[%s855_s0 + $0x60] sm:$0xff]  ;;  %v735_v39 = vld [vmem:[%s855_s0 + $0x68] sm:$0xff]  ;;  %v61_v41 = vmul.f32 %v484_v3, %v720_v36  ;;  %v62_v42 = vmul.f32 %v484_v3, %v725_v37  ;;  %v746_v50 = vld [vmem:[%s855_s0 + $0x70] sm:$0xff] }
   0xe   :  { %v94_v43 = vpack.c.bf16 %v83_v35, %v82_v34  ;;  %v63_v44 = vmul.f32 %v484_v3, %v730_v38  ;;  %v64_v45 = vmul.f32 %v484_v3, %v735_v39  ;;  %v751_v51 = vld [vmem:[%s855_s0 + $0x78] sm:$0xff]  ;;  %v65_v53 = vmul.f32 %v484_v3, %v746_v50  ;;  %v577_v60 = vld [vmem:[%s860_s5 + $0x10] sm:$0xff]   ;;  %v578_v61 = vld [vmem:[%s860_s5 + $0x8] sm:$0xff]  }
   0xf   :  { %v84_v46 = vadd.f32 %v485_v6, %v61_v41  ;;  %v85_v47 = vadd.f32 %v485_v6, %v62_v42  ;;  %v66_v54 = vmul.f32 %v484_v3, %v751_v51  ;;  %v576_v59 = vld [vmem:[%s860_s5 + $0x18] sm:$0xff]   ;;  %v579_v62 = vld [vmem:[%s860_s5] sm:$0xff]  }
  0x10   :  { %v86_v48 = vadd.f32 %v485_v6, %v63_v44  ;;  %v87_v49 = vadd.f32 %v485_v6, %v64_v45  ;;  %v88_v56 = vadd.f32 %v485_v6, %v65_v53  ;;  %548 = vmatprep.subr.bf16.mxu1 %v576_v59  ;;  %v773_v0 = vld [vmem:[%s859_s4] ss:$0 sm:$0xff] }
  0x11   :  { %v95_v52 = vpack.c.bf16 %v85_v47, %v84_v46  ;;  %v89_v57 = vadd.f32 %v485_v6, %v66_v54  ;;  %549 = vmatpush3.bf16.msra.mxu1 %v576_v59 }
  0x12   :  { %v96_v55 = vpack.c.bf16 %v87_v49, %v86_v48  ;;  %550 = vmatprep.subr.bf16.mxu1 %v577_v60 }
  0x13   :  { %537 = vmatmul.mubr.msk.bf16.gmra.mxu0 %vm113_vm0, %v93_v40  ;;  %v97_v58 = vpack.c.bf16 %v89_v57, %v88_v56 }
  0x14   :  { %540 = vmatprep.mubr.msk.bf16.mxu0 %vm113_vm0, %v94_v43 }
  0x15   :  { %551 = vmatpush3.bf16.msra.mxu1 %v577_v60 }
  0x16   :  { %552 = vmatprep.subr.bf16.mxu1 %v578_v61 }
  0x19   :  { %553 = vmatpush3.bf16.msra.mxu1 %v578_v61 }
  0x1a   :  { %554 = vmatprep.subr.bf16.mxu1 %v579_v62 }
  0x1b   :  { %541 = vmatmul.mubr.msk.bf16.gmra.mxu0 %vm113_vm0, %v95_v52 }
  0x1c   :  { %544 = vmatprep.mubr.msk.bf16.mxu0 %vm113_vm0, %v96_v55 }
  0x1d   :  { %555 = vmatpush3.bf16.msra.mxu1 %v579_v62 }
  0x23   :  { %545 = vmatmul.mubr.msk.bf16.gmra.mxu0 %vm113_vm0, %v97_v58 }
  0xcb   :  { %v534_v63 = vpop.f32.mrf.mxu0 }
  0xcc   :  { %v181_v5 = vadd.f32 %v534_v63, %v773_v0 }
  0xcd   :  { %v172_v3 = vpop.f32.mrf.mxu0 }
  0xce   :  { %v173_v4 = vadd.f32 %v773_v0, %v172_v3  ;;  %v237_v17 = vmax.f32 %v181_v5, 0.0 }
  0xcf   :  { %v535_v6 = vpop.f32.mrf.mxu0 }
  0xd0   :  { %v184_v9 = vadd.f32 %v535_v6, %v773_v0  ;;  %v235_v14 = vmax.f32 %v173_v4, 0.0  ;;  %v253_v28 = vmin.f32 %v237_v17, 6.0 }
  0xd1   :  { %v175_v10 = vpop.f32.mrf.mxu0 }
  0xd2   :  { %v238_v15 = vmax.f32 %v184_v9, 0.0  ;;  %v176_v16 = vadd.f32 %v773_v0, %v175_v10  ;;  %v251_v25 = vmin.f32 %v235_v14, 6.0 }
  0xd3   :  { %v538_v21 = vpop.f32.mrf.mxu0 }
  0xd4   :  { %v236_v22 = vmax.f32 %v176_v16, 0.0  ;;  %v254_v23 = vmin.f32 %v238_v15, 6.0  ;;  %v197_v29 = vadd.f32 %v538_v21, %v773_v0 }
  0xd5   :  { %v188_v24 = vpop.f32.mrf.mxu0 }
  0xd6   :  { %v252_v26 = vmin.f32 %v236_v22, 6.0  ;;  %v189_v27 = vadd.f32 %v773_v0, %v188_v24  ;;  %v268_v33 = vpack.c.bf16 %v254_v23, %v253_v28  ;;  %v241_v42 = vmax.f32 %v197_v29, 0.0 }
  0xd7   :  { %v539_v30 = vpop.f32.mrf.mxu0 }
  0xd8   :  { %v200_v31 = vadd.f32 %v539_v30, %v773_v0  ;;  %v267_v32 = vpack.c.bf16 %v252_v26, %v251_v25  ;;  %v239_v35 = vmax.f32 %v189_v27, 0.0  ;;  %v257_v52 = vmin.f32 %v241_v42, 6.0 }
  0xd9   :  { %v191_v34 = vpop.f32.mrf.mxu0 }
  0xda   :  { %v242_v40 = vmax.f32 %v200_v31, 0.0  ;;  %v192_v41 = vadd.f32 %v773_v0, %v191_v34  ;;  %556 = vmatprep.mubr.msk.bf16.mxu1 %vm314_vm1, %v267_v32  ;;  %v255_v47 = vmin.f32 %v239_v35, 6.0 }
  0xdb   :  { %v542_v43 = vpop.f32.mrf.mxu0  ;;  %557 = vmatmul.mubr.msk.bf16.vlgmr.msra.gmra.mxu1 %vm314_vm1, %v268_v33 }
  0xdc   :  { %v240_v44 = vmax.f32 %v192_v41, 0.0  ;;  %v258_v45 = vmin.f32 %v242_v40, 6.0  ;;  %v213_v53 = vadd.f32 %v542_v43, %v773_v0 }
  0xdd   :  { %v204_v46 = vpop.f32.mrf.mxu0 }
  0xde   :  { %v256_v48 = vmin.f32 %v240_v44, 6.0  ;;  %v205_v49 = vadd.f32 %v773_v0, %v204_v46  ;;  %v270_v57 = vpack.c.bf16 %v258_v45, %v257_v52  ;;  %v245_v62 = vmax.f32 %v213_v53, 0.0 }
  0xdf   :  { %v543_v54 = vpop.f32.mrf.mxu0 }
  0xe0   :  { %v269_v55 = vpack.c.bf16 %v256_v48, %v255_v47  ;;  %v216_v56 = vadd.f32 %v543_v54, %v773_v0  ;;  %v243_v59 = vmax.f32 %v205_v49, 0.0  ;;  %v261_v14 = vmin.f32 %v245_v62, 6.0 }
  0xe1   :  { %v207_v58 = vpop.f32.mrf.mxu0 }
  0xe2   :  { %v246_v60 = vmax.f32 %v216_v56, 0.0  ;;  %v208_v61 = vadd.f32 %v773_v0, %v207_v58  ;;  %560 = vmatprep.mubr.msk.bf16.mxu1 %vm314_vm1, %v269_v55  ;;  %v259_v6 = vmin.f32 %v243_v59, 6.0 }
  0xe3   :  { %v546_v63 = vpop.f32.mrf.mxu0  ;;  %561 = vmatmul.mubr.msk.bf16.gmra.mxu1 %vm314_vm1, %v270_v57 }
  0xe4   :  { %v244_v3 = vmax.f32 %v208_v61, 0.0  ;;  %v262_v4 = vmin.f32 %v246_v60, 6.0  ;;  %v229_v15 = vadd.f32 %v546_v63, %v773_v0 }
  0xe5   :  { %v220_v5 = vpop.f32.mrf.mxu0 }
  0xe6   :  { %v260_v9 = vmin.f32 %v244_v3, 6.0  ;;  %v221_v10 = vadd.f32 %v773_v0, %v220_v5  ;;  %v272_v22 = vpack.c.bf16 %v262_v4, %v261_v14  ;;  %v249_v27 = vmax.f32 %v229_v15, 0.0 }
  0xe7   :  { %v547_v16 = vpop.f32.mrf.mxu0 }
  0xe8   :  { %v271_v17 = vpack.c.bf16 %v260_v9, %v259_v6  ;;  %v232_v21 = vadd.f32 %v547_v16, %v773_v0  ;;  %v247_v24 = vmax.f32 %v221_v10, 0.0  ;;  %v265_v32 = vmin.f32 %v249_v27, 6.0 }
  0xe9   :  { %v223_v23 = vpop.f32.mrf.mxu0 }
  0xea   :  { %v250_v25 = vmax.f32 %v232_v21, 0.0  ;;  %v224_v26 = vadd.f32 %v773_v0, %v223_v23  ;;  %564 = vmatprep.mubr.msk.bf16.mxu1 %vm314_vm1, %v271_v17  ;;  %v263_v30 = vmin.f32 %v247_v24, 6.0  ;;  %v802_v0 = vld [vmem:[%s861_s6] ss:$0 sm:$0xff]  ;;  %s602_s6 = smov [#allocation2]  }
  0xeb   :  { %565 = vmatmul.mubr.msk.bf16.gmra.mxu1 %vm314_vm1, %v272_v22  ;;  %s473_s19 = sshll.u32 %s602_s6, 4  ;;  %s474_s19 = int_to_ptr.vmem [resolvable:$true] %s473_s19 }
  0xec   :  { %v248_v28 = vmax.f32 %v224_v26, 0.0  ;;  %v266_v29 = vmin.f32 %v250_v25, 6.0  ;;  %s580_s20 = scalar_lea.vmem %s474_s19, 2048  ;;  %p585_p1 = scmp.lt.s32.totalorder %s474_s19, %s474_s19 }
  0xed   :  { %p581_p0 = scmp.ne.s32.totalorder %s474_s19, %s580_s20  ;;  %p586_p2 = scmp.lt.s32.totalorder %s580_s20, %s580_s20 }
  0xee   :  { %v264_v31 = vmin.f32 %v248_v28, 6.0  ;;  %v274_v34 = vpack.c.bf16 %v266_v29, %v265_v32 }
  0xef   :  { %p587_p3 = por %p586_p2, %p585_p1 }
  0xf0   :  { %v273_v33 = vpack.c.bf16 %v264_v31, %v263_v30 }
  0xf1   :  { %p588_p4 = pnand %p587_p3, %p581_p0 }
  0xf2   :  { %568 = vmatprep.mubr.msk.bf16.mxu1 %vm314_vm1, %v273_v33 }
  0xf3   :  { %569 = vmatmul.mubr.msk.bf16.gmra.mxu1 %vm314_vm1, %v274_v34 }
 0x19b   :  { %v558_v35 = vpop.f32.mrf.mxu1 }
 0x19c   :  { %v382_v40 = vadd.f32 %v558_v35, %v802_v0 }
 0x19d   :  { %v373_v41 = vpop.f32.mrf.mxu1 }
 0x19e   :  { %v438_v42 = vadd.f32 %v382_v40, %v669_v7  ;;  %v374_v43 = vadd.f32 %v802_v0, %v373_v41 }
 0x19f   :  { %v559_v44 = vpop.f32.mrf.mxu1 }
 0x1a0   :  { %454 = vst.msk [vmem:[#allocation2 + $0x10] sm:$0xff] %vm113_vm0, %v438_v42  ;;  %v436_v45 = vadd.f32 %v374_v43, %v651_v1  ;;  %v385_v46 = vadd.f32 %v559_v44, %v802_v0 }
 0x1a1   :  { %v376_v47 = vpop.f32.mrf.mxu1 }
 0x1a2   :  { %452 = vst.msk [vmem:[#allocation2] sm:$0xff] %vm113_vm0, %v436_v45  ;;  %v439_v48 = vadd.f32 %v385_v46, %v674_v8  ;;  %v377_v49 = vadd.f32 %v802_v0, %v376_v47 }
 0x1a3   :  { %v562_v52 = vpop.f32.mrf.mxu1 }
 0x1a4   :  { %455 = vst.msk [vmem:[#allocation2 + $0x18] sm:$0xff] %vm113_vm0, %v439_v48  ;;  %v437_v7 = vadd.f32 %v377_v49, %v656_v2  ;;  %v398_v53 = vadd.f32 %v562_v52, %v802_v0 }
 0x1a5   :  { %v389_v54 = vpop.f32.mrf.mxu1 }
 0x1a6   :  { %453 = vst.msk [vmem:[#allocation2 + $0x8] sm:$0xff] %vm113_vm0, %v437_v7  ;;  %v442_v1 = vadd.f32 %v398_v53, %v691_v13  ;;  %v390_v55 = vadd.f32 %v802_v0, %v389_v54 }
 0x1a7   :  { %v563_v56 = vpop.f32.mrf.mxu1 }
 0x1a8   :  { %458 = vst.msk [vmem:[#allocation2 + $0x30] sm:$0xff] %vm113_vm0, %v442_v1  ;;  %v440_v8 = vadd.f32 %v390_v55, %v681_v11  ;;  %v401_v57 = vadd.f32 %v563_v56, %v802_v0 }
 0x1a9   :  { %v392_v58 = vpop.f32.mrf.mxu1 }
 0x1aa   :  { %456 = vst.msk [vmem:[#allocation2 + $0x20] sm:$0xff] %vm113_vm0, %v440_v8  ;;  %v443_v2 = vadd.f32 %v401_v57, %v698_v18  ;;  %v393_v59 = vadd.f32 %v802_v0, %v392_v58 }
 0x1ab   :  { %v566_v60 = vpop.f32.mrf.mxu1 }
 0x1ac   :  { %459 = vst.msk [vmem:[#allocation2 + $0x38] sm:$0xff] %vm113_vm0, %v443_v2  ;;  %v441_v13 = vadd.f32 %v393_v59, %v686_v12  ;;  %v414_v61 = vadd.f32 %v566_v60, %v802_v0 }
 0x1ad   :  { %v405_v62 = vpop.f32.mrf.mxu1 }
 0x1ae   :  { %457 = vst.msk [vmem:[#allocation2 + $0x28] sm:$0xff] %vm113_vm0, %v441_v13  ;;  %v446_v11 = vadd.f32 %v414_v61, %v720_v36  ;;  %v406_v63 = vadd.f32 %v802_v0, %v405_v62 }
 0x1af   :  { %v567_v3 = vpop.f32.mrf.mxu1 }
 0x1b0   :  { %462 = vst.msk [vmem:[#allocation2 + $0x50] sm:$0xff] %vm113_vm0, %v446_v11  ;;  %v444_v18 = vadd.f32 %v406_v63, %v703_v19  ;;  %v417_v4 = vadd.f32 %v567_v3, %v802_v0 }
 0x1b1   :  { %v408_v5 = vpop.f32.mrf.mxu1 }
 0x1b2   :  { %460 = vst.msk [vmem:[#allocation2 + $0x40] sm:$0xff] %vm113_vm0, %v444_v18  ;;  %v447_v12 = vadd.f32 %v417_v4, %v725_v37  ;;  %v409_v6 = vadd.f32 %v802_v0, %v408_v5 }
 0x1b3   :  { %v570_v9 = vpop.f32.mrf.mxu1 }
 0x1b4   :  { %463 = vst.msk [vmem:[#allocation2 + $0x58] sm:$0xff] %vm113_vm0, %v447_v12  ;;  %v445_v36 = vadd.f32 %v409_v6, %v708_v20  ;;  %v430_v10 = vadd.f32 %v570_v9, %v802_v0 }
 0x1b5   :  { %v421_v14 = vpop.f32.mrf.mxu1 }
 0x1b6   :  { %461 = vst.msk [vmem:[#allocation2 + $0x48] sm:$0xff] %vm113_vm0, %v445_v36  ;;  %v450_v19 = vadd.f32 %v430_v10, %v746_v50  ;;  %v422_v15 = vadd.f32 %v802_v0, %v421_v14 }
 0x1b7   :  { %v571_v16 = vpop.f32.mrf.mxu1 }
 0x1b8   :  { %466 = vst.msk [vmem:[#allocation2 + $0x70] sm:$0xff] %vm113_vm0, %v450_v19  ;;  %v448_v37 = vadd.f32 %v422_v15, %v730_v38  ;;  %v433_v17 = vadd.f32 %v571_v16, %v802_v0 }
 0x1b9   :  { %v424_v21 = vpop.f32.mrf.mxu1 }
 0x1ba   :  { %464 = vst.msk [vmem:[#allocation2 + $0x60] sm:$0xff] %vm113_vm0, %v448_v37  ;;  %v451_v20 = vadd.f32 %v433_v17, %v751_v51  ;;  %v425_v22 = vadd.f32 %v802_v0, %v424_v21 }
 0x1bc   :  { %467 = vst.msk [vmem:[#allocation2 + $0x78] sm:$0xff] %vm113_vm0, %v451_v20  ;;  %v449_v50 = vadd.f32 %v425_v22, %v735_v39 }
 0x1be   :  { %465 = vst.msk [vmem:[#allocation2 + $0x68] sm:$0xff] %vm113_vm0, %v449_v50 }
 0x1bf   :  { %591 = shalt.err (!%p588_p4)
}
 0x1c0   :  { %s603_s21 = smov 128   ;;  %s604_s22 = smov 8  }
 0x1c1   :  { %479 = dma.vmem_to_hbm [thread:$0]  %s474_s19, 2048, %s862_s7, [#allocation3], %s603_s21, %s603_s21, %s604_s22  }
 0x1c2   :  { %600 = dma.done.wait [#allocation3], 2048  }
 0x1c3   :  { %601 = vsyncadd [#allocation3], 4294965248 }
 0x1c4   :  { %483 = vsyncpa [#allocation3], 1 }

</bundles_post_ra>
